<compile_context>
chip_gen: v5e
topology: v5e:2x2
jax: 0.10.0
libtpu: 0.0.40
codegen_flags: <defaults>
</compile_context>

<pallas_src>
import functools

import jax
import jax.numpy as jnp
from jax.experimental import pallas as pl
from jax.experimental.pallas import tpu as pltpu


def _round_up(x, m):
    return ((x + m - 1) // m) * m


def _pick_tile(dim, cap=512):
    """Largest of (512, 256, 128) <= cap that divides `dim` (dim multiple of 128)."""
    for t in (512, 256, 128):
        if t <= cap and dim % t == 0:
            return t
    return dim


# ---------------------------------------------------------------------------
# Pallas kernels
# ---------------------------------------------------------------------------
def conv_gemm_kernel(x_ref, w_ref, b_ref, o_ref, *, taps, pool):
    """Fused conv (kh taps only; W==1) + BN-folded bias + ReLU, channels-last.

    taps == 3:
      x_ref: (1, T+2, Cin_p) bf16  activation with a 1-row zero halo along T
      w_ref: (3*Cin_p, tn)   bf16  the 3 kh taps stacked along K (BN folded)
    taps == 1 (first layer, im2col'd in the wrapper):
      x_ref: (1, T, K0)      bf16  [x[t-1], x[t], x[t+1]] packed along lanes
      w_ref: (K0, tn)        bf16
    b_ref:   (1, tn) f32
    pool=False: o_ref (1, T+2, tn) bf16 - rows 1..T hold y, rows 0 / T+1 are
                written as zeros so the NEXT layer's halo needs no jnp.pad.
    pool=True : o_ref (1, 1, tn)   bf16 - fused global average pool over T.

    Grid = (B, cout_p // tn). No K grid axis and no accumulator scratch: the
    full (stacked) K always fits one block at these channel sizes.
    """
    x = x_ref[0]
    if taps == 3:
        T = x.shape[0] - 2
        # Stack the 3 kh taps along K -> one MXU matmul with K = 3*Cin_p.
        lhs = jnp.concatenate([x[0:T, :], x[1:T + 1, :], x[2:T + 2, :]], axis=1)
    else:
        T = x.shape[0]
        lhs = x

    y = jnp.dot(lhs, w_ref[...], preferred_element_type=jnp.float32)
    y = jnp.maximum(y + b_ref[...], 0.0)           # BN-folded bias + ReLU in f32

    if pool:
        # Fused global average pool over T (H axis; W == 1).
        o_ref[0] = jnp.mean(y, axis=0, keepdims=True).astype(o_ref.dtype)
    else:
        # Emit the next layer's zero halo in the same block store (no jnp.pad).
        zero_row = jnp.zeros((1, y.shape[1]), o_ref.dtype)
        o_ref[0] = jnp.concatenate(
            [zero_row, y.astype(o_ref.dtype), zero_row], axis=0)


def fc_stack_kernel(x_ref, w1_ref, b1_ref, w2_ref, b2_ref, w3_ref, b3_ref, o_ref):
    """Fused FC head: out( ff2( relu(ff1(x)) ) ), everything resident in VMEM."""
    z = jnp.dot(x_ref[...], w1_ref[...], preferred_element_type=jnp.float32)
    z = jnp.maximum(z + b1_ref[...], 0.0)
    z = jnp.dot(z.astype(w2_ref.dtype), w2_ref[...],
                preferred_element_type=jnp.float32)
    z = z + b2_ref[...]
    z = jnp.dot(z.astype(w3_ref.dtype), w3_ref[...],
                preferred_element_type=jnp.float32)
    o_ref[...] = z + b3_ref[...]


# ---------------------------------------------------------------------------
# Pallas wrappers
# ---------------------------------------------------------------------------
def conv_block_pallas(x, w, b, *, taps, pool):
    """One Conv2dBlock in channels-last layout (see conv_gemm_kernel docstring)."""
    B = x.shape[0]
    if taps == 3:
        T = x.shape[1] - 2
        assert w.shape[0] == 3 * x.shape[2]
    else:
        T = x.shape[1]
        assert w.shape[0] == x.shape[2]
    kw, cout_p = w.shape

    # Cap tn at 256 when B < 2 (keep both v7x TensorCores busy via the channel
    # axis) or for very long sequences (stay inside v7x's 64 MiB VMEM).
    cap = 256 if (B < 2 or T > 4096) else 512
    tn = _pick_tile(cout_p, cap=cap)
    grid = (B, cout_p // tn)

    if pool:
        out_shape = jax.ShapeDtypeStruct((B, 1, cout_p), x.dtype)
        out_spec = pl.BlockSpec((1, 1, tn), lambda bi, j: (bi, 0, j))
    else:
        out_shape = jax.ShapeDtypeStruct((B, T + 2, cout_p), x.dtype)
        out_spec = pl.BlockSpec((1, T + 2, tn), lambda bi, j: (bi, 0, j))

    return pl.pallas_call(
        functools.partial(conv_gemm_kernel, taps=taps, pool=pool),
        out_shape=out_shape,
        grid_spec=pltpu.PrefetchScalarGridSpec(
            num_scalar_prefetch=0,
            grid=grid,
            in_specs=[
                pl.BlockSpec((1, x.shape[1], x.shape[2]), lambda bi, j: (bi, 0, 0)),
                pl.BlockSpec((kw, tn), lambda bi, j: (0, j)),
                pl.BlockSpec((1, tn), lambda bi, j: (0, j)),
            ],
            out_specs=out_spec,
        ),
        compiler_params=pltpu.CompilerParams(
            dimension_semantics=("parallel", "parallel"),
            vmem_limit_bytes=32 * 1024 * 1024),
    )(x, w, b)


def fc_stack_pallas(x, ff1, ff2, out):
    """Fused ff1(+ReLU) -> ff2 -> out head in a single pallas_call."""
    Mp = x.shape[0]
    w1, b1 = ff1["w"], ff1["b"]
    w2, b2 = ff2["w"], ff2["b"]
    w3, b3 = out["w"], out["b"]

    def spec(shape):
        nd = len(shape)
        return pl.BlockSpec(shape, lambda i, _nd=nd: (0,) * _nd)

    return pl.pallas_call(
        fc_stack_kernel,
        out_shape=jax.ShapeDtypeStruct((Mp, w3.shape[1]), jnp.float32),
        grid_spec=pltpu.PrefetchScalarGridSpec(
            num_scalar_prefetch=0,
            grid=(1,),
            in_specs=[spec(x.shape), spec(w1.shape), spec(b1.shape),
                      spec(w2.shape), spec(b2.shape),
                      spec(w3.shape), spec(b3.shape)],
            out_specs=spec((Mp, w3.shape[1])),
        ),
        compiler_params=pltpu.CompilerParams(
            dimension_semantics=("arbitrary",),
            vmem_limit_bytes=32 * 1024 * 1024),
    )(x, w1, b1, w2, b2, w3, b3)


# ---------------------------------------------------------------------------
# Parameters: init + one-time preparation (BN folding, kw trim, padding, bf16)
# ---------------------------------------------------------------------------
def init_params(key, n_mels, n_classes, d_model):
    assert n_mels <= 256
    chans = [n_mels, 128, 128, 256, 512]
    params = {"conv": []}
    for i in range(4):
        cin, cout = chans[i], chans[i + 1]
        key, k1, k2 = jax.random.split(key, 3)
        params["conv"].append(dict(
            w=jax.random.normal(k1, (cout, cin, 3, 3), jnp.float32)
              * (1.0 / jnp.sqrt(cin * 9.0)),
            b=jax.random.normal(k2, (cout,), jnp.float32) * 0.01,
            gamma=jnp.ones((cout,), jnp.float32),
            beta=jnp.zeros((cout,), jnp.float32),
            mean=jnp.zeros((cout,), jnp.float32),
            var=jnp.ones((cout,), jnp.float32),
        ))

    def lin(k, din, dout):
        k1, k2 = jax.random.split(k)
        return dict(
            w=jax.random.normal(k1, (din, dout), jnp.float32) * (1.0 / jnp.sqrt(din)),
            b=jax.random.normal(k2, (dout,), jnp.float32) * 0.01,
        )

    key, k1, k2, k3 = jax.random.split(key, 4)
    params["ff1"] = lin(k1, 512, 1024)           # LinearNorm(512, 1024)
    params["ff2"] = lin(k2, 1024, d_model)       # LinearNorm(1024, d_model)
    params["out"] = lin(k3, d_model, n_classes)  # nn.Linear(d_model, n_classes)
    return params


def prepare_params(params, compute_dtype=jnp.bfloat16, eps=1e-5):
    """One-time weight prep: BN fold, kw trim (W==1), K-stacking, padding, bf16."""
    prepped = {"conv": []}
    for i, p in enumerate(params["conv"]):
        scale = p["gamma"] / jnp.sqrt(p["var"] + eps)
        # W==1 with padding 1 => only kw=1 (middle column) ever touches real data.
        w_mid = p["w"][:, :, :, 1] * scale[:, None, None]        # (Cout, Cin, 3)
        w_eff = jnp.transpose(w_mid, (2, 1, 0))                  # (3, Cin, Cout)
        b_eff = (p["b"] - p["mean"]) * scale + p["beta"]
        _, cin, cout = w_eff.shape
        cout_p = _round_up(cout, 128)
        if i == 0:
            # Layer 0 runs as an im2col GEMM: taps stacked densely along K
            # (3*cin real rows), then K padded to a lane multiple.
            k_real = 3 * cin
            k_p = _round_up(k_real, 128)
            w_stack = w_eff.reshape(k_real, cout)                # [tap0; tap1; tap2]
            w_pad = (jnp.zeros((k_p, cout_p), compute_dtype)
                        .at[:k_real, :cout].set(w_stack.astype(compute_dtype)))
        else:
            # Taps stacked along K with per-tap channel padding, matching the
            # in-kernel lane concat of the 3 row-shifted activation slices.
            cin_p = _round_up(cin, 128)
            w_pad3 = (jnp.zeros((3, cin_p, cout_p), compute_dtype)
                         .at[:, :cin, :cout].set(w_eff.astype(compute_dtype)))
            w_pad = w_pad3.reshape(3 * cin_p, cout_p)
        prepped["conv"].append(dict(
            w=w_pad,
            b=jnp.zeros((1, cout_p), jnp.float32).at[0, :cout].set(b_eff),
        ))
    for name in ("ff1", "ff2", "out"):
        w, b = params[name]["w"], params[name]["b"]
        K, N = w.shape
        Kp, Np = _round_up(K, 128), _round_up(N, 128)
        prepped[name] = dict(
            w=jnp.zeros((Kp, Np), compute_dtype).at[:K, :N].set(w.astype(compute_dtype)),
            b=jnp.zeros((1, Np), jnp.float32).at[0, :N].set(b.astype(jnp.float32)),
        )
    return prepped


# ---------------------------------------------------------------------------
# Forward
# ---------------------------------------------------------------------------
def conv2d_model_forward(prepped, x, *, n_classes):
    # x: (B, T, n_mels) — same as the PyTorch module input.
    B, T, n_mels = x.shape
    cdt = prepped["conv"][0]["w"].dtype
    k0 = prepped["conv"][0]["w"].shape[0]          # im2col K of layer 0

    # Layer-0 im2col: pack the 3 kh taps of the zero-padded input along lanes.
    xp = jnp.pad(x, ((0, 0), (1, 1), (0, 0)))                      # (B, T+2, n_mels)
    xi = jnp.concatenate([xp[:, 0:T], xp[:, 1:T + 1], xp[:, 2:T + 2]], axis=-1)
    h = jnp.zeros((B, T, k0), cdt).at[:, :, :3 * n_mels].set(xi.astype(cdt))

    n_conv = len(prepped["conv"])
    for i, p in enumerate(prepped["conv"]):
        last = i == n_conv - 1
        # Non-pooled conv outputs already carry the next layer's zero halo rows,
        # so there is no jnp.pad between layers.
        h = conv_block_pallas(h, p["w"], p["b"],
                              taps=(1 if i == 0 else 3), pool=last)

    pooled = h.reshape(B, -1)                      # (B, 512) bf16, pool fused above

    # FC stack (single fused kernel). Pad batch rows once to a sublane multiple.
    Mp = _round_up(max(B, 8), 8)
    z = jnp.zeros((Mp, pooled.shape[1]), cdt).at[:B].set(pooled)
    z = fc_stack_pallas(z, prepped["ff1"], prepped["ff2"], prepped["out"])
    return z[:B, :n_classes]


if __name__ == "__main__":
    n_mels, n_classes, d_model = 16, 8, 32
    B, T = 2, 16
    key = jax.random.PRNGKey(0)
    kx, kp = jax.random.split(key)
    x = jax.random.normal(kx, (B, T, n_mels), jnp.float32)
    params = init_params(kp, n_mels, n_classes, d_model)

    # Weight prep (BN fold / kw trim / K-stack / padding / bf16) hoisted out of forward.
    prepped = prepare_params(params)

    fwd = jax.jit(functools.partial(conv2d_model_forward, n_classes=n_classes))
    out = fwd(prepped, x)
    jax.block_until_ready(out)
    assert out.shape == (B, n_classes), out.shape
    assert bool(jnp.isfinite(out).all())
    print("KERNEL_OK")
</pallas_src>

<mosaic_0001>
module attributes {stable_mosaic.version = 11 : i64} {
  func.func @conv_gemm_kernel(%arg0: i32, %arg1: i32, %arg2: memref<1x18x128xbf16, #tpu.memory_space<vmem>>, %arg3: memref<384x256xbf16, #tpu.memory_space<vmem>>, %arg4: memref<1x256xf32, #tpu.memory_space<vmem>>, %arg5: memref<1x18x256xbf16, #tpu.memory_space<vmem>>) attributes {dimension_semantics = [#tpu.dimension_semantics<parallel>, #tpu.dimension_semantics<parallel>], iteration_bounds = array<i64: 2, 1>, scalar_prefetch = 0 : i64, scratch_operands = 0 : i64, tpu.core_type = #tpu.core_type<tc>, window_params = [{transform_indices = @transform_0, window_bounds = array<i64: 1, 18, 128>}, {transform_indices = @transform_1, window_bounds = array<i64: 384, 256>}, {transform_indices = @transform_2, window_bounds = array<i64: 1, 256>}, {transform_indices = @transform_3, window_bounds = array<i64: 1, 18, 256>}]} {
    %c0 = arith.constant 0 : index
    %c0_0 = arith.constant 0 : index
    %c0_1 = arith.constant 0 : index
    %0 = vector.load %arg2[%c0, %c0_0, %c0_1] : memref<1x18x128xbf16, #tpu.memory_space<vmem>>, vector<1x18x128xbf16>
    %1 = vector.shape_cast %0 : vector<1x18x128xbf16> to vector<18x128xbf16>
    %2 = vector.extract_strided_slice %1 {offsets = [0, 0], sizes = [16, 128], strides = [1, 1]} : vector<18x128xbf16> to vector<16x128xbf16>
    %3 = vector.extract_strided_slice %1 {offsets = [1, 0], sizes = [16, 128], strides = [1, 1]} : vector<18x128xbf16> to vector<16x128xbf16>
    %4 = vector.extract_strided_slice %1 {offsets = [2, 0], sizes = [16, 128], strides = [1, 1]} : vector<18x128xbf16> to vector<16x128xbf16>
    %5 = tpu.concatenate %2, %3, %4 in 1 : vector<16x128xbf16>, vector<16x128xbf16>, vector<16x128xbf16> -> vector<16x384xbf16>
    %c0_2 = arith.constant 0 : index
    %c0_3 = arith.constant 0 : index
    %6 = vector.load %arg3[%c0_2, %c0_3] : memref<384x256xbf16, #tpu.memory_space<vmem>>, vector<384x256xbf16>
    %cst = arith.constant dense<0.000000e+00> : vector<16x256xf32>
    %7 = tpu.matmul %5, %6, %cst {dimension_numbers = #tpu.dot_dimension_numbers<[1], [0], [0], [1], [0, 0, 1, 1], [], []>} : vector<16x384xbf16>, vector<384x256xbf16>, vector<16x256xf32> -> vector<16x256xf32>
    %c0_4 = arith.constant 0 : index
    %c0_5 = arith.constant 0 : index
    %8 = vector.load %arg4[%c0_4, %c0_5] : memref<1x256xf32, #tpu.memory_space<vmem>>, vector<1x256xf32>
    %9 = vector.broadcast %8 : vector<1x256xf32> to vector<16x256xf32>
    %10 = arith.addf %7, %9 : vector<16x256xf32>
    %cst_6 = arith.constant 0.000000e+00 : f32
    %11 = vector.broadcast %cst_6 : f32 to vector<16x256xf32>
    %12 = arith.maximumf %10, %11 : vector<16x256xf32>
    %cst_7 = arith.constant 0.000000e+00 : bf16
    %13 = vector.broadcast %cst_7 : bf16 to vector<1x256xbf16>
    %14 = arith.truncf %12 : vector<16x256xf32> to vector<16x256xbf16>
    %15 = tpu.concatenate %13, %14, %13 in 0 : vector<1x256xbf16>, vector<16x256xbf16>, vector<1x256xbf16> -> vector<18x256xbf16>
    %c0_8 = arith.constant 0 : index
    %c0_9 = arith.constant 0 : index
    %c0_10 = arith.constant 0 : index
    %16 = vector.load %arg5[%c0_8, %c0_9, %c0_10] : memref<1x18x256xbf16, #tpu.memory_space<vmem>>, vector<1x18x256xbf16>
    %17 = vector.shape_cast %16 : vector<1x18x256xbf16> to vector<18x256xbf16>
    %18 = vector.shape_cast %15 : vector<18x256xbf16> to vector<1x18x256xbf16>
    tpu.vector_store %arg5[%c0_8, %c0_9, %c0_10], %18 {strides = array<i32>} : memref<1x18x256xbf16, #tpu.memory_space<vmem>>, vector<1x18x256xbf16>,
    return
  }
  func.func @transform_0(%arg0: i32, %arg1: i32) -> (i32, i32, i32) {
    %c0_i32 = arith.constant 0 : i32
    %c0_i32_0 = arith.constant 0 : i32
    %c0_i32_1 = arith.constant 0 : i32
    return %arg0, %c0_i32, %c0_i32_0 : i32, i32, i32
  }
  func.func @transform_1(%arg0: i32, %arg1: i32) -> (i32, i32) {
    %c0_i32 = arith.constant 0 : i32
    %c0_i32_0 = arith.constant 0 : i32
    return %c0_i32, %arg1 : i32, i32
  }
  func.func @transform_2(%arg0: i32, %arg1: i32) -> (i32, i32) {
    %c0_i32 = arith.constant 0 : i32
    %c0_i32_0 = arith.constant 0 : i32
    return %c0_i32, %arg1 : i32, i32
  }
  func.func @transform_3(%arg0: i32, %arg1: i32) -> (i32, i32, i32) {
    %c0_i32 = arith.constant 0 : i32
    %c0_i32_0 = arith.constant 0 : i32
    return %arg0, %c0_i32, %arg1 : i32, i32, i32
  }
}

module attributes {stable_mosaic.version = 11 : i64} {
  func.func @conv_gemm_kernel(%arg0: i32, %arg1: i32, %arg2: memref<1x18x256xbf16, #tpu.memory_space<vmem>>, %arg3: memref<768x512xbf16, #tpu.memory_space<vmem>>, %arg4: memref<1x512xf32, #tpu.memory_space<vmem>>, %arg5: memref<1x1x512xbf16, #tpu.memory_space<vmem>>) attributes {dimension_semantics = [#tpu.dimension_semantics<parallel>, #tpu.dimension_semantics<parallel>], iteration_bounds = array<i64: 2, 1>, scalar_prefetch = 0 : i64, scratch_operands = 0 : i64, tpu.core_type = #tpu.core_type<tc>, window_params = [{transform_indices = @transform_0, window_bounds = array<i64: 1, 18, 256>}, {transform_indices = @transform_1, window_bounds = array<i64: 768, 512>}, {transform_indices = @transform_2, window_bounds = array<i64: 1, 512>}, {transform_indices = @transform_3, window_bounds = array<i64: 1, 1, 512>}]} {
    %c0 = arith.constant 0 : index
    %c0_0 = arith.constant 0 : index
    %c0_1 = arith.constant 0 : index
    %0 = vector.load %arg2[%c0, %c0_0, %c0_1] : memref<1x18x256xbf16, #tpu.memory_space<vmem>>, vector<1x18x256xbf16>
    %1 = vector.shape_cast %0 : vector<1x18x256xbf16> to vector<18x256xbf16>
    %2 = vector.extract_strided_slice %1 {offsets = [0, 0], sizes = [16, 256], strides = [1, 1]} : vector<18x256xbf16> to vector<16x256xbf16>
    %3 = vector.extract_strided_slice %1 {offsets = [1, 0], sizes = [16, 256], strides = [1, 1]} : vector<18x256xbf16> to vector<16x256xbf16>
    %4 = vector.extract_strided_slice %1 {offsets = [2, 0], sizes = [16, 256], strides = [1, 1]} : vector<18x256xbf16> to vector<16x256xbf16>
    %5 = tpu.concatenate %2, %3, %4 in 1 : vector<16x256xbf16>, vector<16x256xbf16>, vector<16x256xbf16> -> vector<16x768xbf16>
    %c0_2 = arith.constant 0 : index
    %c0_3 = arith.constant 0 : index
    %6 = vector.load %arg3[%c0_2, %c0_3] : memref<768x512xbf16, #tpu.memory_space<vmem>>, vector<768x512xbf16>
    %cst = arith.constant dense<0.000000e+00> : vector<16x512xf32>
    %7 = tpu.matmul %5, %6, %cst {dimension_numbers = #tpu.dot_dimension_numbers<[1], [0], [0], [1], [0, 0, 1, 1], [], []>} : vector<16x768xbf16>, vector<768x512xbf16>, vector<16x512xf32> -> vector<16x512xf32>
    %c0_4 = arith.constant 0 : index
    %c0_5 = arith.constant 0 : index
    %8 = vector.load %arg4[%c0_4, %c0_5] : memref<1x512xf32, #tpu.memory_space<vmem>>, vector<1x512xf32>
    %9 = vector.broadcast %8 : vector<1x512xf32> to vector<16x512xf32>
    %10 = arith.addf %7, %9 : vector<16x512xf32>
    %cst_6 = arith.constant 0.000000e+00 : f32
    %11 = vector.broadcast %cst_6 : f32 to vector<16x512xf32>
    %12 = arith.maximumf %10, %11 : vector<16x512xf32>
    %cst_7 = arith.constant dense<0.000000e+00> : vector<512xf32>
    %13 = vector.multi_reduction <add>, %12, %cst_7 [0] : vector<16x512xf32> to vector<512xf32>
    %14 = vector.shape_cast %13 : vector<512xf32> to vector<1x512xf32>
    %cst_8 = arith.constant 1.600000e+01 : f32
    %15 = vector.broadcast %cst_8 : f32 to vector<1x512xf32>
    %16 = arith.divf %14, %15 : vector<1x512xf32>
    %17 = arith.truncf %16 : vector<1x512xf32> to vector<1x512xbf16>
    %c0_9 = arith.constant 0 : index
    %c0_10 = arith.constant 0 : index
    %c0_11 = arith.constant 0 : index
    %18 = vector.load %arg5[%c0_9, %c0_10, %c0_11] : memref<1x1x512xbf16, #tpu.memory_space<vmem>>, vector<1x1x512xbf16>
    %19 = vector.shape_cast %18 : vector<1x1x512xbf16> to vector<1x512xbf16>
    %20 = vector.shape_cast %17 : vector<1x512xbf16> to vector<1x1x512xbf16>
    tpu.vector_store %arg5[%c0_9, %c0_10, %c0_11], %20 {strides = array<i32>} : memref<1x1x512xbf16, #tpu.memory_space<vmem>>, vector<1x1x512xbf16>,
    return
  }
  func.func @transform_0(%arg0: i32, %arg1: i32) -> (i32, i32, i32) {
    %c0_i32 = arith.constant 0 : i32
    %c0_i32_0 = arith.constant 0 : i32
    %c0_i32_1 = arith.constant 0 : i32
    return %arg0, %c0_i32, %c0_i32_0 : i32, i32, i32
  }
  func.func @transform_1(%arg0: i32, %arg1: i32) -> (i32, i32) {
    %c0_i32 = arith.constant 0 : i32
    %c0_i32_0 = arith.constant 0 : i32
    return %c0_i32, %arg1 : i32, i32
  }
  func.func @transform_2(%arg0: i32, %arg1: i32) -> (i32, i32) {
    %c0_i32 = arith.constant 0 : i32
    %c0_i32_0 = arith.constant 0 : i32
    return %c0_i32, %arg1 : i32, i32
  }
  func.func @transform_3(%arg0: i32, %arg1: i32) -> (i32, i32, i32) {
    %c0_i32 = arith.constant 0 : i32
    %c0_i32_0 = arith.constant 0 : i32
    return %arg0, %c0_i32, %arg1 : i32, i32, i32
  }
}

module attributes {stable_mosaic.version = 11 : i64} {
  func.func @conv_gemm_kernel(%arg0: i32, %arg1: i32, %arg2: memref<1x18x128xbf16, #tpu.memory_space<vmem>>, %arg3: memref<384x128xbf16, #tpu.memory_space<vmem>>, %arg4: memref<1x128xf32, #tpu.memory_space<vmem>>, %arg5: memref<1x18x128xbf16, #tpu.memory_space<vmem>>) attributes {dimension_semantics = [#tpu.dimension_semantics<parallel>, #tpu.dimension_semantics<parallel>], iteration_bounds = array<i64: 2, 1>, scalar_prefetch = 0 : i64, scratch_operands = 0 : i64, tpu.core_type = #tpu.core_type<tc>, window_params = [{transform_indices = @transform_0, window_bounds = array<i64: 1, 18, 128>}, {transform_indices = @transform_1, window_bounds = array<i64: 384, 128>}, {transform_indices = @transform_2, window_bounds = array<i64: 1, 128>}, {transform_indices = @transform_3, window_bounds = array<i64: 1, 18, 128>}]} {
    %c0 = arith.constant 0 : index
    %c0_0 = arith.constant 0 : index
    %c0_1 = arith.constant 0 : index
    %0 = vector.load %arg2[%c0, %c0_0, %c0_1] : memref<1x18x128xbf16, #tpu.memory_space<vmem>>, vector<1x18x128xbf16>
    %1 = vector.shape_cast %0 : vector<1x18x128xbf16> to vector<18x128xbf16>
    %2 = vector.extract_strided_slice %1 {offsets = [0, 0], sizes = [16, 128], strides = [1, 1]} : vector<18x128xbf16> to vector<16x128xbf16>
    %3 = vector.extract_strided_slice %1 {offsets = [1, 0], sizes = [16, 128], strides = [1, 1]} : vector<18x128xbf16> to vector<16x128xbf16>
    %4 = vector.extract_strided_slice %1 {offsets = [2, 0], sizes = [16, 128], strides = [1, 1]} : vector<18x128xbf16> to vector<16x128xbf16>
    %5 = tpu.concatenate %2, %3, %4 in 1 : vector<16x128xbf16>, vector<16x128xbf16>, vector<16x128xbf16> -> vector<16x384xbf16>
    %c0_2 = arith.constant 0 : index
    %c0_3 = arith.constant 0 : index
    %6 = vector.load %arg3[%c0_2, %c0_3] : memref<384x128xbf16, #tpu.memory_space<vmem>>, vector<384x128xbf16>
    %cst = arith.constant dense<0.000000e+00> : vector<16x128xf32>
    %7 = tpu.matmul %5, %6, %cst {dimension_numbers = #tpu.dot_dimension_numbers<[1], [0], [0], [1], [0, 0, 1, 1], [], []>} : vector<16x384xbf16>, vector<384x128xbf16>, vector<16x128xf32> -> vector<16x128xf32>
    %c0_4 = arith.constant 0 : index
    %c0_5 = arith.constant 0 : index
    %8 = vector.load %arg4[%c0_4, %c0_5] : memref<1x128xf32, #tpu.memory_space<vmem>>, vector<1x128xf32>
    %9 = vector.broadcast %8 : vector<1x128xf32> to vector<16x128xf32>
    %10 = arith.addf %7, %9 : vector<16x128xf32>
    %cst_6 = arith.constant 0.000000e+00 : f32
    %11 = vector.broadcast %cst_6 : f32 to vector<16x128xf32>
    %12 = arith.maximumf %10, %11 : vector<16x128xf32>
    %cst_7 = arith.constant 0.000000e+00 : bf16
    %13 = vector.broadcast %cst_7 : bf16 to vector<1x128xbf16>
    %14 = arith.truncf %12 : vector<16x128xf32> to vector<16x128xbf16>
    %15 = tpu.concatenate %13, %14, %13 in 0 : vector<1x128xbf16>, vector<16x128xbf16>, vector<1x128xbf16> -> vector<18x128xbf16>
    %c0_8 = arith.constant 0 : index
    %c0_9 = arith.constant 0 : index
    %c0_10 = arith.constant 0 : index
    %16 = vector.load %arg5[%c0_8, %c0_9, %c0_10] : memref<1x18x128xbf16, #tpu.memory_space<vmem>>, vector<1x18x128xbf16>
    %17 = vector.shape_cast %16 : vector<1x18x128xbf16> to vector<18x128xbf16>
    %18 = vector.shape_cast %15 : vector<18x128xbf16> to vector<1x18x128xbf16>
    tpu.vector_store %arg5[%c0_8, %c0_9, %c0_10], %18 {strides = array<i32>} : memref<1x18x128xbf16, #tpu.memory_space<vmem>>, vector<1x18x128xbf16>,
    return
  }
  func.func @transform_0(%arg0: i32, %arg1: i32) -> (i32, i32, i32) {
    %c0_i32 = arith.constant 0 : i32
    %c0_i32_0 = arith.constant 0 : i32
    %c0_i32_1 = arith.constant 0 : i32
    return %arg0, %c0_i32, %c0_i32_0 : i32, i32, i32
  }
  func.func @transform_1(%arg0: i32, %arg1: i32) -> (i32, i32) {
    %c0_i32 = arith.constant 0 : i32
    %c0_i32_0 = arith.constant 0 : i32
    return %c0_i32, %arg1 : i32, i32
  }
  func.func @transform_2(%arg0: i32, %arg1: i32) -> (i32, i32) {
    %c0_i32 = arith.constant 0 : i32
    %c0_i32_0 = arith.constant 0 : i32
    return %c0_i32, %arg1 : i32, i32
  }
  func.func @transform_3(%arg0: i32, %arg1: i32) -> (i32, i32, i32) {
    %c0_i32 = arith.constant 0 : i32
    %c0_i32_0 = arith.constant 0 : i32
    return %arg0, %c0_i32, %arg1 : i32, i32, i32
  }
}

module attributes {stable_mosaic.version = 11 : i64} {
  func.func @conv_gemm_kernel(%arg0: i32, %arg1: i32, %arg2: memref<1x16x128xbf16, #tpu.memory_space<vmem>>, %arg3: memref<128x128xbf16, #tpu.memory_space<vmem>>, %arg4: memref<1x128xf32, #tpu.memory_space<vmem>>, %arg5: memref<1x18x128xbf16, #tpu.memory_space<vmem>>) attributes {dimension_semantics = [#tpu.dimension_semantics<parallel>, #tpu.dimension_semantics<parallel>], iteration_bounds = array<i64: 2, 1>, scalar_prefetch = 0 : i64, scratch_operands = 0 : i64, tpu.core_type = #tpu.core_type<tc>, window_params = [{transform_indices = @transform_0, window_bounds = array<i64: 1, 16, 128>}, {transform_indices = @transform_1, window_bounds = array<i64: 128, 128>}, {transform_indices = @transform_2, window_bounds = array<i64: 1, 128>}, {transform_indices = @transform_3, window_bounds = array<i64: 1, 18, 128>}]} {
    %c0 = arith.constant 0 : index
    %c0_0 = arith.constant 0 : index
    %c0_1 = arith.constant 0 : index
    %0 = vector.load %arg2[%c0, %c0_0, %c0_1] : memref<1x16x128xbf16, #tpu.memory_space<vmem>>, vector<1x16x128xbf16>
    %1 = vector.shape_cast %0 : vector<1x16x128xbf16> to vector<16x128xbf16>
    %c0_2 = arith.constant 0 : index
    %c0_3 = arith.constant 0 : index
    %2 = vector.load %arg3[%c0_2, %c0_3] : memref<128x128xbf16, #tpu.memory_space<vmem>>, vector<128x128xbf16>
    %cst = arith.constant dense<0.000000e+00> : vector<16x128xf32>
    %3 = tpu.matmul %1, %2, %cst {dimension_numbers = #tpu.dot_dimension_numbers<[1], [0], [0], [1], [0, 0, 1, 1], [], []>} : vector<16x128xbf16>, vector<128x128xbf16>, vector<16x128xf32> -> vector<16x128xf32>
    %c0_4 = arith.constant 0 : index
    %c0_5 = arith.constant 0 : index
    %4 = vector.load %arg4[%c0_4, %c0_5] : memref<1x128xf32, #tpu.memory_space<vmem>>, vector<1x128xf32>
    %5 = vector.broadcast %4 : vector<1x128xf32> to vector<16x128xf32>
    %6 = arith.addf %3, %5 : vector<16x128xf32>
    %cst_6 = arith.constant 0.000000e+00 : f32
    %7 = vector.broadcast %cst_6 : f32 to vector<16x128xf32>
    %8 = arith.maximumf %6, %7 : vector<16x128xf32>
    %cst_7 = arith.constant 0.000000e+00 : bf16
    %9 = vector.broadcast %cst_7 : bf16 to vector<1x128xbf16>
    %10 = arith.truncf %8 : vector<16x128xf32> to vector<16x128xbf16>
    %11 = tpu.concatenate %9, %10, %9 in 0 : vector<1x128xbf16>, vector<16x128xbf16>, vector<1x128xbf16> -> vector<18x128xbf16>
    %c0_8 = arith.constant 0 : index
    %c0_9 = arith.constant 0 : index
    %c0_10 = arith.constant 0 : index
    %12 = vector.load %arg5[%c0_8, %c0_9, %c0_10] : memref<1x18x128xbf16, #tpu.memory_space<vmem>>, vector<1x18x128xbf16>
    %13 = vector.shape_cast %12 : vector<1x18x128xbf16> to vector<18x128xbf16>
    %14 = vector.shape_cast %11 : vector<18x128xbf16> to vector<1x18x128xbf16>
    tpu.vector_store %arg5[%c0_8, %c0_9, %c0_10], %14 {strides = array<i32>} : memref<1x18x128xbf16, #tpu.memory_space<vmem>>, vector<1x18x128xbf16>,
    return
  }
  func.func @transform_0(%arg0: i32, %arg1: i32) -> (i32, i32, i32) {
    %c0_i32 = arith.constant 0 : i32
    %c0_i32_0 = arith.constant 0 : i32
    %c0_i32_1 = arith.constant 0 : i32
    return %arg0, %c0_i32, %c0_i32_0 : i32, i32, i32
  }
  func.func @transform_1(%arg0: i32, %arg1: i32) -> (i32, i32) {
    %c0_i32 = arith.constant 0 : i32
    %c0_i32_0 = arith.constant 0 : i32
    return %c0_i32, %arg1 : i32, i32
  }
  func.func @transform_2(%arg0: i32, %arg1: i32) -> (i32, i32) {
    %c0_i32 = arith.constant 0 : i32
    %c0_i32_0 = arith.constant 0 : i32
    return %c0_i32, %arg1 : i32, i32
  }
  func.func @transform_3(%arg0: i32, %arg1: i32) -> (i32, i32, i32) {
    %c0_i32 = arith.constant 0 : i32
    %c0_i32_0 = arith.constant 0 : i32
    return %arg0, %c0_i32, %arg1 : i32, i32, i32
  }
}

module attributes {stable_mosaic.version = 11 : i64} {
  func.func @fc_stack_kernel(%arg0: i32, %arg1: memref<8x512xbf16, #tpu.memory_space<vmem>>, %arg2: memref<512x1024xbf16, #tpu.memory_space<vmem>>, %arg3: memref<1x1024xf32, #tpu.memory_space<vmem>>, %arg4: memref<1024x128xbf16, #tpu.memory_space<vmem>>, %arg5: memref<1x128xf32, #tpu.memory_space<vmem>>, %arg6: memref<128x128xbf16, #tpu.memory_space<vmem>>, %arg7: memref<1x128xf32, #tpu.memory_space<vmem>>, %arg8: memref<8x128xf32, #tpu.memory_space<vmem>>) attributes {dimension_semantics = [#tpu.dimension_semantics<arbitrary>], iteration_bounds = array<i64: 1>, scalar_prefetch = 0 : i64, scratch_operands = 0 : i64, tpu.core_type = #tpu.core_type<tc>, window_params = [{pipeline_mode = #tpu.pipeline_mode<synchronous>, transform_indices = @transform_0, window_bounds = array<i64: 8, 512>}, {pipeline_mode = #tpu.pipeline_mode<synchronous>, transform_indices = @transform_1, window_bounds = array<i64: 512, 1024>}, {pipeline_mode = #tpu.pipeline_mode<synchronous>, transform_indices = @transform_2, window_bounds = array<i64: 1, 1024>}, {pipeline_mode = #tpu.pipeline_mode<synchronous>, transform_indices = @transform_3, window_bounds = array<i64: 1024, 128>}, {pipeline_mode = #tpu.pipeline_mode<synchronous>, transform_indices = @transform_4, window_bounds = array<i64: 1, 128>}, {pipeline_mode = #tpu.pipeline_mode<synchronous>, transform_indices = @transform_5, window_bounds = array<i64: 128, 128>}, {pipeline_mode = #tpu.pipeline_mode<synchronous>, transform_indices = @transform_6, window_bounds = array<i64: 1, 128>}, {pipeline_mode = #tpu.pipeline_mode<synchronous>, transform_indices = @transform_7, window_bounds = array<i64: 8, 128>}]} {
    %c0 = arith.constant 0 : index
    %c0_0 = arith.constant 0 : index
    %0 = vector.load %arg1[%c0, %c0_0] : memref<8x512xbf16, #tpu.memory_space<vmem>>, vector<8x512xbf16>
    %c0_1 = arith.constant 0 : index
    %c0_2 = arith.constant 0 : index
    %1 = vector.load %arg2[%c0_1, %c0_2] : memref<512x1024xbf16, #tpu.memory_space<vmem>>, vector<512x1024xbf16>
    %cst = arith.constant dense<0.000000e+00> : vector<8x1024xf32>
    %2 = tpu.matmul %0, %1, %cst {dimension_numbers = #tpu.dot_dimension_numbers<[1], [0], [0], [1], [0, 0, 1, 1], [], []>} : vector<8x512xbf16>, vector<512x1024xbf16>, vector<8x1024xf32> -> vector<8x1024xf32>
    %c0_3 = arith.constant 0 : index
    %c0_4 = arith.constant 0 : index
    %3 = vector.load %arg3[%c0_3, %c0_4] : memref<1x1024xf32, #tpu.memory_space<vmem>>, vector<1x1024xf32>
    %4 = vector.broadcast %3 : vector<1x1024xf32> to vector<8x1024xf32>
    %5 = arith.addf %2, %4 : vector<8x1024xf32>
    %cst_5 = arith.constant 0.000000e+00 : f32
    %6 = vector.broadcast %cst_5 : f32 to vector<8x1024xf32>
    %7 = arith.maximumf %5, %6 : vector<8x1024xf32>
    %8 = arith.truncf %7 : vector<8x1024xf32> to vector<8x1024xbf16>
    %c0_6 = arith.constant 0 : index
    %c0_7 = arith.constant 0 : index
    %9 = vector.load %arg4[%c0_6, %c0_7] : memref<1024x128xbf16, #tpu.memory_space<vmem>>, vector<1024x128xbf16>
    %cst_8 = arith.constant dense<0.000000e+00> : vector<8x128xf32>
    %10 = tpu.matmul %8, %9, %cst_8 {dimension_numbers = #tpu.dot_dimension_numbers<[1], [0], [0], [1], [0, 0, 1, 1], [], []>} : vector<8x1024xbf16>, vector<1024x128xbf16>, vector<8x128xf32> -> vector<8x128xf32>
    %c0_9 = arith.constant 0 : index
    %c0_10 = arith.constant 0 : index
    %11 = vector.load %arg5[%c0_9, %c0_10] : memref<1x128xf32, #tpu.memory_space<vmem>>, vector<1x128xf32>
    %12 = vector.broadcast %11 : vector<1x128xf32> to vector<8x128xf32>
    %13 = arith.addf %10, %12 : vector<8x128xf32>
    %14 = arith.truncf %13 : vector<8x128xf32> to vector<8x128xbf16>
    %c0_11 = arith.constant 0 : index
    %c0_12 = arith.constant 0 : index
    %15 = vector.load %arg6[%c0_11, %c0_12] : memref<128x128xbf16, #tpu.memory_space<vmem>>, vector<128x128xbf16>
    %cst_13 = arith.constant dense<0.000000e+00> : vector<8x128xf32>
    %16 = tpu.matmul %14, %15, %cst_13 {dimension_numbers = #tpu.dot_dimension_numbers<[1], [0], [0], [1], [0, 0, 1, 1], [], []>} : vector<8x128xbf16>, vector<128x128xbf16>, vector<8x128xf32> -> vector<8x128xf32>
    %c0_14 = arith.constant 0 : index
    %c0_15 = arith.constant 0 : index
    %17 = vector.load %arg7[%c0_14, %c0_15] : memref<1x128xf32, #tpu.memory_space<vmem>>, vector<1x128xf32>
    %18 = vector.broadcast %17 : vector<1x128xf32> to vector<8x128xf32>
    %19 = arith.addf %16, %18 : vector<8x128xf32>
    %c0_16 = arith.constant 0 : index
    %c0_17 = arith.constant 0 : index
    %20 = vector.load %arg8[%c0_16, %c0_17] : memref<8x128xf32, #tpu.memory_space<vmem>>, vector<8x128xf32>
    tpu.vector_store %arg8[%c0_16, %c0_17], %19 {strides = array<i32>} : memref<8x128xf32, #tpu.memory_space<vmem>>, vector<8x128xf32>,
    return
  }
  func.func @transform_0(%arg0: i32) -> (i32, i32) {
    %c0_i32 = arith.constant 0 : i32
    %c0_i32_0 = arith.constant 0 : i32
    %c0_i32_1 = arith.constant 0 : i32
    return %c0_i32, %c0_i32_0 : i32, i32
  }
  func.func @transform_1(%arg0: i32) -> (i32, i32) {
    %c0_i32 = arith.constant 0 : i32
    %c0_i32_0 = arith.constant 0 : i32
    %c0_i32_1 = arith.constant 0 : i32
    return %c0_i32, %c0_i32_0 : i32, i32
  }
  func.func @transform_2(%arg0: i32) -> (i32, i32) {
    %c0_i32 = arith.constant 0 : i32
    %c0_i32_0 = arith.constant 0 : i32
    %c0_i32_1 = arith.constant 0 : i32
    return %c0_i32, %c0_i32_0 : i32, i32
  }
  func.func @transform_3(%arg0: i32) -> (i32, i32) {
    %c0_i32 = arith.constant 0 : i32
    %c0_i32_0 = arith.constant 0 : i32
    %c0_i32_1 = arith.constant 0 : i32
    return %c0_i32, %c0_i32_0 : i32, i32
  }
  func.func @transform_4(%arg0: i32) -> (i32, i32) {
    %c0_i32 = arith.constant 0 : i32
    %c0_i32_0 = arith.constant 0 : i32
    %c0_i32_1 = arith.constant 0 : i32
    return %c0_i32, %c0_i32_0 : i32, i32
  }
  func.func @transform_5(%arg0: i32) -> (i32, i32) {
    %c0_i32 = arith.constant 0 : i32
    %c0_i32_0 = arith.constant 0 : i32
    %c0_i32_1 = arith.constant 0 : i32
    return %c0_i32, %c0_i32_0 : i32, i32
  }
  func.func @transform_6(%arg0: i32) -> (i32, i32) {
    %c0_i32 = arith.constant 0 : i32
    %c0_i32_0 = arith.constant 0 : i32
    %c0_i32_1 = arith.constant 0 : i32
    return %c0_i32, %c0_i32_0 : i32, i32
  }
  func.func @transform_7(%arg0: i32) -> (i32, i32) {
    %c0_i32 = arith.constant 0 : i32
    %c0_i32_0 = arith.constant 0 : i32
    %c0_i32_1 = arith.constant 0 : i32
    return %c0_i32, %c0_i32_0 : i32, i32
  }
}

</mosaic_0001>

<bundles_post_ra>
// kernel: conv2d_model_forward.7
= control target key start
LH: loop header
LB: loop body
LE: loop exit
PB: predicated region body
PF: predicated region fallthrough
CT: control target
= control target key end

     0   :  { %8 = vsyncpa [#allocation3], 0  ;;  %s1191_s12 = smov 0   ;;  %s1193_s13 = smov 0   ;;  %s1248_s0 = inlined_call_operand.vmem [shape: bf16[2,18,128], index: 0, kind: input, shape index: {}]   ;;  %s1249_s1 = inlined_call_operand.hbm [shape: bf16[384,256], index: 1, kind: input, shape index: {}]   ;;  %s1250_s2 = inlined_call_operand.vmem [shape: f32[1,256], index: 2, kind: input, shape index: {}]   ;;  %s1251_s3 = inlined_call_operand.vmem [shape: bf16[2,18,256], index: 3, kind: output, shape index: {}]  }
   0x1   :  { %s1195_s14 = smov 0  }
   0x2 LB: > { %s814_s15 = sadd.s32 4294967295, %s1166_s14   ;;  %s26_s16 = sadd.s32 1, %s1162_s13  ;;  %s1166_s14 = sphi %s1195_s14, %s14_s14   ;;  %s1162_s13 = sphi %s1193_s13, %s1253_s13   ;;  %s1158_s12 = sphi %s1191_s12, %s1252_s12  }
   0x3   : > { %p28_p0 = scmp.ge.s32.totalorder %s26_s16, 2  ;;  %p816_p1 = scmp.ge.s32.totalorder %s1166_s14, 1 }
   0x4   : > { %p137_p2 = scmp.lt.s32.totalorder %s1166_s14, 3  ;;  %p1081_p4 = scmp.eq.s32.totalorder %s814_s15, 0 }
   0x5   : > { %s1255_s16 = smov (%p28_p0, %s26_s16), 0  ;;  %s151_s19 = sshll.u32 %s1249_s1, 4  ;;  %s152_s19 = int_to_ptr.hbm [resolvable:$true] %s151_s19 }
   0x6   : > { %p138_p3 = pnand %p816_p1, %p137_p2  ;;  %s1168_s20 = smov [#allocation2]  }
   0x7   : > { %s153_s21 = sshll.u32 %s1168_s20, 4  ;;  %s1169_s22 = smov 128   ;;  %s154_s21 = int_to_ptr.vmem [resolvable:$true] %s153_s21 }
   0x8   : > { %p1077_p5 = pneg %p138_p3  ;;  %s1170_s23 = smov 8  }
   0x9   : > { %185 = sbr.rel (%p138_p3) target bundleno = 240 (0xf0), region = 32 }
   0xa   : > { %p1078_p6 = pnand %p1081_p4, %p1077_p5 }
   0xc   : > { %1080 = dma.hbm_to_vmem [thread:$0]  (!%p1078_p6), %s152_s19, 6144, %s154_s21, [#allocation3], %s1169_s22, %s1169_s22, %s1170_s23  }
   0xe   : > { %1153 = dma.done.wait (%p1081_p4), [#allocation3], 6144  }
   0xf   : > { %1155 = vsyncadd (%p1081_p4), [#allocation3], 4294961152  ;;  %v886_v0 = vld [vmem:[#allocation2 + $0x70] sm:$0xf]  ;;  %v1038_v1 = vld [vmem:[#allocation2 + $0x74] sm:$0xf0] }
  0x10   : > { %v950_v2 = vld [vmem:[#allocation2 + $0xf0] sm:$0xf]  ;;  %v887_v3 = vor.u32 %v1038_v1, %v886_v0  ;;  %v1054_v4 = vld [vmem:[#allocation2 + $0xf4] sm:$0xf0]  ;;  %v878_v9 = vld [vmem:[#allocation2 + $0x60] sm:$0xf] }
  0x11   : > { %v1014_v5 = vld [vmem:[#allocation2 + $0x170] sm:$0xf]  ;;  %v1070_v6 = vld [vmem:[#allocation2 + $0x174] sm:$0xf0]  ;;  %v951_v7 = vor.u32 %v1054_v4, %v950_v2  ;;  %v1036_v10 = vld [vmem:[#allocation2 + $0x64] sm:$0xf0] }
  0x12   : > { %v1015_v8 = vor.u32 %v1070_v6, %v1014_v5  ;;  %v942_v11 = vld [vmem:[#allocation2 + $0xe0] sm:$0xf]  ;;  %565 = vmatpush.bf16.msra.mxu0 %v887_v3  ;;  %v879_v12 = vor.u32 %v1036_v10, %v878_v9  ;;  %v1052_v13 = vld [vmem:[#allocation2 + $0xe4] sm:$0xf0]  ;;  %v870_v18 = vld [vmem:[#allocation2 + $0x50] sm:$0xf] }
  0x13   : > { %v1006_v14 = vld [vmem:[#allocation2 + $0x160] sm:$0xf]  ;;  %v1068_v15 = vld [vmem:[#allocation2 + $0x164] sm:$0xf0]  ;;  %579 = vmatpush.bf16.msra.mxu1 %v951_v7  ;;  %v943_v16 = vor.u32 %v1052_v13, %v942_v11  ;;  %v1034_v19 = vld [vmem:[#allocation2 + $0x54] sm:$0xf0] }
  0x14   : > { %593 = vmatpush.bf16.msra.mxu2 %v1015_v8  ;;  %v1007_v17 = vor.u32 %v1068_v15, %v1006_v14  ;;  %v934_v20 = vld [vmem:[#allocation2 + $0xd0] sm:$0xf]  ;;  %v1050_v21 = vld [vmem:[#allocation2 + $0xd4] sm:$0xf0]  ;;  %v871_v24 = vor.u32 %v1034_v19, %v870_v18  ;;  %v1037_v25 = vld [vmem:[#allocation2 + $0x74] sm:$0xf] }
  0x15   : > { %v998_v22 = vld [vmem:[#allocation2 + $0x150] sm:$0xf]  ;;  %v1066_v23 = vld [vmem:[#allocation2 + $0x154] sm:$0xf0]  ;;  %v888_v26 = vld [vmem:[#allocation2 + $0x78] sm:$0xf0]  ;;  %v935_v27 = vor.u32 %v1050_v21, %v934_v20 }
  0x16   : > { %566 = vmatpush.bf16.msra.mxu0 %v879_v12  ;;  %p218_p7 = scmp.lt.s32.totalorder %s1158_s12, 1  ;;  %v999_v28 = vor.u32 %v1066_v23, %v998_v22  ;;  %v862_v29 = vld [vmem:[#allocation2 + $0x40] sm:$0xf]  ;;  %v1032_v30 = vld [vmem:[#allocation2 + $0x44] sm:$0xf0]  ;;  %v891_v32 = vor.u32 %v1037_v25, %v888_v26  ;;  %vm266_vm1 = vcmask 1046528  }
  0x17   : > { %580 = vmatpush.bf16.msra.mxu1 %v943_v16  ;;  %v926_v31 = vld [vmem:[#allocation2 + $0xc0] sm:$0xf]  ;;  %v1048_v33 = vld [vmem:[#allocation2 + $0xc4] sm:$0xf0]  ;;  %v1035_v36 = vld [vmem:[#allocation2 + $0x64] sm:$0xf]  ;;  %v863_v38 = vor.u32 %v1032_v30, %v862_v29 }
  0x18   : > { %594 = vmatpush.bf16.msra.mxu2 %v1007_v17  ;;  %v990_v34 = vld [vmem:[#allocation2 + $0x140] sm:$0xf]  ;;  %v1064_v35 = vld [vmem:[#allocation2 + $0x144] sm:$0xf0]  ;;  %607 = vmatpush.bf16.msra.mxu3 %v891_v32  ;;  %v880_v37 = vld [vmem:[#allocation2 + $0x68] sm:$0xf0]  ;;  %v927_v42 = vor.u32 %v1048_v33, %v926_v31 }
  0x19   : > { %v854_v39 = vld [vmem:[#allocation2 + $0x30] sm:$0xf]  ;;  %v1030_v40 = vld [vmem:[#allocation2 + $0x34] sm:$0xf0]  ;;  %v883_v41 = vor.u32 %v1035_v36, %v880_v37  ;;  %s1257_s12 = smov (!%p218_p7, %s1158_s12), 1  ;;  %v991_v43 = vor.u32 %v1064_v35, %v990_v34  ;;  %vm681_vm2 = vcmask 1040384  }
  0x1a   : > { %567 = vmatpush.bf16.msra.mxu0 %v871_v24  ;;  %v918_v44 = vld [vmem:[#allocation2 + $0xb0] sm:$0xf]  ;;  %v1046_v45 = vld [vmem:[#allocation2 + $0xb4] sm:$0xf0]  ;;  %v1033_v46 = vld [vmem:[#allocation2 + $0x54] sm:$0xf]  ;;  %v855_v51 = vor.u32 %v1030_v40, %v854_v39 }
  0x1b   : > { %581 = vmatpush.bf16.msra.mxu1 %v935_v27  ;;  %v982_v47 = vld [vmem:[#allocation2 + $0x130] sm:$0xf]  ;;  %v1062_v48 = vld [vmem:[#allocation2 + $0x134] sm:$0xf0]  ;;  %v872_v49 = vld [vmem:[#allocation2 + $0x58] sm:$0xf0]  ;;  %v919_v54 = vor.u32 %v1046_v45, %v918_v44 }
  0x1c   : > { %595 = vmatpush.bf16.msra.mxu2 %v999_v28  ;;  %608 = vmatpush.bf16.msra.mxu3 %v883_v41  ;;  %v875_v50 = vor.u32 %v1033_v46, %v872_v49  ;;  %v1031_v52 = vld [vmem:[#allocation2 + $0x44] sm:$0xf]  ;;  %v864_v53 = vld [vmem:[#allocation2 + $0x48] sm:$0xf0]  ;;  %s1071_s24 = smul.u32 12, %s1257_s12  ;;  %v983_v55 = vor.u32 %v1062_v48, %v982_v47 }
  0x1d   : > { %v846_v56 = vld [vmem:[#allocation2 + $0x20] sm:$0xf]  ;;  %v1028_v57 = vld [vmem:[#allocation2 + $0x24] sm:$0xf0]  ;;  %v867_v62 = vor.u32 %v1031_v52, %v864_v53  ;;  %v1029_v0 = vld [vmem:[#allocation2 + $0x34] sm:$0xf] }
  0x1e   : > { %568 = vmatpush.bf16.msra.mxu0 %v863_v38  ;;  %v910_v58 = vld [vmem:[#allocation2 + $0xa0] sm:$0xf]  ;;  %v1044_v59 = vld [vmem:[#allocation2 + $0xa4] sm:$0xf0]  ;;  %v847_v63 = vor.u32 %v1028_v57, %v846_v56  ;;  %v856_v1 = vld [vmem:[#allocation2 + $0x38] sm:$0xf0]  ;;  %s222_s27 = scalar_lea.vmem %s1248_s0, %s1071_s24 }
  0x1f   : > { %582 = vmatpush.bf16.msra.mxu1 %v927_v42  ;;  %v974_v60 = vld [vmem:[#allocation2 + $0x120] sm:$0xf]  ;;  %v1060_v61 = vld [vmem:[#allocation2 + $0x124] sm:$0xf0]  ;;  %v911_v2 = vor.u32 %v1044_v59, %v910_v58  ;;  %v838_v4 = vld [vmem:[#allocation2 + $0x10] sm:$0xf]  ;;  %v859_v12 = vor.u32 %v1029_v0, %v856_v1 }
  0x20   : > { %596 = vmatpush.bf16.msra.mxu2 %v991_v43  ;;  %609 = vmatpush.bf16.msra.mxu3 %v875_v50  ;;  %v975_v3 = vor.u32 %v1060_v61, %v974_v60  ;;  %v1026_v5 = vld [vmem:[#allocation2 + $0x14] sm:$0xf0]  ;;  %v902_v6 = vld [vmem:[#allocation2 + $0x90] sm:$0xf]  ;;  %v830_v10 = vld [vmem:[#allocation2] sm:$0xf] }
  0x21   : > { %v1042_v7 = vld [vmem:[#allocation2 + $0x94] sm:$0xf0]  ;;  %v966_v8 = vld [vmem:[#allocation2 + $0x110] sm:$0xf]  ;;  %v1024_v11 = vld [vmem:[#allocation2 + $0x4] sm:$0xf0]  ;;  %v839_v14 = vor.u32 %v1026_v5, %v838_v4 }
  0x22   : > { %569 = vmatpush.bf16.msra.mxu0 %v855_v51  ;;  %v1058_v9 = vld [vmem:[#allocation2 + $0x114] sm:$0xf0]  ;;  %v1225_v13 = vld [vmem:[%s222_s27] sm:$0xff]  ;;  %v848_v16 = vld [vmem:[#allocation2 + $0x28] sm:$0xf0]  ;;  %v903_v18 = vor.u32 %v1042_v7, %v902_v6  ;;  %v831_v33 = vor.u32 %v1024_v11, %v830_v10  ;;  %s1072_s30 = smul.u32 24, %s1257_s12 }
  0x23   : > { %583 = vmatpush.bf16.msra.mxu1 %v919_v54  ;;  %v1027_v15 = vld [vmem:[#allocation2 + $0x24] sm:$0xf]  ;;  %v242_v17 = vld [vmem:[%s222_s27 + $0x8] sm:$0x1]  ;;  %v967_v19 = vor.u32 %v1058_v9, %v966_v8  ;;  %v894_v20 = vld [vmem:[#allocation2 + $0x80] sm:$0xf] }
  0x24   : > { %597 = vmatpush.bf16.msra.mxu2 %v983_v55  ;;  %610 = vmatpush.bf16.msra.mxu3 %v867_v62  ;;  %v1040_v21 = vld [vmem:[#allocation2 + $0x84] sm:$0xf0]  ;;  %v1053_v22 = vld [vmem:[#allocation2 + $0xf4] sm:$0xf]  ;;  %v250_v23 = vunpack.c.l.b16 %v242_v17  ;;  %v952_v24 = vld [vmem:[#allocation2 + $0xf8] sm:$0xf0]  ;;  %v851_v29 = vor.u32 %v1027_v15, %v848_v16  ;;  %s237_s6 = scalar_lea.vmem %s1251_s3, %s1072_s30 }
  0x25   : > { %v1069_v25 = vld [vmem:[#allocation2 + $0x174] sm:$0xf]  ;;  %v1016_v26 = vld [vmem:[#allocation2 + $0x178] sm:$0xf0]  ;;  %v958_v27 = vld [vmem:[#allocation2 + $0x100] sm:$0xf]  ;;  %v895_v34 = vor.u32 %v1040_v21, %v894_v20  ;;  %v955_v37 = vor.u32 %v1053_v22, %v952_v24 }
  0x26   : > { %570 = vmatpush.bf16.msra.mxu0 %v847_v63  ;;  %v1056_v28 = vld [vmem:[#allocation2 + $0x104] sm:$0xf0]  ;;  %v251_v30 = vpack.c.b16 %v250_v23, %v250_v23  ;;  %v254_v31 = vshrl.u32 %v1225_v13, 16  ;;  %v256_v32 = vshll.u32 %v1225_v13, 16  ;;  %v1025_v35 = vld [vmem:[#allocation2 + $0x14] sm:$0xf]  ;;  %v1019_v38 = vor.u32 %v1069_v25, %v1016_v26 }
  0x27   : > { %584 = vmatpush.bf16.msra.mxu1 %v911_v2  ;;  %v840_v36 = vld [vmem:[#allocation2 + $0x18] sm:$0xf0]  ;;  %v1051_v39 = vld [vmem:[#allocation2 + $0xe4] sm:$0xf]  ;;  %v959_v42 = vor.u32 %v1056_v28, %v958_v27  ;;  %v944_v43 = vld [vmem:[#allocation2 + $0xe8] sm:$0xf0] }
  0x28   : > { %598 = vmatpush.bf16.msra.mxu2 %v975_v3  ;;  %611 = vmatpush.bf16.msra.mxu3 %v859_v12  ;;  %v258_v40 = vrot.slane %v256_v32, 1  ;;  %v261_v41 = vshll.u32 %v251_v30, 16  ;;  %v267_v44 = vrot.slane %v1225_v13, 1  ;;  %v268_v45 = vrot.slane %v251_v30, 1  ;;  %v1067_v46 = vld [vmem:[#allocation2 + $0x164] sm:$0xf] }
  0x29   : > { %vm252_vm0 = vsmask.f32 7424  ;;  %v1008_v47 = vld [vmem:[#allocation2 + $0x168] sm:$0xf0]  ;;  %v843_v48 = vor.u32 %v1025_v35, %v840_v36  ;;  %v1023_v51 = vld [vmem:[#allocation2 + $0x4] sm:$0xf]  ;;  %v947_v53 = vor.u32 %v1051_v39, %v944_v43 }
  0x2a   : > { %571 = vmatpush.bf16.msra.mxu0 %v839_v14  ;;  %v259_v49 = vor.u32 %v258_v40, %v254_v31  ;;  %v263_v50 = vrot.slane %v261_v41, 1  ;;  %v832_v52 = vld [vmem:[#allocation2 + $0x8] sm:$0xf0]  ;;  %v1011_v55 = vor.u32 %v1067_v46, %v1008_v47  ;;  %v269_v56 = vsel %vm266_vm1, %v267_v44, %v268_v45  ;;  %v1049_v57 = vld [vmem:[#allocation2 + $0xd4] sm:$0xf] }
  0x2b   : > { %585 = vmatpush.bf16.msra.mxu1 %v903_v18  ;;  %v936_v58 = vld [vmem:[#allocation2 + $0xd8] sm:$0xf0]  ;;  %v1065_v59 = vld [vmem:[#allocation2 + $0x154] sm:$0xf]  ;;  %v835_v61 = vor.u32 %v1023_v51, %v832_v52  ;;  %v1047_v0 = vld [vmem:[#allocation2 + $0xc4] sm:$0xf] }
  0x2c   : > { %599 = vmatpush.bf16.msra.mxu2 %v967_v19  ;;  %612 = vmatpush.bf16.msra.mxu3 %v851_v29  ;;  %v264_v54 = vsel %vm252_vm0, %v259_v49, %v263_v50  ;;  %v1000_v60 = vld [vmem:[#allocation2 + $0x158] sm:$0xf0]  ;;  %v939_v62 = vor.u32 %v1049_v57, %v936_v58  ;;  %v928_v1 = vld [vmem:[#allocation2 + $0xc8] sm:$0xf0]  ;;  %v1063_v2 = vld [vmem:[#allocation2 + $0x144] sm:$0xf] }
  0x2d   : > { %v1003_v63 = vor.u32 %v1065_v59, %v1000_v60  ;;  %v992_v3 = vld [vmem:[#allocation2 + $0x148] sm:$0xf0]  ;;  %v931_v4 = vor.u32 %v1047_v0, %v928_v1  ;;  %v1045_v6 = vld [vmem:[#allocation2 + $0xb4] sm:$0xf]  ;;  %v920_v7 = vld [vmem:[#allocation2 + $0xb8] sm:$0xf0] }
  0x2e   : > { %572 = vmatpush.bf16.msra.mxu0 %v831_v33  ;;  %v995_v5 = vor.u32 %v1063_v2, %v992_v3  ;;  %v1061_v8 = vld [vmem:[#allocation2 + $0x134] sm:$0xf]  ;;  %v984_v9 = vld [vmem:[#allocation2 + $0x138] sm:$0xf0]  ;;  %v923_v10 = vor.u32 %v1045_v6, %v920_v7  ;;  %v1043_v12 = vld [vmem:[#allocation2 + $0xa4] sm:$0xf] }
  0x2f   : > { %586 = vmatpush.bf16.msra.mxu1 %v895_v34  ;;  %v987_v11 = vor.u32 %v1061_v8, %v984_v9  ;;  %v912_v14 = vld [vmem:[#allocation2 + $0xa8] sm:$0xf0]  ;;  %v1059_v15 = vld [vmem:[#allocation2 + $0x124] sm:$0xf]  ;;  %v1041_v19 = vld [vmem:[#allocation2 + $0x94] sm:$0xf] }
  0x30   : > { %600 = vmatpush.bf16.msra.mxu2 %v959_v42  ;;  %613 = vmatpush.bf16.msra.mxu3 %v843_v48  ;;  %v976_v16 = vld [vmem:[#allocation2 + $0x128] sm:$0xf0]  ;;  %v915_v17 = vor.u32 %v1043_v12, %v912_v14  ;;  %v904_v20 = vld [vmem:[#allocation2 + $0x98] sm:$0xf0]  ;;  %v1057_v21 = vld [vmem:[#allocation2 + $0x114] sm:$0xf] }
  0x31   : > { %573 = vmatmul.bf16.vlgmr.msra.gmra.mxu0 %v1225_v13  ;;  %v979_v18 = vor.u32 %v1059_v15, %v976_v16  ;;  %v907_v22 = vor.u32 %v1041_v19, %v904_v20  ;;  %v1039_v24 = vld [vmem:[#allocation2 + $0x84] sm:$0xf]  ;;  %v896_v25 = vld [vmem:[#allocation2 + $0x88] sm:$0xf0]  ;;  %v319_v32 = vld [vmem:[%s1250_s2] sm:$0x3] }
  0x32   : > { %621 = vmatpush.bf16.msrb.mxu0 %v955_v37  ;;  %587 = vmatmul.bf16.vlgmr.msra.gmra.mxu1 %v264_v54  ;;  %v1055_v26 = vld [vmem:[#allocation2 + $0x104] sm:$0xf]  ;;  %v960_v27 = vld [vmem:[#allocation2 + $0x108] sm:$0xf0]  ;;  %v899_v28 = vor.u32 %v1039_v24, %v896_v25  ;;  %v322_v35 = vperm.slane %v319_v32, 1  ;;  %v321_v37 = vperm.slane %v319_v32, 0 }
  0x33   : > { %635 = vmatpush.bf16.msrb.mxu1 %v1019_v38  ;;  %601 = vmatmul.bf16.vlgmr.msra.gmra.mxu2 %v269_v56  ;;  %v963_v29 = vor.u32 %v1055_v26, %v960_v27  ;;  %vm682_vm3 = vsmask.f32 256 }
  0x34   : > { %614 = vmatpush.bf16.msra.mxu3 %v835_v61  ;;  %vm683_vm4 = vmand %vm681_vm2, %vm682_vm3 }
  0x36   : > { %622 = vmatpush.bf16.msrb.mxu0 %v947_v53 }
  0x37   : > { %636 = vmatpush.bf16.msrb.mxu1 %v1011_v55  ;;  %615 = vmatmul.bf16.vlgmr.msra.gmra.mxu3 %v1225_v13  ;;  %v968_v13 = vld [vmem:[#allocation2 + $0x118] sm:$0xf0] }
  0x38   : > { %v971_v23 = vor.u32 %v1057_v21, %v968_v13 }
  0x3a   : > { %623 = vmatpush.bf16.msrb.mxu0 %v939_v62 }
  0x3b   : > { %637 = vmatpush.bf16.msrb.mxu1 %v1003_v63 }
  0x3e   : > { %624 = vmatpush.bf16.msrb.mxu0 %v931_v4 }
  0x3f   : > { %638 = vmatpush.bf16.msrb.mxu1 %v995_v5 }
  0x42   : > { %625 = vmatpush.bf16.msrb.mxu0 %v923_v10 }
  0x43   : > { %639 = vmatpush.bf16.msrb.mxu1 %v987_v11 }
  0x46   : > { %626 = vmatpush.bf16.msrb.mxu0 %v915_v17 }
  0x47   : > { %640 = vmatpush.bf16.msrb.mxu1 %v979_v18 }
  0x4a   : > { %627 = vmatpush.bf16.msrb.mxu0 %v907_v22 }
  0x4b   : > { %641 = vmatpush.bf16.msrb.mxu1 %v971_v23 }
  0x4e   : > { %628 = vmatpush.bf16.msrb.mxu0 %v899_v28 }
  0x4f   : > { %642 = vmatpush.bf16.msrb.mxu1 %v963_v29 }
  0x51   : > { %629 = vmatmul.bf16.vlgmr.msrb.gmra.mxu0 %v264_v54 }
  0x52   : > { %643 = vmatmul.bf16.vlgmr.msrb.gmra.mxu1 %v269_v56 }
  0xae   : > { %v574_v30 = vpop.f32.mrf.mxu0 }
  0xaf   : > { %v588_v31 = vpop.f32.mrf.mxu1  ;;  %v575_v40 = vadd.f32 %v574_v30, %v321_v37 }
  0xb1   : > { %v589_v45 = vadd.f32 %v588_v31, %v575_v40 }
  0xb6   : > { %v576_v33 = vpop.f32.mrf.mxu0  ;;  %v602_v38 = vpop.f32.mrf.mxu2 }
  0xb7   : > { %v590_v34 = vpop.f32.mrf.mxu1  ;;  %v577_v42 = vadd.f32 %v576_v33, %v321_v37  ;;  %v603_v50 = vadd.f32 %v602_v38, %v589_v45 }
  0xb9   : > { %v591_v47 = vadd.f32 %v590_v34, %v577_v42  ;;  %v649_v57 = vmax.f32 %v603_v50, 0.0 }
  0xba   : > { %v616_v36 = vpop.f32.mrf.mxu3 }
  0xbb   : > { %v617_v39 = vadd.f32 %v616_v36, %v322_v35 }
  0xbe   : > { %v604_v49 = vpop.f32.mrf.mxu2 }
  0xbf   : > { %v605_v53 = vadd.f32 %v604_v49, %v591_v47 }
  0xc1   : > { %v651_v59 = vmax.f32 %v605_v53, 0.0 }
  0xc2   : > { %v618_v46 = vpop.f32.mrf.mxu3 }
  0xc3   : > { %v619_v51 = vadd.f32 %v618_v46, %v322_v35 }
  0xce   : > { %v630_v41 = vpop.f32.mrf.mxu0 }
  0xcf   : > { %v631_v43 = vadd.f32 %v630_v41, %v617_v39  ;;  %v644_v44 = vpop.f32.mrf.mxu1 }
  0xd1   : > { %v645_v48 = vadd.f32 %v644_v44, %v631_v43 }
  0xd3   : > { %v650_v54 = vmax.f32 %v645_v48, 0.0 }
  0xd5   : > { %v653_v60 = vpack.c.bf16 %v650_v54, %v649_v57 }
  0xd6   : > { %v632_v52 = vpop.f32.mrf.mxu0 }
  0xd7   : > { %v633_v55 = vadd.f32 %v632_v52, %v619_v51  ;;  %v646_v56 = vpop.f32.mrf.mxu1  ;;  %v657_v63 = vunpack.c.l.b16 %v653_v60  ;;  %v658_v0 = vunpack.c.h.b16 %v653_v60 }
  0xd9   : > { %v647_v58 = vadd.f32 %v646_v56, %v633_v55 }
  0xdb   : > { %v652_v61 = vmax.f32 %v647_v58, 0.0 }
  0xdd   : > { %v654_v62 = vpack.c.bf16 %v652_v61, %v651_v59 }
  0xdf   : > { %v659_v1 = vunpack.c.l.b16 %v654_v62  ;;  %v660_v2 = vunpack.c.h.b16 %v654_v62 }
  0xe1   : > { %v661_v3 = vpack.c.b16 %v659_v1, %v657_v63  ;;  %v662_v4 = vpack.c.b16 %v660_v2, %v658_v0 }
  0xe3   : > { %v664_v5 = vshrl.u32 %v661_v3, 16  ;;  %v671_v6 = vshrl.u32 %v662_v4, 16  ;;  %v667_v8 = vshll.u32 %v661_v3, 16  ;;  %v674_v10 = vshll.u32 %v662_v4, 16 }
  0xe5   : > { %v666_v7 = vrot.slane %v664_v5, 7  ;;  %v673_v9 = vrot.slane %v671_v6, 7 }
  0xe7   : > { %v669_v11 = vor.u32 %v667_v8, %v666_v7  ;;  %v676_v12 = vor.u32 %v674_v10, %v673_v9  ;;  %v686_v14 = vsel %vm683_vm4, %v666_v7, 0  ;;  %v687_v15 = vsel %vm683_vm4, %v673_v9, 0 }
  0xe8   : > { %v696_v16 = vunpack.c.l.b16 %v686_v14  ;;  %v697_v17 = vunpack.c.l.b16 %v687_v15 }
  0xe9   : > { %v684_v18 = vsel %vm683_vm4, 0, %v669_v11  ;;  %v685_v19 = vsel %vm683_vm4, 0, %v676_v12 }
  0xea   : > { %v692_v20 = vunpack.c.l.b16 %v684_v18  ;;  %v693_v21 = vunpack.c.l.b16 %v685_v19  ;;  %v694_v13 = vunpack.c.h.b16 %v684_v18  ;;  %v695_v22 = vunpack.c.h.b16 %v685_v19 }
  0xeb   : > { %v700_v23 = vpack.c.b16 %v697_v17, %v696_v16 }
  0xec   : > { %v698_v24 = vpack.c.b16 %v693_v21, %v692_v20  ;;  %v699_v25 = vpack.c.b16 %v695_v22, %v694_v13 }
  0xed   : > { %706 = vst [vmem:[%s237_s6 + $0x10] sm:$0x11] %v700_v23 }
  0xee   : > { %704 = vst [vmem:[%s237_s6] sm:$0xff] %v698_v24 }
  0xef   : > { %705 = vst [vmem:[%s237_s6 + $0x8] sm:$0xff] %v699_v25 }
  0xf0 PF: > { %s14_s14 = sadd.s32 1, %s1166_s14   ;;  %s1252_s12 = smov %s1162_s13 }
  0xf1   : > { %p11_p8 = scmp.ge.s32.totalorder %s14_s14, 4   ;;  %s1253_s13 = smov %s1255_s16 }
  0xf3   :  { %13 = sbr.rel (!%p11_p8) target bundleno = 2 (0x2), region = 71 }
  0xf8   :  { %737 = vsyncpa [#allocation3], 1 }
  0xf9   :  { %739 = vsyncpa [#allocation3 + $0x1], 1 }

// kernel: conv2d_model_forward.6
= control target key start
LH: loop header
LB: loop body
LE: loop exit
PB: predicated region body
PF: predicated region fallthrough
CT: control target
= control target key end

     0   :  { %8 = vsyncpa [#allocation3], 0  ;;  %s897_s12 = smov 0   ;;  %s899_s13 = smov 0   ;;  %s944_s0 = inlined_call_operand.vmem [shape: bf16[2,18,128], index: 0, kind: input, shape index: {}]   ;;  %s945_s1 = inlined_call_operand.hbm [shape: bf16[384,128], index: 1, kind: input, shape index: {}]   ;;  %s946_s2 = inlined_call_operand.vmem [shape: f32[1,128], index: 2, kind: input, shape index: {}]   ;;  %s947_s3 = inlined_call_operand.vmem [shape: bf16[2,18,128], index: 3, kind: output, shape index: {}]  }
   0x1   :  { %s901_s14 = smov 0  }
   0x2 LB: > { %s640_s15 = sadd.s32 4294967295, %s872_s14   ;;  %s26_s16 = sadd.s32 1, %s868_s13  ;;  %s872_s14 = sphi %s901_s14, %s14_s14   ;;  %s868_s13 = sphi %s899_s13, %s949_s13   ;;  %s864_s12 = sphi %s897_s12, %s948_s12  }
   0x3   : > { %p28_p0 = scmp.ge.s32.totalorder %s26_s16, 2  ;;  %p642_p1 = scmp.ge.s32.totalorder %s872_s14, 1 }
   0x4   : > { %p137_p2 = scmp.lt.s32.totalorder %s872_s14, 3  ;;  %p786_p4 = scmp.eq.s32.totalorder %s640_s15, 0 }
   0x5   : > { %s951_s16 = smov (%p28_p0, %s26_s16), 0  ;;  %s150_s19 = sshll.u32 %s945_s1, 4  ;;  %s151_s19 = int_to_ptr.hbm [resolvable:$true] %s150_s19 }
   0x6   : > { %p138_p3 = pnand %p642_p1, %p137_p2  ;;  %s874_s20 = smov [#allocation2]  }
   0x7   : > { %s152_s21 = sshll.u32 %s874_s20, 4  ;;  %s875_s22 = smov 64   ;;  %s153_s21 = int_to_ptr.vmem [resolvable:$true] %s152_s21 }
   0x8   : > { %p782_p5 = pneg %p138_p3  ;;  %s876_s23 = smov 4  }
   0x9   : > { %182 = sbr.rel (%p138_p3) target bundleno = 212 (0xd4), region = 32 }
   0xa   : > { %p783_p6 = pnand %p786_p4, %p782_p5 }
   0xc   : > { %785 = dma.hbm_to_vmem [thread:$0]  (!%p783_p6), %s151_s19, 3072, %s153_s21, [#allocation3], %s875_s22, %s875_s22, %s876_s23  }
   0xe   : > { %859 = dma.done.wait (%p786_p4), [#allocation3], 3072  }
   0xf   : > { %861 = vsyncadd (%p786_p4), [#allocation3], 4294964224  ;;  %p213_p7 = scmp.lt.s32.totalorder %s864_s12, 1  ;;  %v760_v0 = vld [vmem:[#allocation2 + $0x38] sm:$0xff]  ;;  %v759_v3 = vld [vmem:[#allocation2 + $0x30] sm:$0xff]  ;;  %vm256_vm1 = vcmask 1046528  }
  0x10   : > { %v768_v1 = vld [vmem:[#allocation2 + $0x78] sm:$0xff]  ;;  %457 = vmatpush.bf16.msra.mxu0 %v760_v0  ;;  %v767_v4 = vld [vmem:[#allocation2 + $0x70] sm:$0xff]  ;;  %v758_v6 = vld [vmem:[#allocation2 + $0x28] sm:$0xff]  ;;  %vm242_vm0 = vsmask.f32 7424  ;;  %vm517_vm2 = vcmask 1040384  }
  0x11   : > { %v776_v2 = vld [vmem:[#allocation2 + $0xb8] sm:$0xff]  ;;  %s953_s12 = smov (!%p213_p7, %s864_s12), 1  ;;  %471 = vmatpush.bf16.msra.mxu1 %v768_v1  ;;  %v775_v5 = vld [vmem:[#allocation2 + $0xb0] sm:$0xff]  ;;  %v766_v7 = vld [vmem:[#allocation2 + $0x68] sm:$0xff]  ;;  %vm518_vm3 = vsmask.f32 256 }
  0x12   : > { %485 = vmatpush.bf16.msra.mxu2 %v776_v2  ;;  %s777_s24 = smul.u32 12, %s953_s12  ;;  %v774_v8 = vld [vmem:[#allocation2 + $0xa8] sm:$0xff]  ;;  %v757_v9 = vld [vmem:[#allocation2 + $0x20] sm:$0xff]  ;;  %v756_v13 = vld [vmem:[#allocation2 + $0x18] sm:$0xff] }
  0x13   : > { %v765_v10 = vld [vmem:[#allocation2 + $0x60] sm:$0xff]  ;;  %v764_v14 = vld [vmem:[#allocation2 + $0x58] sm:$0xff]  ;;  %v755_v18 = vld [vmem:[#allocation2 + $0x10] sm:$0xff] }
  0x14   : > { %458 = vmatpush.bf16.msra.mxu0 %v759_v3  ;;  %s217_s27 = scalar_lea.vmem %s944_s0, %s777_s24  ;;  %v773_v11 = vld [vmem:[#allocation2 + $0xa0] sm:$0xff]  ;;  %v772_v17 = vld [vmem:[#allocation2 + $0x98] sm:$0xff]  ;;  %v763_v19 = vld [vmem:[#allocation2 + $0x50] sm:$0xff]  ;;  %s228_s5 = scalar_lea.vmem %s947_s3, %s777_s24 }
  0x15   : > { %472 = vmatpush.bf16.msra.mxu1 %v767_v4  ;;  %v232_v12 = vld [vmem:[%s217_s27 + $0x8] sm:$0x1]  ;;  %v752_v15 = vld [vmem:[%s217_s27] sm:$0xff]  ;;  %v771_v22 = vld [vmem:[#allocation2 + $0x90] sm:$0xff] }
  0x16   : > { %486 = vmatpush.bf16.msra.mxu2 %v775_v5  ;;  %v240_v16 = vunpack.c.l.b16 %v232_v12  ;;  %v246_v21 = vshll.u32 %v752_v15, 16  ;;  %v754_v23 = vld [vmem:[#allocation2 + $0x8] sm:$0xff]  ;;  %v244_v25 = vshrl.u32 %v752_v15, 16  ;;  %v753_v29 = vld [vmem:[#allocation2] sm:$0xff]  ;;  %v257_v34 = vrot.slane %v752_v15, 1  ;;  %vm519_vm4 = vmand %vm517_vm2, %vm518_vm3 }
  0x17   : > { %v762_v24 = vld [vmem:[#allocation2 + $0x48] sm:$0xff]  ;;  %v761_v30 = vld [vmem:[#allocation2 + $0x40] sm:$0xff] }
  0x18   : > { %459 = vmatpush.bf16.msra.mxu0 %v758_v6  ;;  %v241_v20 = vpack.c.b16 %v240_v16, %v240_v16  ;;  %v248_v26 = vrot.slane %v246_v21, 1  ;;  %v770_v28 = vld [vmem:[#allocation2 + $0x88] sm:$0xff]  ;;  %v769_v33 = vld [vmem:[#allocation2 + $0x80] sm:$0xff] }
  0x19   : > { %473 = vmatpush.bf16.msra.mxu1 %v766_v7  ;;  %v815_v38 = vld [vmem:[%s946_s2] ss:$0 sm:$0xff] }
  0x1a   : > { %487 = vmatpush.bf16.msra.mxu2 %v774_v8  ;;  %v251_v27 = vshll.u32 %v241_v20, 16  ;;  %v249_v31 = vor.u32 %v248_v26, %v244_v25  ;;  %v258_v35 = vrot.slane %v241_v20, 1 }
  0x1c   : > { %460 = vmatpush.bf16.msra.mxu0 %v757_v9  ;;  %v253_v32 = vrot.slane %v251_v27, 1  ;;  %v259_v37 = vsel %vm256_vm1, %v257_v34, %v258_v35 }
  0x1d   : > { %474 = vmatpush.bf16.msra.mxu1 %v765_v10 }
  0x1e   : > { %488 = vmatpush.bf16.msra.mxu2 %v773_v11  ;;  %v254_v36 = vsel %vm242_vm0, %v249_v31, %v253_v32 }
  0x20   : > { %461 = vmatpush.bf16.msra.mxu0 %v756_v13 }
  0x21   : > { %475 = vmatpush.bf16.msra.mxu1 %v764_v14 }
  0x22   : > { %489 = vmatpush.bf16.msra.mxu2 %v772_v17 }
  0x24   : > { %462 = vmatpush.bf16.msra.mxu0 %v755_v18 }
  0x25   : > { %476 = vmatpush.bf16.msra.mxu1 %v763_v19 }
  0x26   : > { %490 = vmatpush.bf16.msra.mxu2 %v771_v22 }
  0x28   : > { %463 = vmatpush.bf16.msra.mxu0 %v754_v23 }
  0x29   : > { %477 = vmatpush.bf16.msra.mxu1 %v762_v24 }
  0x2a   : > { %491 = vmatpush.bf16.msra.mxu2 %v770_v28 }
  0x2c   : > { %464 = vmatpush.bf16.msra.mxu0 %v753_v29 }
  0x2d   : > { %478 = vmatpush.bf16.msra.mxu1 %v761_v30 }
  0x2e   : > { %492 = vmatpush.bf16.msra.mxu2 %v769_v33 }
  0x2f   : > { %465 = vmatmul.bf16.vlgmr.msra.gmra.mxu0 %v752_v15 }
  0x30   : > { %479 = vmatmul.bf16.vlgmr.msra.gmra.mxu1 %v254_v36 }
  0x31   : > { %493 = vmatmul.bf16.vlgmr.msra.gmra.mxu2 %v259_v37 }
  0xac   : > { %v466_v39 = vpop.f32.mrf.mxu0 }
  0xad   : > { %v467_v40 = vadd.f32 %v815_v38, %v466_v39  ;;  %v480_v41 = vpop.f32.mrf.mxu1 }
  0xaf   : > { %v481_v42 = vadd.f32 %v480_v41, %v467_v40 }
  0xb4   : > { %v494_v43 = vpop.f32.mrf.mxu2  ;;  %v468_v44 = vpop.f32.mrf.mxu0 }
  0xb5   : > { %v495_v45 = vadd.f32 %v494_v43, %v481_v42  ;;  %v469_v46 = vadd.f32 %v815_v38, %v468_v44  ;;  %v482_v47 = vpop.f32.mrf.mxu1 }
  0xb7   : > { %v499_v48 = vmax.f32 %v495_v45, 0.0  ;;  %v483_v49 = vadd.f32 %v482_v47, %v469_v46 }
  0xb9   : > { %v501_v52 = vpack.c.bf16 %v499_v48, %v499_v48 }
  0xbb   : > { %v505_v55 = vunpack.c.l.b16 %v501_v52 }
  0xbc   : > { %v496_v50 = vpop.f32.mrf.mxu2 }
  0xbd   : > { %v497_v51 = vadd.f32 %v496_v50, %v483_v49 }
  0xbf   : > { %v500_v53 = vmax.f32 %v497_v51, 0.0 }
  0xc1   : > { %v502_v54 = vpack.c.bf16 %v500_v53, %v500_v53 }
  0xc3   : > { %v506_v56 = vunpack.c.l.b16 %v502_v54 }
  0xc5   : > { %v507_v57 = vpack.c.b16 %v506_v56, %v505_v55 }
  0xc7   : > { %v509_v58 = vshrl.u32 %v507_v57, 16  ;;  %v512_v60 = vshll.u32 %v507_v57, 16 }
  0xc9   : > { %v511_v59 = vrot.slane %v509_v58, 7 }
  0xcb   : > { %v514_v61 = vor.u32 %v512_v60, %v511_v59  ;;  %v521_v62 = vsel %vm519_vm4, %v511_v59, 0 }
  0xcc   : > { %v526_v63 = vunpack.c.l.b16 %v521_v62 }
  0xcd   : > { %v520_v0 = vsel %vm519_vm4, 0, %v514_v61 }
  0xce   : > { %v524_v1 = vunpack.c.l.b16 %v520_v0  ;;  %v525_v2 = vunpack.c.h.b16 %v520_v0  ;;  %v529_v3 = vpack.c.b16 %v526_v63, %v526_v63 }
  0xd0   : > { %v527_v4 = vpack.c.b16 %v524_v1, %v524_v1  ;;  %v528_v5 = vpack.c.b16 %v525_v2, %v525_v2  ;;  %535 = vst [vmem:[%s228_s5 + $0x8] sm:$0x1] %v529_v3 }
  0xd2   : > { %533 = vst [vmem:[%s228_s5] sm:$0xf] %v527_v4 }
  0xd3   : > { %534 = vst [vmem:[%s228_s5 + $0x4] sm:$0xf] %v528_v5 }
  0xd4 PF: > { %s14_s14 = sadd.s32 1, %s872_s14   ;;  %s948_s12 = smov %s868_s13 }
  0xd5   : > { %p11_p8 = scmp.ge.s32.totalorder %s14_s14, 4   ;;  %s949_s13 = smov %s951_s16 }
  0xd7   :  { %13 = sbr.rel (!%p11_p8) target bundleno = 2 (0x2), region = 71 }
  0xdc   :  { %563 = vsyncpa [#allocation3], 1 }
  0xdd   :  { %565 = vsyncpa [#allocation3 + $0x1], 1 }

// kernel: conv2d_model_forward.5
= control target key start
LH: loop header
LB: loop body
LE: loop exit
PB: predicated region body
PF: predicated region fallthrough
CT: control target
= control target key end

     0   :  { %s583_s12 = smov 0   ;;  %s585_s13 = smov 0   ;;  %s647_s0 = inlined_call_operand.vmem [shape: bf16[2,16,128], index: 0, kind: input, shape index: {}]   ;;  %s648_s1 = inlined_call_operand.vmem [shape: bf16[128,128], index: 1, kind: input, shape index: {}]   ;;  %s649_s2 = inlined_call_operand.vmem [shape: f32[1,128], index: 2, kind: input, shape index: {}]   ;;  %s650_s3 = inlined_call_operand.vmem [shape: bf16[2,18,128], index: 3, kind: output, shape index: {}]  }
   0x1   :  { %s587_s14 = smov 0  }
   0x2 LB: > { %s25_s15 = sadd.s32 1, %s557_s13  ;;  %p461_p0 = scmp.ge.s32.totalorder %s561_s14, 1  ;;  %s561_s14 = sphi %s587_s14, %s13_s14   ;;  %s557_s13 = sphi %s585_s13, %s652_s13   ;;  %s553_s12 = sphi %s583_s12, %s651_s12  }
   0x3   : > { %p27_p1 = scmp.ge.s32.totalorder %s25_s15, 2  ;;  %p168_p2 = scmp.lt.s32.totalorder %s561_s14, 3 }
   0x5   : > { %s654_s15 = smov (%p27_p1, %s25_s15), 0  ;;  %p169_p3 = pnand %p461_p0, %p168_p2 }
   0x6   : > { %p202_p4 = scmp.lt.s32.totalorder (!%p169_p3), %s553_s12, 1 }
   0x7   : > { %172 = sbr.rel (%p169_p3) target bundleno = 201 (0xc9), region = 32 }
   0xc   : > { %v512_v0 = vld [vmem:[%s648_s1 + $0x38] sm:$0xff]  ;;  %v511_v1 = vld [vmem:[%s648_s1 + $0x30] sm:$0xff]  ;;  %v510_v2 = vld [vmem:[%s648_s1 + $0x28] sm:$0xff]  ;;  %s656_s12 = smov (!%p202_p4, %s553_s12), 1  ;;  %vm331_vm0 = vcmask 1040384  }
   0xd   : > { %299 = vmatpush.bf16.msra.mxu0 %v512_v0  ;;  %v509_v3 = vld [vmem:[%s648_s1 + $0x20] sm:$0xff]  ;;  %v508_v4 = vld [vmem:[%s648_s1 + $0x18] sm:$0xff]  ;;  %v507_v5 = vld [vmem:[%s648_s1 + $0x10] sm:$0xff]  ;;  %s503_s30 = sshll.u32 %s656_s12, 3  ;;  %vm332_vm1 = vsmask.f32 256 }
   0xe   : > { %v506_v6 = vld [vmem:[%s648_s1 + $0x8] sm:$0xff]  ;;  %v505_v7 = vld [vmem:[%s648_s1] sm:$0xff]  ;;  %s206_s8 = scalar_lea.vmem %s647_s0, %s503_s30  ;;  %vm333_vm2 = vmand %vm331_vm0, %vm332_vm1  ;;  %s513_s11 = smul.u32 12, %s656_s12 }
   0xf   : > { %v504_v8 = vld [vmem:[%s206_s8] sm:$0xff] }
  0x10   : > { %v538_v9 = vld [vmem:[%s649_s2] ss:$0 sm:$0xff]  ;;  %s221_s18 = scalar_lea.vmem %s650_s3, %s513_s11 }
  0x11   : > { %300 = vmatpush.bf16.msra.mxu0 %v511_v1 }
  0x15   : > { %301 = vmatpush.bf16.msra.mxu0 %v510_v2 }
  0x19   : > { %302 = vmatpush.bf16.msra.mxu0 %v509_v3 }
  0x1d   : > { %303 = vmatpush.bf16.msra.mxu0 %v508_v4 }
  0x21   : > { %304 = vmatpush.bf16.msra.mxu0 %v507_v5 }
  0x25   : > { %305 = vmatpush.bf16.msra.mxu0 %v506_v6 }
  0x29   : > { %306 = vmatpush.bf16.msra.mxu0 %v505_v7 }
  0x2c   : > { %307 = vmatmul.bf16.vlgmr.msra.gmra.mxu0 %v504_v8 }
  0xa9   : > { %v308_v10 = vpop.f32.mrf.mxu0 }
  0xaa   : > { %v309_v11 = vadd.f32 %v538_v9, %v308_v10 }
  0xac   : > { %v313_v12 = vmax.f32 %v309_v11, 0.0 }
  0xae   : > { %v315_v15 = vpack.c.bf16 %v313_v12, %v313_v12 }
  0xb0   : > { %v319_v18 = vunpack.c.l.b16 %v315_v15 }
  0xb1   : > { %v310_v13 = vpop.f32.mrf.mxu0 }
  0xb2   : > { %v311_v14 = vadd.f32 %v538_v9, %v310_v13 }
  0xb4   : > { %v314_v16 = vmax.f32 %v311_v14, 0.0 }
  0xb6   : > { %v316_v17 = vpack.c.bf16 %v314_v16, %v314_v16 }
  0xb8   : > { %v320_v19 = vunpack.c.l.b16 %v316_v17 }
  0xba   : > { %v321_v20 = vpack.c.b16 %v320_v19, %v319_v18 }
  0xbc   : > { %v323_v21 = vshrl.u32 %v321_v20, 16  ;;  %v326_v23 = vshll.u32 %v321_v20, 16 }
  0xbe   : > { %v325_v22 = vrot.slane %v323_v21, 7 }
  0xc0   : > { %v328_v24 = vor.u32 %v326_v23, %v325_v22  ;;  %v335_v25 = vsel %vm333_vm2, %v325_v22, 0 }
  0xc1   : > { %v340_v26 = vunpack.c.l.b16 %v335_v25 }
  0xc2   : > { %v334_v27 = vsel %vm333_vm2, 0, %v328_v24 }
  0xc3   : > { %v338_v28 = vunpack.c.l.b16 %v334_v27  ;;  %v339_v29 = vunpack.c.h.b16 %v334_v27  ;;  %v343_v30 = vpack.c.b16 %v340_v26, %v340_v26 }
  0xc5   : > { %v341_v31 = vpack.c.b16 %v338_v28, %v338_v28  ;;  %v342_v32 = vpack.c.b16 %v339_v29, %v339_v29  ;;  %349 = vst [vmem:[%s221_s18 + $0x8] sm:$0x1] %v343_v30 }
  0xc7   : > { %347 = vst [vmem:[%s221_s18] sm:$0xf] %v341_v31 }
  0xc8   : > { %348 = vst [vmem:[%s221_s18 + $0x4] sm:$0xf] %v342_v32 }
  0xc9 PF: > { %s13_s14 = sadd.s32 1, %s561_s14   ;;  %s651_s12 = smov %s557_s13 }
  0xca   : > { %p10_p5 = scmp.ge.s32.totalorder %s13_s14, 4   ;;  %s652_s13 = smov %s654_s15 }
  0xcc   :  { %12 = sbr.rel (!%p10_p5) target bundleno = 2 (0x2), region = 68 }

// kernel: conv2d_model_forward.8
= control target key start
LH: loop header
LB: loop body
LE: loop exit
PB: predicated region body
PF: predicated region fallthrough
CT: control target
= control target key end

     0   :  { %8 = vsyncpa [#allocation3], 0  ;;  %s3078_s12 = smov 0   ;;  %s3080_s13 = smov 0   ;;  %s3223_s0 = inlined_call_operand.vmem [shape: bf16[2,18,256], index: 0, kind: input, shape index: {}]   ;;  %s3224_s1 = inlined_call_operand.hbm [shape: bf16[768,512], index: 1, kind: input, shape index: {}]   ;;  %s3225_s2 = inlined_call_operand.vmem [shape: f32[1,512], index: 2, kind: input, shape index: {}]   ;;  %s3226_s3 = inlined_call_operand.vmem [shape: bf16[2,1,512], index: 3, kind: output, shape index: {}]  }
   0x1   :  { %s3082_s14 = smov 0  }
   0x2 LB: > { %s1973_s15 = sadd.s32 4294967295, %s3052_s14   ;;  %s26_s16 = sadd.s32 1, %s3048_s13  ;;  %s3052_s14 = sphi %s3082_s14, %s14_s14   ;;  %s3048_s13 = sphi %s3080_s13, %s3232_s13   ;;  %s3044_s12 = sphi %s3078_s12, %s3231_s12  }
   0x3   : > { %p28_p0 = scmp.ge.s32.totalorder %s26_s16, 2  ;;  %p1975_p1 = scmp.ge.s32.totalorder %s3052_s14, 1 }
   0x4   : > { %p137_p2 = scmp.lt.s32.totalorder %s3052_s14, 3  ;;  %p2964_p4 = scmp.eq.s32.totalorder %s1973_s15, 0 }
   0x5   : > { %s3234_s16 = smov (%p28_p0, %s26_s16), 0  ;;  %s151_s19 = sshll.u32 %s3224_s1, 4  ;;  %s152_s19 = int_to_ptr.hbm [resolvable:$true] %s151_s19 }
   0x6   : > { %p138_p3 = pnand %p1975_p1, %p137_p2  ;;  %s3054_s20 = smov [#allocation2]  }
   0x7   : > { %s153_s21 = sshll.u32 %s3054_s20, 4  ;;  %s3055_s22 = smov 256   ;;  %s154_s21 = int_to_ptr.vmem [resolvable:$true] %s153_s21 }
   0x8   : > { %p2960_p5 = pneg %p138_p3  ;;  %s3056_s23 = smov 16  }
   0x9   : > { %185 = sbr.rel (%p138_p3) target bundleno = 381 (0x17d), region = 32 }
   0xa   : > { %p2961_p6 = pnand %p2964_p4, %p2960_p5 }
   0xc   : > { %2963 = dma.hbm_to_vmem [thread:$0]  (!%p2961_p6), %s152_s19, 24576, %s154_s21, [#allocation3], %s3055_s22, %s3055_s22, %s3056_s23  }
   0xe   : > { %3039 = dma.done.wait (%p2964_p4), [#allocation3], 24576  }
   0xf   : > { %3041 = vsyncadd (%p2964_p4), [#allocation3], 4294942720  ;;  %v2105_v0 = vld [vmem:[#allocation2 + $0xe0] sm:$0xf]  ;;  %v2793_v1 = vld [vmem:[#allocation2 + $0xec] sm:$0xf0] }
  0x10   : > { %v2233_v2 = vld [vmem:[#allocation2 + $0x1e0] sm:$0xf]  ;;  %v2106_v3 = vor.u32 %v2793_v1, %v2105_v0  ;;  %v2825_v4 = vld [vmem:[#allocation2 + $0x1ec] sm:$0xf0]  ;;  %p217_p7 = scmp.lt.s32.totalorder %s3044_s12, 1  ;;  %vm282_vm1 = vcmask 1046528  }
  0x11   : > { %v2361_v5 = vld [vmem:[#allocation2 + $0x2e0] sm:$0xf]  ;;  %v2857_v6 = vld [vmem:[#allocation2 + $0x2ec] sm:$0xf0]  ;;  %v2234_v7 = vor.u32 %v2825_v4, %v2233_v2  ;;  %vm255_vm0 = vsmask.f32 7424 }
  0x12   : > { %v2362_v8 = vor.u32 %v2857_v6, %v2361_v5  ;;  %v2489_v9 = vld [vmem:[#allocation2 + $0x3e0] sm:$0xf]  ;;  %v2889_v10 = vld [vmem:[#allocation2 + $0x3ec] sm:$0xf0]  ;;  %1453 = vmatpush.bf16.msra.mxu0 %v2106_v3  ;;  %s3236_s12 = smov (!%p217_p7, %s3044_s12), 1  ;;  %vm1857_vm4 = vcmask 1041409  }
  0x13   : > { %v2089_v11 = vld [vmem:[#allocation2 + $0xc0] sm:$0xf]  ;;  %v2490_v12 = vor.u32 %v2889_v10, %v2489_v9  ;;  %v2789_v13 = vld [vmem:[#allocation2 + $0xcc] sm:$0xf0]  ;;  %1467 = vmatpush.bf16.msra.mxu1 %v2234_v7  ;;  %s2955_s24 = smul.u32 24, %s3236_s12  ;;  %vm1843_vm6 = vcmask 1040384  }
  0x14   : > { %v2217_v14 = vld [vmem:[#allocation2 + $0x1c0] sm:$0xf]  ;;  %v2821_v15 = vld [vmem:[#allocation2 + $0x1cc] sm:$0xf0]  ;;  %1481 = vmatpush.bf16.msra.mxu2 %v2362_v8  ;;  %v2090_v16 = vor.u32 %v2789_v13, %v2089_v11  ;;  %vm1855_vm3 = vsmask.f32 256 }
  0x15   : > { %v2218_v17 = vor.u32 %v2821_v15, %v2217_v14  ;;  %v2345_v18 = vld [vmem:[#allocation2 + $0x2c0] sm:$0xf]  ;;  %v2853_v19 = vld [vmem:[#allocation2 + $0x2cc] sm:$0xf0]  ;;  %1495 = vmatpush.bf16.msra.mxu3 %v2490_v12  ;;  %s3114_s27 = scalar_lea.vmem %s3223_s0, %s2955_s24  ;;  %vm1858_vm5 = vsmask.f32 1280  ;;  %vm3191_vm7 = vmand %vm1843_vm6, %vm1855_vm3 }
  0x16   : > { %v2473_v20 = vld [vmem:[#allocation2 + $0x3c0] sm:$0xf]  ;;  %v2346_v21 = vor.u32 %v2853_v19, %v2345_v18  ;;  %v2885_v22 = vld [vmem:[#allocation2 + $0x3cc] sm:$0xf0]  ;;  %1454 = vmatpush.bf16.msra.mxu0 %v2090_v16  ;;  %vm3195_vm8 = vmand %vm1857_vm4, %vm1858_vm5  ;;  %vm1847_vm9 = vcmask 1042434   ;;  %s1982_s30 = sshll.u32 %s3236_s12, 2 }
  0x17   : > { %v2073_v23 = vld [vmem:[#allocation2 + $0xa0] sm:$0xf]  ;;  %v2785_v24 = vld [vmem:[#allocation2 + $0xac] sm:$0xf0]  ;;  %v2474_v25 = vor.u32 %v2885_v22, %v2473_v20  ;;  %1468 = vmatpush.bf16.msra.mxu1 %v2218_v17  ;;  %vm1862_vm10 = vsmask.f32 2304  ;;  %vm1860_vm11 = vmor %vm3195_vm8, %vm3191_vm7  ;;  %s235_s6 = scalar_lea.vmem %s3226_s3, %s1982_s30 }
  0x18   : > { %v2201_v26 = vld [vmem:[#allocation2 + $0x1a0] sm:$0xf]  ;;  %v2817_v27 = vld [vmem:[#allocation2 + $0x1ac] sm:$0xf0]  ;;  %v2074_v29 = vor.u32 %v2785_v24, %v2073_v23  ;;  %1482 = vmatpush.bf16.msra.mxu2 %v2346_v21  ;;  %vm1863_vm12 = vmand %vm1847_vm9, %vm1862_vm10  ;;  %vm1865_vm13 = vcmask 1043459  }
  0x19   : > { %v2329_v28 = vld [vmem:[#allocation2 + $0x2a0] sm:$0xf]  ;;  %v2849_v30 = vld [vmem:[#allocation2 + $0x2ac] sm:$0xf0]  ;;  %v2202_v33 = vor.u32 %v2817_v27, %v2201_v26  ;;  %1496 = vmatpush.bf16.msra.mxu3 %v2474_v25  ;;  %vm1866_vm14 = vsmask.f32 3328  ;;  %vm1864_vm15 = vmor %vm1863_vm12, %vm1860_vm11 }
  0x1a   : > { %v2457_v31 = vld [vmem:[#allocation2 + $0x3a0] sm:$0xf]  ;;  %v2881_v32 = vld [vmem:[#allocation2 + $0x3ac] sm:$0xf0]  ;;  %v2330_v34 = vor.u32 %v2849_v30, %v2329_v28  ;;  %1455 = vmatpush.bf16.msra.mxu0 %v2074_v29 }
  0x1b   : > { %v2057_v35 = vld [vmem:[#allocation2 + $0x80] sm:$0xf]  ;;  %v2781_v36 = vld [vmem:[#allocation2 + $0x8c] sm:$0xf0]  ;;  %v2458_v38 = vor.u32 %v2881_v32, %v2457_v31  ;;  %1469 = vmatpush.bf16.msra.mxu1 %v2202_v33  ;;  %v2791_v33 = vld [vmem:[#allocation2 + $0xe4] sm:$0xf] }
  0x1c   : > { %v2185_v37 = vld [vmem:[#allocation2 + $0x180] sm:$0xf]  ;;  %v2813_v39 = vld [vmem:[#allocation2 + $0x18c] sm:$0xf0]  ;;  %v2058_v44 = vor.u32 %v2781_v36, %v2057_v35  ;;  %1483 = vmatpush.bf16.msra.mxu2 %v2330_v34  ;;  %v2107_v34 = vld [vmem:[#allocation2 + $0xf0] sm:$0xf0] }
  0x1d   : > { %v2313_v40 = vld [vmem:[#allocation2 + $0x280] sm:$0xf]  ;;  %v2845_v41 = vld [vmem:[#allocation2 + $0x28c] sm:$0xf0]  ;;  %v2186_v45 = vor.u32 %v2813_v39, %v2185_v37  ;;  %1497 = vmatpush.bf16.msra.mxu3 %v2458_v38  ;;  %v2823_v37 = vld [vmem:[#allocation2 + $0x1e4] sm:$0xf] }
  0x1e   : > { %v2441_v42 = vld [vmem:[#allocation2 + $0x380] sm:$0xf]  ;;  %v2877_v43 = vld [vmem:[#allocation2 + $0x38c] sm:$0xf0]  ;;  %v2314_v46 = vor.u32 %v2845_v41, %v2313_v40  ;;  %1456 = vmatpush.bf16.msra.mxu0 %v2058_v44  ;;  %v2235_v38 = vld [vmem:[#allocation2 + $0x1f0] sm:$0xf0] }
  0x1f   : > { %v2041_v47 = vld [vmem:[#allocation2 + $0x60] sm:$0xf]  ;;  %v2777_v48 = vld [vmem:[#allocation2 + $0x6c] sm:$0xf0]  ;;  %v2442_v50 = vor.u32 %v2877_v43, %v2441_v42  ;;  %1470 = vmatpush.bf16.msra.mxu1 %v2186_v45  ;;  %v2110_v43 = vor.u32 %v2791_v33, %v2107_v34  ;;  %v2775_v33 = vld [vmem:[#allocation2 + $0x64] sm:$0xf] }
  0x20   : > { %v2169_v49 = vld [vmem:[#allocation2 + $0x160] sm:$0xf]  ;;  %v2809_v51 = vld [vmem:[#allocation2 + $0x16c] sm:$0xf0]  ;;  %v2042_v56 = vor.u32 %v2777_v48, %v2041_v47  ;;  %1484 = vmatpush.bf16.msra.mxu2 %v2314_v46  ;;  %v2238_v47 = vor.u32 %v2823_v37, %v2235_v38  ;;  %v2787_v48 = vld [vmem:[#allocation2 + $0xc4] sm:$0xf] }
  0x21   : > { %v2297_v52 = vld [vmem:[#allocation2 + $0x260] sm:$0xf]  ;;  %v2841_v53 = vld [vmem:[#allocation2 + $0x26c] sm:$0xf0]  ;;  %v2170_v57 = vor.u32 %v2809_v51, %v2169_v49  ;;  %1498 = vmatpush.bf16.msra.mxu3 %v2442_v50  ;;  %v2091_v49 = vld [vmem:[#allocation2 + $0xd0] sm:$0xf0] }
  0x22   : > { %v2425_v54 = vld [vmem:[#allocation2 + $0x360] sm:$0xf]  ;;  %v2873_v55 = vld [vmem:[#allocation2 + $0x36c] sm:$0xf0]  ;;  %v2298_v58 = vor.u32 %v2841_v53, %v2297_v52  ;;  %1457 = vmatpush.bf16.msra.mxu0 %v2042_v56  ;;  %v2819_v50 = vld [vmem:[#allocation2 + $0x1c4] sm:$0xf] }
  0x23   : > { %v2025_v59 = vld [vmem:[#allocation2 + $0x40] sm:$0xf]  ;;  %v2773_v60 = vld [vmem:[#allocation2 + $0x4c] sm:$0xf0]  ;;  %v2426_v62 = vor.u32 %v2873_v55, %v2425_v54  ;;  %1471 = vmatpush.bf16.msra.mxu1 %v2170_v57  ;;  %v2219_v51 = vld [vmem:[#allocation2 + $0x1d0] sm:$0xf0] }
  0x24   : > { %v2153_v61 = vld [vmem:[#allocation2 + $0x140] sm:$0xf]  ;;  %v2805_v63 = vld [vmem:[#allocation2 + $0x14c] sm:$0xf0]  ;;  %v2026_v4 = vor.u32 %v2773_v60, %v2025_v59  ;;  %1485 = vmatpush.bf16.msra.mxu2 %v2298_v58  ;;  %v2762_v53 = vld [vmem:[%s3114_s27 + $0x4] sm:$0xf0]  ;;  %v2094_v59 = vor.u32 %v2787_v48, %v2091_v49 }
  0x25   : > { %v2281_v0 = vld [vmem:[#allocation2 + $0x240] sm:$0xf]  ;;  %v2837_v1 = vld [vmem:[#allocation2 + $0x24c] sm:$0xf0]  ;;  %v2154_v5 = vor.u32 %v2805_v63, %v2153_v61  ;;  %1499 = vmatpush.bf16.msra.mxu3 %v2426_v62  ;;  %v2783_v62 = vld [vmem:[#allocation2 + $0xa4] sm:$0xf]  ;;  %v2222_v63 = vor.u32 %v2819_v50, %v2219_v51 }
  0x26   : > { %v2409_v2 = vld [vmem:[#allocation2 + $0x340] sm:$0xf]  ;;  %v2869_v3 = vld [vmem:[#allocation2 + $0x34c] sm:$0xf0]  ;;  %v2282_v6 = vor.u32 %v2837_v1, %v2281_v0  ;;  %1458 = vmatpush.bf16.msra.mxu0 %v2026_v4  ;;  %v2075_v0 = vld [vmem:[#allocation2 + $0xb0] sm:$0xf0] }
  0x27   : > { %v2009_v7 = vld [vmem:[#allocation2 + $0x20] sm:$0xf]  ;;  %v2769_v8 = vld [vmem:[#allocation2 + $0x2c] sm:$0xf0]  ;;  %v2410_v10 = vor.u32 %v2869_v3, %v2409_v2  ;;  %1472 = vmatpush.bf16.msra.mxu1 %v2154_v5  ;;  %v2761_v1 = vld [vmem:[%s3114_s27 + $0x4] sm:$0xf] }
  0x28   : > { %v2137_v9 = vld [vmem:[#allocation2 + $0x120] sm:$0xf]  ;;  %v2801_v11 = vld [vmem:[#allocation2 + $0x12c] sm:$0xf0]  ;;  %v2010_v16 = vor.u32 %v2769_v8, %v2009_v7  ;;  %1486 = vmatpush.bf16.msra.mxu2 %v2282_v6  ;;  %v1987_v2 = vld [vmem:[%s3114_s27 + $0x8] sm:$0xf0] }
  0x29   : > { %v2265_v12 = vld [vmem:[#allocation2 + $0x220] sm:$0xf]  ;;  %v2833_v13 = vld [vmem:[#allocation2 + $0x22c] sm:$0xf0]  ;;  %v2138_v19 = vor.u32 %v2801_v11, %v2137_v9  ;;  %1500 = vmatpush.bf16.msra.mxu3 %v2410_v10  ;;  %v2815_v3 = vld [vmem:[#allocation2 + $0x1a4] sm:$0xf]  ;;  %v3123_v5 = vor.u32 %v2761_v1, %v1987_v2  ;;  %v2078_v11 = vor.u32 %v2783_v62, %v2075_v0 }
  0x2a   : > { %v2393_v14 = vld [vmem:[#allocation2 + $0x320] sm:$0xf]  ;;  %v2865_v15 = vld [vmem:[#allocation2 + $0x32c] sm:$0xf0]  ;;  %v2266_v20 = vor.u32 %v2833_v13, %v2265_v12  ;;  %1459 = vmatpush.bf16.msra.mxu0 %v2010_v16  ;;  %v2203_v4 = vld [vmem:[#allocation2 + $0x1b0] sm:$0xf0] }
  0x2b   : > { %v1993_v17 = vld [vmem:[#allocation2] sm:$0xf]  ;;  %v2765_v18 = vld [vmem:[#allocation2 + $0xc] sm:$0xf0]  ;;  %v2394_v24 = vor.u32 %v2865_v15, %v2393_v14  ;;  %1473 = vmatpush.bf16.msra.mxu1 %v2138_v19  ;;  %v2779_v13 = vld [vmem:[#allocation2 + $0x84] sm:$0xf]  ;;  %v2206_v15 = vor.u32 %v2815_v3, %v2203_v4 }
  0x2c   : > { %v2121_v21 = vld [vmem:[#allocation2 + $0x100] sm:$0xf]  ;;  %v2797_v22 = vld [vmem:[#allocation2 + $0x10c] sm:$0xf0]  ;;  %v1994_v31 = vor.u32 %v2765_v18, %v1993_v17  ;;  %1487 = vmatpush.bf16.msra.mxu2 %v2266_v20  ;;  %v2059_v16 = vld [vmem:[#allocation2 + $0x90] sm:$0xf0] }
  0x2d   : > { %v2249_v23 = vld [vmem:[#allocation2 + $0x200] sm:$0xf]  ;;  %v2829_v25 = vld [vmem:[#allocation2 + $0x20c] sm:$0xf0]  ;;  %v2122_v35 = vor.u32 %v2797_v22, %v2121_v21  ;;  %1501 = vmatpush.bf16.msra.mxu3 %v2394_v24  ;;  %v2811_v17 = vld [vmem:[#allocation2 + $0x184] sm:$0xf] }
  0x2e   : > { %v2377_v26 = vld [vmem:[#allocation2 + $0x300] sm:$0xf]  ;;  %v2861_v27 = vld [vmem:[#allocation2 + $0x30c] sm:$0xf0]  ;;  %v2250_v36 = vor.u32 %v2829_v25, %v2249_v23  ;;  %1460 = vmatpush.bf16.msra.mxu0 %v1994_v31  ;;  %v2187_v20 = vld [vmem:[#allocation2 + $0x190] sm:$0xf0]  ;;  %v2062_v31 = vor.u32 %v2779_v13, %v2059_v16 }
  0x2f   : > { %v2617_v28 = vld [vmem:[#allocation2 + $0x4e0] sm:$0xf]  ;;  %v2921_v29 = vld [vmem:[#allocation2 + $0x4ec] sm:$0xf0]  ;;  %v2378_v39 = vor.u32 %v2861_v27, %v2377_v26  ;;  %1474 = vmatpush.bf16.msra.mxu1 %v2122_v35  ;;  %v269_v23 = vshrl.u32 %v3123_v5, 16  ;;  %v271_v24 = vshll.u32 %v3123_v5, 16  ;;  %v2190_v37 = vor.u32 %v2811_v17, %v2187_v20 }
  0x30   : > { %v2745_v30 = vld [vmem:[#allocation2 + $0x5e0] sm:$0xf]  ;;  %v2953_v32 = vld [vmem:[#allocation2 + $0x5ec] sm:$0xf0]  ;;  %v2618_v40 = vor.u32 %v2921_v29, %v2617_v28  ;;  %1488 = vmatpush.bf16.msra.mxu2 %v2250_v36  ;;  %v2043_v38 = vld [vmem:[#allocation2 + $0x70] sm:$0xf0] }
  0x31   : > { %v2601_v41 = vld [vmem:[#allocation2 + $0x4c0] sm:$0xf]  ;;  %v2746_v42 = vor.u32 %v2953_v32, %v2745_v30  ;;  %v2917_v44 = vld [vmem:[#allocation2 + $0x4cc] sm:$0xf0]  ;;  %1502 = vmatpush.bf16.msra.mxu3 %v2378_v39  ;;  %v273_v36 = vrot.slane %v271_v24, 1  ;;  %v2046_v49 = vor.u32 %v2775_v33, %v2043_v38 }
  0x32   : > { %v2729_v45 = vld [vmem:[#allocation2 + $0x5c0] sm:$0xf]  ;;  %v2949_v46 = vld [vmem:[#allocation2 + $0x5cc] sm:$0xf0]  ;;  %1509 = vmatpush.bf16.msrb.mxu0 %v2618_v40  ;;  %v2602_v54 = vor.u32 %v2917_v44, %v2601_v41  ;;  %1475 = vmatmul.bf16.vlgmr.msra.gmra.mxu1 %v3123_v5  ;;  %v2807_v39 = vld [vmem:[#allocation2 + $0x164] sm:$0xf] }
  0x33   : > { %v1985_v52 = vld [vmem:[%s3114_s27] sm:$0xf]  ;;  %v2913_v56 = vld [vmem:[#allocation2 + $0x4ac] sm:$0xf0]  ;;  %1523 = vmatpush.bf16.msrb.mxu1 %v2746_v42  ;;  %v2730_v58 = vor.u32 %v2949_v46, %v2729_v45  ;;  %v2171_v41 = vld [vmem:[#allocation2 + $0x170] sm:$0xf0] }
  0x34   : > { %v2585_v55 = vld [vmem:[#allocation2 + $0x4a0] sm:$0xf]  ;;  %v3118_v57 = vor.u32 %v2762_v53, %v1985_v52  ;;  %1537 = vmatpush.bf16.msrb.mxu2 %v2110_v43  ;;  %v2945_v61 = vld [vmem:[#allocation2 + $0x5ac] sm:$0xf0]  ;;  %v274_v43 = vor.u32 %v273_v36, %v269_v23  ;;  %v2174_v53 = vor.u32 %v2807_v39, %v2171_v41  ;;  %v1995_v20 = vld [vmem:[#allocation2 + $0x10] sm:$0xf0] }
  0x35   : > { %v2713_v60 = vld [vmem:[#allocation2 + $0x5a0] sm:$0xf]  ;;  %1551 = vmatpush.bf16.msrb.mxu3 %v2238_v47  ;;  %v2586_v6 = vor.u32 %v2913_v56, %v2585_v55  ;;  %v2909_v8 = vld [vmem:[#allocation2 + $0x48c] sm:$0xf0]  ;;  %v2771_v55 = vld [vmem:[#allocation2 + $0x44] sm:$0xf] }
  0x36   : > { %1461 = vmatmul.bf16.vlgmr.msra.gmra.mxu0 %v3118_v57  ;;  %v2569_v7 = vld [vmem:[#allocation2 + $0x480] sm:$0xf]  ;;  %v2714_v10 = vor.u32 %v2945_v61, %v2713_v60  ;;  %v2941_v12 = vld [vmem:[#allocation2 + $0x58c] sm:$0xf0]  ;;  %v257_v19 = vshrl.u32 %v3118_v57, 16  ;;  %v259_v21 = vshll.u32 %v3118_v57, 16 }
  0x37   : > { %1510 = vmatpush.bf16.msrb.mxu0 %v2602_v54  ;;  %v2697_v9 = vld [vmem:[#allocation2 + $0x580] sm:$0xf]  ;;  %1524 = vmatpush.bf16.msrb.mxu1 %v2730_v58  ;;  %v239_v14 = vld [vmem:[%s3114_s27 + $0x10] sm:$0x11]  ;;  %v2570_v25 = vor.u32 %v2909_v8, %v2569_v7  ;;  %v2767_v7 = vld [vmem:[#allocation2 + $0x24] sm:$0xf] }
  0x38   : > { %1538 = vmatpush.bf16.msrb.mxu2 %v2094_v59  ;;  %v251_v18 = vunpack.c.l.b16 %v239_v14  ;;  %v252_v22 = vunpack.c.h.b16 %v239_v14  ;;  %v2698_v26 = vor.u32 %v2941_v12, %v2697_v9  ;;  %v2553_v27 = vld [vmem:[#allocation2 + $0x460] sm:$0xf]  ;;  %v2905_v28 = vld [vmem:[#allocation2 + $0x46c] sm:$0xf0]  ;;  %v261_v34 = vrot.slane %v259_v21, 1 }
  0x39   : > { %1552 = vmatpush.bf16.msrb.mxu3 %v2222_v63  ;;  %v2681_v29 = vld [vmem:[#allocation2 + $0x560] sm:$0xf]  ;;  %v2937_v32 = vld [vmem:[#allocation2 + $0x56c] sm:$0xf0]  ;;  %v2554_v45 = vor.u32 %v2905_v28, %v2553_v27  ;;  %v2027_v56 = vld [vmem:[#allocation2 + $0x50] sm:$0xf0] }
  0x3a   : > { %v3131_v30 = vpack.c.b16 %v251_v18, %v251_v18  ;;  %v3133_v35 = vpack.c.b16 %v252_v22, %v252_v22  ;;  %v262_v42 = vor.u32 %v261_v34, %v257_v19  ;;  %v2537_v46 = vld [vmem:[#allocation2 + $0x440] sm:$0xf]  ;;  %v2682_v48 = vor.u32 %v2937_v32, %v2681_v29  ;;  %v2901_v50 = vld [vmem:[#allocation2 + $0x44c] sm:$0xf0]  ;;  %v2803_v59 = vld [vmem:[#allocation2 + $0x144] sm:$0xf] }
  0x3b   : > { %1511 = vmatpush.bf16.msrb.mxu0 %v2586_v6  ;;  %1525 = vmatpush.bf16.msrb.mxu1 %v2714_v10  ;;  %v2665_v51 = vld [vmem:[#allocation2 + $0x540] sm:$0xf]  ;;  %v2933_v54 = vld [vmem:[#allocation2 + $0x54c] sm:$0xf0]  ;;  %v2155_v60 = vld [vmem:[#allocation2 + $0x150] sm:$0xf0]  ;;  %v2538_v62 = vor.u32 %v2901_v50, %v2537_v46  ;;  %v2030_v0 = vor.u32 %v2771_v55, %v2027_v56 }
  0x3c   : > { %1539 = vmatpush.bf16.msrb.mxu2 %v2078_v11  ;;  %v264_v40 = vshll.u32 %v3131_v30, 16  ;;  %v276_v44 = vshll.u32 %v3133_v35, 16  ;;  %v2666_v63 = vor.u32 %v2933_v54, %v2665_v51  ;;  %v2521_v1 = vld [vmem:[#allocation2 + $0x420] sm:$0xf]  ;;  %v2897_v2 = vld [vmem:[#allocation2 + $0x42c] sm:$0xf0]  ;;  %v2158_v4 = vor.u32 %v2803_v59, %v2155_v60 }
  0x3d   : > { %1553 = vmatpush.bf16.msrb.mxu3 %v2206_v15  ;;  %v2649_v3 = vld [vmem:[#allocation2 + $0x520] sm:$0xf]  ;;  %v2929_v6 = vld [vmem:[#allocation2 + $0x52c] sm:$0xf0]  ;;  %v2011_v8 = vld [vmem:[#allocation2 + $0x30] sm:$0xf0]  ;;  %v2522_v11 = vor.u32 %v2897_v2, %v2521_v1 }
  0x3e   : > { %v266_v47 = vrot.slane %v264_v40, 1  ;;  %v278_v52 = vrot.slane %v276_v44, 1  ;;  %v2799_v9 = vld [vmem:[#allocation2 + $0x124] sm:$0xf]  ;;  %v2139_v10 = vld [vmem:[#allocation2 + $0x130] sm:$0xf0]  ;;  %v2650_v14 = vor.u32 %v2929_v6, %v2649_v3  ;;  %v2014_v15 = vor.u32 %v2767_v7, %v2011_v8 }
  0x3f   : > { %1512 = vmatpush.bf16.msrb.mxu0 %v2570_v25  ;;  %1526 = vmatpush.bf16.msrb.mxu1 %v2698_v26  ;;  %v2505_v12 = vld [vmem:[#allocation2 + $0x400] sm:$0xf]  ;;  %v2893_v13 = vld [vmem:[#allocation2 + $0x40c] sm:$0xf0]  ;;  %v2763_v18 = vld [vmem:[#allocation2 + $0x4] sm:$0xf]  ;;  %v2142_v19 = vor.u32 %v2799_v9, %v2139_v10 }
  0x40   : > { %1540 = vmatpush.bf16.msrb.mxu2 %v2062_v31  ;;  %v3138_v58 = vsel %vm255_vm0, %v262_v42, %v266_v47  ;;  %v3142_v61 = vsel %vm255_vm0, %v274_v43, %v278_v52  ;;  %v2633_v16 = vld [vmem:[#allocation2 + $0x500] sm:$0xf]  ;;  %v2925_v17 = vld [vmem:[#allocation2 + $0x50c] sm:$0xf0]  ;;  %v2795_v21 = vld [vmem:[#allocation2 + $0x104] sm:$0xf]  ;;  %v2506_v26 = vor.u32 %v2893_v13, %v2505_v12  ;;  %v1998_v32 = vor.u32 %v2763_v18, %v1995_v20 }
  0x41   : > { %1554 = vmatpush.bf16.msrb.mxu3 %v2190_v37  ;;  %1489 = vmatmul.bf16.vlgmr.msra.gmra.mxu2 %v3138_v58  ;;  %v2123_v22 = vld [vmem:[#allocation2 + $0x110] sm:$0xf0]  ;;  %v2855_v23 = vld [vmem:[#allocation2 + $0x2e4] sm:$0xf]  ;;  %v2634_v31 = vor.u32 %v2925_v17, %v2633_v16  ;;  %v283_v36 = vrot.slane %v3118_v57, 1  ;;  %v284_v37 = vrot.slane %v3131_v30, 1  ;;  %vm1867_vm0 = vmand %vm1865_vm13, %vm1866_vm14 }
  0x42   : > { %1503 = vmatmul.bf16.vlgmr.msra.gmra.mxu3 %v3142_v61  ;;  %v2363_v24 = vld [vmem:[#allocation2 + $0x2f0] sm:$0xf0]  ;;  %v2887_v25 = vld [vmem:[#allocation2 + $0x3e4] sm:$0xf]  ;;  %v2126_v38 = vor.u32 %v2795_v21, %v2123_v22  ;;  %v286_v40 = vrot.slane %v3123_v5, 1  ;;  %v287_v41 = vrot.slane %v3133_v35, 1 }
  0x43   : > { %1513 = vmatpush.bf16.msrb.mxu0 %v2554_v45  ;;  %1527 = vmatpush.bf16.msrb.mxu1 %v2682_v48  ;;  %v2491_v27 = vld [vmem:[#allocation2 + $0x3f0] sm:$0xf0]  ;;  %v2919_v28 = vld [vmem:[#allocation2 + $0x4e4] sm:$0xf]  ;;  %v2366_v39 = vor.u32 %v2855_v23, %v2363_v24  ;;  %v3150_v30 = vsel %vm282_vm1, %v283_v36, %v284_v37 }
  0x44   : > { %1541 = vmatpush.bf16.msrb.mxu2 %v2046_v49  ;;  %v2619_v29 = vld [vmem:[#allocation2 + $0x4f0] sm:$0xf0]  ;;  %v2951_v33 = vld [vmem:[#allocation2 + $0x5e4] sm:$0xf]  ;;  %v2494_v42 = vor.u32 %v2887_v25, %v2491_v27  ;;  %v3153_v35 = vsel %vm282_vm1, %v286_v40, %v287_v41  ;;  %vm1851_vm1 = vcmask 1041408  }
  0x45   : > { %1555 = vmatpush.bf16.msrb.mxu3 %v2174_v53  ;;  %v2747_v34 = vld [vmem:[#allocation2 + $0x5f0] sm:$0xf0]  ;;  %v2622_v43 = vor.u32 %v2919_v28, %v2619_v29  ;;  %v2851_v44 = vld [vmem:[#allocation2 + $0x2c4] sm:$0xf] }
  0x46   : > { %v2347_v45 = vld [vmem:[#allocation2 + $0x2d0] sm:$0xf0]  ;;  %v2883_v46 = vld [vmem:[#allocation2 + $0x3c4] sm:$0xf]  ;;  %v2750_v47 = vor.u32 %v2951_v33, %v2747_v34 }
  0x47   : > { %1514 = vmatpush.bf16.msrb.mxu0 %v2538_v62  ;;  %1528 = vmatpush.bf16.msrb.mxu1 %v2666_v63  ;;  %v2475_v48 = vld [vmem:[#allocation2 + $0x3d0] sm:$0xf0]  ;;  %v2915_v49 = vld [vmem:[#allocation2 + $0x4c4] sm:$0xf]  ;;  %v2350_v53 = vor.u32 %v2851_v44, %v2347_v45 }
  0x48   : > { %1542 = vmatpush.bf16.msrb.mxu2 %v2030_v0  ;;  %v2603_v50 = vld [vmem:[#allocation2 + $0x4d0] sm:$0xf0]  ;;  %v2947_v51 = vld [vmem:[#allocation2 + $0x5c4] sm:$0xf]  ;;  %v2478_v54 = vor.u32 %v2883_v46, %v2475_v48 }
  0x49   : > { %1556 = vmatpush.bf16.msrb.mxu3 %v2158_v4  ;;  %v2731_v52 = vld [vmem:[#allocation2 + $0x5d0] sm:$0xf0]  ;;  %v2606_v55 = vor.u32 %v2915_v49, %v2603_v50  ;;  %v2847_v56 = vld [vmem:[#allocation2 + $0x2a4] sm:$0xf] }
  0x4a   : > { %v2331_v59 = vld [vmem:[#allocation2 + $0x2b0] sm:$0xf0]  ;;  %v2879_v60 = vld [vmem:[#allocation2 + $0x3a4] sm:$0xf]  ;;  %v2734_v62 = vor.u32 %v2947_v51, %v2731_v52 }
  0x4b   : > { %1515 = vmatpush.bf16.msrb.mxu0 %v2522_v11  ;;  %1529 = vmatpush.bf16.msrb.mxu1 %v2650_v14  ;;  %v2459_v63 = vld [vmem:[#allocation2 + $0x3b0] sm:$0xf0]  ;;  %v2911_v0 = vld [vmem:[#allocation2 + $0x4a4] sm:$0xf]  ;;  %v2334_v4 = vor.u32 %v2847_v56, %v2331_v59 }
  0x4c   : > { %1543 = vmatpush.bf16.msrb.mxu2 %v2014_v15  ;;  %v2587_v1 = vld [vmem:[#allocation2 + $0x4b0] sm:$0xf0]  ;;  %v2943_v2 = vld [vmem:[#allocation2 + $0x5a4] sm:$0xf]  ;;  %v2462_v6 = vor.u32 %v2879_v60, %v2459_v63 }
  0x4d   : > { %1557 = vmatpush.bf16.msrb.mxu3 %v2142_v19  ;;  %v2715_v3 = vld [vmem:[#allocation2 + $0x5b0] sm:$0xf0]  ;;  %v2590_v7 = vor.u32 %v2911_v0, %v2587_v1  ;;  %v2843_v8 = vld [vmem:[#allocation2 + $0x284] sm:$0xf] }
  0x4e   : > { %v2315_v9 = vld [vmem:[#allocation2 + $0x290] sm:$0xf0]  ;;  %v2875_v10 = vld [vmem:[#allocation2 + $0x384] sm:$0xf]  ;;  %v2718_v11 = vor.u32 %v2943_v2, %v2715_v3 }
  0x4f   : > { %1516 = vmatpush.bf16.msrb.mxu0 %v2506_v26  ;;  %1530 = vmatpush.bf16.msrb.mxu1 %v2634_v31  ;;  %v2443_v12 = vld [vmem:[#allocation2 + $0x390] sm:$0xf0]  ;;  %v2907_v13 = vld [vmem:[#allocation2 + $0x484] sm:$0xf]  ;;  %v2318_v17 = vor.u32 %v2843_v8, %v2315_v9  ;;  %v2794_v8 = vld [vmem:[#allocation2 + $0xf4] sm:$0xf0] }
  0x50   : > { %1544 = vmatpush.bf16.msrb.mxu2 %v1998_v32  ;;  %v2571_v14 = vld [vmem:[#allocation2 + $0x490] sm:$0xf0]  ;;  %v2939_v15 = vld [vmem:[#allocation2 + $0x584] sm:$0xf]  ;;  %v2446_v18 = vor.u32 %v2875_v10, %v2443_v12  ;;  %v2241_v9 = vld [vmem:[#allocation2 + $0x1e8] sm:$0xf] }
  0x51   : > { %1558 = vmatpush.bf16.msrb.mxu3 %v2126_v38  ;;  %v2699_v16 = vld [vmem:[#allocation2 + $0x590] sm:$0xf0]  ;;  %v2574_v19 = vor.u32 %v2907_v13, %v2571_v14  ;;  %v2839_v20 = vld [vmem:[#allocation2 + $0x264] sm:$0xf]  ;;  %v2369_v12 = vld [vmem:[#allocation2 + $0x2e8] sm:$0xf] }
  0x52   : > { %1517 = vmatmul.bf16.vlgmr.msrb.gmra.mxu0 %v3150_v30  ;;  %1531 = vmatmul.bf16.vlgmr.msrb.gmra.mxu1 %v3153_v35  ;;  %v2299_v21 = vld [vmem:[#allocation2 + $0x270] sm:$0xf0]  ;;  %v2871_v22 = vld [vmem:[#allocation2 + $0x364] sm:$0xf]  ;;  %v2702_v23 = vor.u32 %v2939_v15, %v2699_v16  ;;  %v2858_v13 = vld [vmem:[#allocation2 + $0x2f4] sm:$0xf0] }
  0x53   : > { %1565 = vmatpush.bf16.msra.mxu0 %v2366_v39  ;;  %1579 = vmatpush.bf16.msra.mxu1 %v2494_v42  ;;  %v2427_v24 = vld [vmem:[#allocation2 + $0x370] sm:$0xf0]  ;;  %v2903_v25 = vld [vmem:[#allocation2 + $0x464] sm:$0xf]  ;;  %v2302_v29 = vor.u32 %v2839_v20, %v2299_v21  ;;  %v2497_v16 = vld [vmem:[#allocation2 + $0x3e8] sm:$0xf]  ;;  %v2370_v21 = vor.u32 %v2858_v13, %v2369_v12 }
  0x54   : > { %1593 = vmatpush.bf16.msra.mxu2 %v2622_v43  ;;  %1559 = vmatmul.bf16.vlgmr.msrb.gmra.mxu3 %v3123_v5  ;;  %v2555_v26 = vld [vmem:[#allocation2 + $0x470] sm:$0xf0]  ;;  %v2935_v27 = vld [vmem:[#allocation2 + $0x564] sm:$0xf]  ;;  %v2430_v31 = vor.u32 %v2871_v22, %v2427_v24  ;;  %v2097_v22 = vld [vmem:[#allocation2 + $0xc8] sm:$0xf] }
  0x55   : > { %1607 = vmatpush.bf16.msra.mxu3 %v2750_v47  ;;  %1545 = vmatmul.bf16.vlgmr.msrb.gmra.mxu2 %v3118_v57  ;;  %v2683_v28 = vld [vmem:[#allocation2 + $0x570] sm:$0xf0]  ;;  %v2558_v32 = vor.u32 %v2903_v25, %v2555_v26  ;;  %v2835_v33 = vld [vmem:[#allocation2 + $0x244] sm:$0xf]  ;;  %v2225_v24 = vld [vmem:[#allocation2 + $0x1c8] sm:$0xf] }
  0x56   : > { %v2283_v34 = vld [vmem:[#allocation2 + $0x250] sm:$0xf0]  ;;  %v2867_v36 = vld [vmem:[#allocation2 + $0x344] sm:$0xf]  ;;  %v2686_v37 = vor.u32 %v2935_v27, %v2683_v28  ;;  %v2822_v26 = vld [vmem:[#allocation2 + $0x1d4] sm:$0xf0] }
  0x57   : > { %1566 = vmatpush.bf16.msra.mxu0 %v2350_v53  ;;  %1580 = vmatpush.bf16.msra.mxu1 %v2478_v54  ;;  %v2411_v38 = vld [vmem:[#allocation2 + $0x350] sm:$0xf0]  ;;  %v2899_v39 = vld [vmem:[#allocation2 + $0x444] sm:$0xf]  ;;  %v2286_v43 = vor.u32 %v2835_v33, %v2283_v34  ;;  %v2353_v27 = vld [vmem:[#allocation2 + $0x2c8] sm:$0xf]  ;;  %v2226_v33 = vor.u32 %v2822_v26, %v2225_v24 }
  0x58   : > { %1594 = vmatpush.bf16.msra.mxu2 %v2606_v55  ;;  %v2539_v40 = vld [vmem:[#allocation2 + $0x450] sm:$0xf0]  ;;  %v2931_v41 = vld [vmem:[#allocation2 + $0x544] sm:$0xf]  ;;  %v2414_v44 = vor.u32 %v2867_v36, %v2411_v38  ;;  %v2854_v28 = vld [vmem:[#allocation2 + $0x2d4] sm:$0xf0] }
  0x59   : > { %1608 = vmatpush.bf16.msra.mxu3 %v2734_v62  ;;  %v2667_v42 = vld [vmem:[#allocation2 + $0x550] sm:$0xf0]  ;;  %v2542_v45 = vor.u32 %v2899_v39, %v2539_v40  ;;  %v2831_v46 = vld [vmem:[#allocation2 + $0x224] sm:$0xf]  ;;  %v2354_v34 = vor.u32 %v2854_v28, %v2353_v27  ;;  %v2081_v36 = vld [vmem:[#allocation2 + $0xa8] sm:$0xf] }
  0x5a   : > { %v2267_v47 = vld [vmem:[#allocation2 + $0x230] sm:$0xf0]  ;;  %v2863_v48 = vld [vmem:[#allocation2 + $0x324] sm:$0xf]  ;;  %v2670_v49 = vor.u32 %v2931_v41, %v2667_v42  ;;  %v2209_v38 = vld [vmem:[#allocation2 + $0x1a8] sm:$0xf] }
  0x5b   : > { %1567 = vmatpush.bf16.msra.mxu0 %v2334_v4  ;;  %1581 = vmatpush.bf16.msra.mxu1 %v2462_v6  ;;  %v2395_v50 = vld [vmem:[#allocation2 + $0x330] sm:$0xf0]  ;;  %v2895_v51 = vld [vmem:[#allocation2 + $0x424] sm:$0xf]  ;;  %v2270_v55 = vor.u32 %v2831_v46, %v2267_v47  ;;  %v2818_v40 = vld [vmem:[#allocation2 + $0x1b4] sm:$0xf0] }
  0x5c   : > { %1595 = vmatpush.bf16.msra.mxu2 %v2590_v7  ;;  %v2523_v52 = vld [vmem:[#allocation2 + $0x430] sm:$0xf0]  ;;  %v2927_v53 = vld [vmem:[#allocation2 + $0x524] sm:$0xf]  ;;  %v2398_v60 = vor.u32 %v2863_v48, %v2395_v50  ;;  %v2113_v7 = vld [vmem:[#allocation2 + $0xe8] sm:$0xf]  ;;  %v2210_v46 = vor.u32 %v2818_v40, %v2209_v38 }
  0x5d   : > { %1609 = vmatpush.bf16.msra.mxu3 %v2718_v11  ;;  %v2651_v54 = vld [vmem:[#allocation2 + $0x530] sm:$0xf0]  ;;  %v2827_v56 = vld [vmem:[#allocation2 + $0x204] sm:$0xf]  ;;  %v2526_v62 = vor.u32 %v2895_v51, %v2523_v52  ;;  %v2826_v11 = vld [vmem:[#allocation2 + $0x1f4] sm:$0xf0] }
  0x5e   : > { %v2251_v59 = vld [vmem:[#allocation2 + $0x210] sm:$0xf0]  ;;  %v2859_v63 = vld [vmem:[#allocation2 + $0x304] sm:$0xf]  ;;  %v2654_v2 = vor.u32 %v2927_v53, %v2651_v54  ;;  %v2242_v20 = vor.u32 %v2826_v11, %v2241_v9  ;;  %v2337_v41 = vld [vmem:[#allocation2 + $0x2a8] sm:$0xf] }
  0x5f   : > { %1568 = vmatpush.bf16.msra.mxu0 %v2318_v17  ;;  %1582 = vmatpush.bf16.msra.mxu1 %v2446_v18  ;;  %v2379_v0 = vld [vmem:[#allocation2 + $0x310] sm:$0xf0]  ;;  %v2891_v1 = vld [vmem:[#allocation2 + $0x404] sm:$0xf]  ;;  %v2254_v10 = vor.u32 %v2827_v56, %v2251_v59  ;;  %v2890_v17 = vld [vmem:[#allocation2 + $0x3f4] sm:$0xf0] }
  0x60   : > { %1596 = vmatpush.bf16.msra.mxu2 %v2574_v19  ;;  %v2507_v3 = vld [vmem:[#allocation2 + $0x410] sm:$0xf0]  ;;  %v2923_v4 = vld [vmem:[#allocation2 + $0x504] sm:$0xf]  ;;  %v2382_v14 = vor.u32 %v2859_v63, %v2379_v0  ;;  %v2114_v19 = vor.u32 %v2794_v8, %v2113_v7  ;;  %v2498_v25 = vor.u32 %v2890_v17, %v2497_v16  ;;  %v2850_v42 = vld [vmem:[#allocation2 + $0x2b4] sm:$0xf0] }
  0x61   : > { %1610 = vmatpush.bf16.msra.mxu3 %v2702_v23  ;;  %v2635_v6 = vld [vmem:[#allocation2 + $0x510] sm:$0xf0]  ;;  %v2510_v15 = vor.u32 %v2891_v1, %v2507_v3  ;;  %v2790_v23 = vld [vmem:[#allocation2 + $0xd4] sm:$0xf0]  ;;  %v2338_v47 = vor.u32 %v2850_v42, %v2337_v41  ;;  %v2065_v48 = vld [vmem:[#allocation2 + $0x88] sm:$0xf] }
  0x62   : > { %v2638_v18 = vor.u32 %v2923_v4, %v2635_v6  ;;  %v2193_v50 = vld [vmem:[#allocation2 + $0x188] sm:$0xf]  ;;  %v2814_v52 = vld [vmem:[#allocation2 + $0x194] sm:$0xf0] }
  0x63   : > { %1569 = vmatpush.bf16.msra.mxu0 %v2302_v29  ;;  %1583 = vmatpush.bf16.msra.mxu1 %v2430_v31  ;;  %v2481_v29 = vld [vmem:[#allocation2 + $0x3c8] sm:$0xf]  ;;  %v2886_v31 = vld [vmem:[#allocation2 + $0x3d4] sm:$0xf0] }
  0x64   : > { %1597 = vmatpush.bf16.msra.mxu2 %v2558_v32  ;;  %v2098_v32 = vor.u32 %v2790_v23, %v2097_v22  ;;  %v2482_v39 = vor.u32 %v2886_v31, %v2481_v29  ;;  %v2321_v53 = vld [vmem:[#allocation2 + $0x288] sm:$0xf]  ;;  %v2846_v54 = vld [vmem:[#allocation2 + $0x294] sm:$0xf0] }
  0x65   : > { %1611 = vmatpush.bf16.msra.mxu3 %v2686_v37  ;;  %v2786_v37 = vld [vmem:[#allocation2 + $0xb4] sm:$0xf0]  ;;  %v2049_v63 = vld [vmem:[#allocation2 + $0x68] sm:$0xf] }
  0x66   : > { %v2878_v56 = vld [vmem:[#allocation2 + $0x394] sm:$0xf0]  ;;  %v2177_v1 = vld [vmem:[#allocation2 + $0x168] sm:$0xf] }
  0x67   : > { %1570 = vmatpush.bf16.msra.mxu0 %v2286_v43  ;;  %1584 = vmatpush.bf16.msra.mxu1 %v2414_v44  ;;  %v2465_v43 = vld [vmem:[#allocation2 + $0x3a8] sm:$0xf]  ;;  %v2882_v44 = vld [vmem:[#allocation2 + $0x3b4] sm:$0xf0] }
  0x68   : > { %1598 = vmatpush.bf16.msra.mxu2 %v2542_v45  ;;  %v2082_v45 = vor.u32 %v2786_v37, %v2081_v36  ;;  %v2466_v51 = vor.u32 %v2882_v44, %v2465_v43  ;;  %v2778_v0 = vld [vmem:[#allocation2 + $0x74] sm:$0xf0]  ;;  %v2305_v4 = vld [vmem:[#allocation2 + $0x268] sm:$0xf] }
  0x69   : > { %1612 = vmatpush.bf16.msra.mxu3 %v2670_v49  ;;  %v2782_v49 = vld [vmem:[#allocation2 + $0x94] sm:$0xf0]  ;;  %v2433_v7 = vld [vmem:[#allocation2 + $0x368] sm:$0xf]  ;;  %v2050_v9 = vor.u32 %v2778_v0, %v2049_v63 }
  0x6a   : > { %v2066_v59 = vor.u32 %v2782_v49, %v2065_v48  ;;  %v2810_v3 = vld [vmem:[#allocation2 + $0x174] sm:$0xf0]  ;;  %v2033_v12 = vld [vmem:[#allocation2 + $0x48] sm:$0xf] }
  0x6b   : > { %1571 = vmatpush.bf16.msra.mxu0 %v2270_v55  ;;  %1585 = vmatpush.bf16.msra.mxu1 %v2398_v60  ;;  %v2449_v55 = vld [vmem:[#allocation2 + $0x388] sm:$0xf]  ;;  %v2194_v60 = vor.u32 %v2814_v52, %v2193_v50  ;;  %v2842_v6 = vld [vmem:[#allocation2 + $0x274] sm:$0xf0]  ;;  %v2792_v52 = vld [vmem:[#allocation2 + $0xec] sm:$0xf] }
  0x6c   : > { %1599 = vmatpush.bf16.msra.mxu2 %v2526_v62  ;;  %v2322_v62 = vor.u32 %v2846_v54, %v2321_v53  ;;  %v2874_v8 = vld [vmem:[#allocation2 + $0x374] sm:$0xf0]  ;;  %v2306_v11 = vor.u32 %v2842_v6, %v2305_v4  ;;  %v2289_v17 = vld [vmem:[#allocation2 + $0x248] sm:$0xf]  ;;  %v2115_v53 = vld [vmem:[#allocation2 + $0xf8] sm:$0xf0] }
  0x6d   : > { %1613 = vmatpush.bf16.msra.mxu3 %v2654_v2  ;;  %v2450_v2 = vor.u32 %v2878_v56, %v2449_v55  ;;  %v2774_v13 = vld [vmem:[#allocation2 + $0x54] sm:$0xf0]  ;;  %v2017_v24 = vld [vmem:[#allocation2 + $0x28] sm:$0xf]  ;;  %v2824_v56 = vld [vmem:[#allocation2 + $0x1ec] sm:$0xf]  ;;  %v2118_v0 = vor.u32 %v2792_v52, %v2115_v53 }
  0x6e   : > { %v2806_v16 = vld [vmem:[#allocation2 + $0x154] sm:$0xf0]  ;;  %v2145_v26 = vld [vmem:[#allocation2 + $0x128] sm:$0xf] }
  0x6f   : > { %1572 = vmatpush.bf16.msra.mxu0 %v2254_v10  ;;  %1586 = vmatpush.bf16.msra.mxu1 %v2382_v14  ;;  %v2178_v10 = vor.u32 %v2810_v3, %v2177_v1  ;;  %v2161_v14 = vld [vmem:[#allocation2 + $0x148] sm:$0xf]  ;;  %v2802_v28 = vld [vmem:[#allocation2 + $0x134] sm:$0xf0] }
  0x70   : > { %1600 = vmatpush.bf16.msra.mxu2 %v2510_v15  ;;  %v2434_v15 = vor.u32 %v2874_v8, %v2433_v7  ;;  %v2162_v22 = vor.u32 %v2806_v16, %v2161_v14  ;;  %v2273_v29 = vld [vmem:[#allocation2 + $0x228] sm:$0xf]  ;;  %v2834_v31 = vld [vmem:[#allocation2 + $0x234] sm:$0xf0]  ;;  %v2146_v38 = vor.u32 %v2802_v28, %v2145_v26  ;;  %v2788_v7 = vld [vmem:[#allocation2 + $0xcc] sm:$0xf] }
  0x71   : > { %1614 = vmatpush.bf16.msra.mxu3 %v2638_v18  ;;  %v2838_v18 = vld [vmem:[#allocation2 + $0x254] sm:$0xf0]  ;;  %v2001_v36 = vld [vmem:[#allocation2 + $0x8] sm:$0xf]  ;;  %v2099_v8 = vld [vmem:[#allocation2 + $0xd8] sm:$0xf0] }
  0x72   : > { %1573 = vmatmul.bf16.vlgmr.msra.gmra.mxu0 %v3138_v58  ;;  %1587 = vmatmul.bf16.vlgmr.msra.gmra.mxu1 %v3142_v61  ;;  %v2290_v23 = vor.u32 %v2838_v18, %v2289_v17  ;;  %v2766_v37 = vld [vmem:[#allocation2 + $0x14] sm:$0xf0]  ;;  %v2129_v40 = vld [vmem:[#allocation2 + $0x108] sm:$0xf] }
  0x73   : > { %1621 = vmatpush.bf16.msrb.mxu0 %v2114_v19  ;;  %1635 = vmatpush.bf16.msrb.mxu1 %v2242_v20  ;;  %v2417_v19 = vld [vmem:[#allocation2 + $0x348] sm:$0xf]  ;;  %v2870_v20 = vld [vmem:[#allocation2 + $0x354] sm:$0xf0]  ;;  %v2002_v50 = vor.u32 %v2766_v37, %v2001_v36  ;;  %v2195_v36 = vld [vmem:[#allocation2 + $0x198] sm:$0xf0] }
  0x74   : > { %1649 = vmatpush.bf16.msrb.mxu2 %v2370_v21  ;;  %1615 = vmatmul.bf16.vlgmr.msra.gmra.mxu3 %v3153_v35  ;;  %v2034_v21 = vor.u32 %v2774_v13, %v2033_v12  ;;  %v2418_v27 = vor.u32 %v2870_v20, %v2417_v19  ;;  %v2798_v41 = vld [vmem:[#allocation2 + $0x114] sm:$0xf0]  ;;  %v2257_v42 = vld [vmem:[#allocation2 + $0x208] sm:$0xf]  ;;  %v2102_v13 = vor.u32 %v2788_v7, %v2099_v8  ;;  %v2784_v19 = vld [vmem:[#allocation2 + $0xac] sm:$0xf] }
  0x75   : > { %1663 = vmatpush.bf16.msrb.mxu3 %v2498_v25  ;;  %1601 = vmatmul.bf16.vlgmr.msra.gmra.mxu2 %v3150_v30  ;;  %v2770_v25 = vld [vmem:[#allocation2 + $0x34] sm:$0xf0]  ;;  %v2753_v49 = vld [vmem:[#allocation2 + $0x5e8] sm:$0xf]  ;;  %v2130_v54 = vor.u32 %v2798_v41, %v2129_v40  ;;  %v2083_v20 = vld [vmem:[#allocation2 + $0xb8] sm:$0xf0] }
  0x76   : > { %v2830_v44 = vld [vmem:[#allocation2 + $0x214] sm:$0xf0]  ;;  %v2609_v1 = vld [vmem:[#allocation2 + $0x4c8] sm:$0xf] }
  0x77   : > { %1622 = vmatpush.bf16.msrb.mxu0 %v2098_v32  ;;  %1636 = vmatpush.bf16.msrb.mxu1 %v2226_v33  ;;  %v2401_v32 = vld [vmem:[#allocation2 + $0x328] sm:$0xf]  ;;  %v2866_v33 = vld [vmem:[#allocation2 + $0x334] sm:$0xf0]  ;;  %v2258_v55 = vor.u32 %v2830_v44, %v2257_v42 }
  0x78   : > { %1650 = vmatpush.bf16.msrb.mxu2 %v2354_v34  ;;  %v2018_v34 = vor.u32 %v2770_v25, %v2017_v24  ;;  %v2402_v43 = vor.u32 %v2866_v33, %v2401_v32  ;;  %v2922_v48 = vld [vmem:[#allocation2 + $0x4f4] sm:$0xf0]  ;;  %v2737_v3 = vld [vmem:[#allocation2 + $0x5c8] sm:$0xf]  ;;  %v2086_v25 = vor.u32 %v2784_v19, %v2083_v20  ;;  %v2780_v32 = vld [vmem:[#allocation2 + $0x8c] sm:$0xf] }
  0x79   : > { %1664 = vmatpush.bf16.msrb.mxu3 %v2482_v39  ;;  %v2274_v39 = vor.u32 %v2834_v31, %v2273_v29  ;;  %v2950_v6 = vld [vmem:[#allocation2 + $0x5d4] sm:$0xf0]  ;;  %v2593_v14 = vld [vmem:[#allocation2 + $0x4a8] sm:$0xf]  ;;  %v2067_v33 = vld [vmem:[#allocation2 + $0x98] sm:$0xf0] }
  0x7a   : > { %v2738_v12 = vor.u32 %v2950_v6, %v2737_v3  ;;  %v2721_v16 = vld [vmem:[#allocation2 + $0x5a8] sm:$0xf]  ;;  %v2946_v18 = vld [vmem:[#allocation2 + $0x5b4] sm:$0xf0]  ;;  %v2764_v20 = vld [vmem:[#allocation2 + $0xc] sm:$0xf] }
  0x7b   : > { %1623 = vmatpush.bf16.msrb.mxu0 %v2082_v45  ;;  %1637 = vmatpush.bf16.msrb.mxu1 %v2210_v46  ;;  %v2385_v45 = vld [vmem:[#allocation2 + $0x308] sm:$0xf]  ;;  %v2862_v46 = vld [vmem:[#allocation2 + $0x314] sm:$0xf0]  ;;  %v2722_v24 = vor.u32 %v2946_v18, %v2721_v16 }
  0x7c   : > { %1651 = vmatpush.bf16.msrb.mxu2 %v2338_v47  ;;  %v2625_v47 = vld [vmem:[#allocation2 + $0x4e8] sm:$0xf]  ;;  %v2942_v31 = vld [vmem:[#allocation2 + $0x594] sm:$0xf0] }
  0x7d   : > { %1665 = vmatpush.bf16.msrb.mxu3 %v2466_v51  ;;  %v2954_v51 = vld [vmem:[#allocation2 + $0x5f4] sm:$0xf0]  ;;  %v2577_v26 = vld [vmem:[#allocation2 + $0x488] sm:$0xf] }
  0x7e   : > { %v2754_v63 = vor.u32 %v2954_v51, %v2753_v49  ;;  %v2705_v28 = vld [vmem:[#allocation2 + $0x588] sm:$0xf]  ;;  %v2906_v41 = vld [vmem:[#allocation2 + $0x474] sm:$0xf0] }
  0x7f   : > { %1624 = vmatpush.bf16.msrb.mxu0 %v2066_v59  ;;  %1638 = vmatpush.bf16.msrb.mxu1 %v2194_v60  ;;  %v2243_v59 = vld [vmem:[#allocation2 + $0x1f8] sm:$0xf0]  ;;  %v2386_v60 = vor.u32 %v2862_v46, %v2385_v45  ;;  %v2561_v40 = vld [vmem:[#allocation2 + $0x468] sm:$0xf]  ;;  %v2938_v44 = vld [vmem:[#allocation2 + $0x574] sm:$0xf0] }
  0x80   : > { %1652 = vmatpush.bf16.msrb.mxu2 %v2322_v62  ;;  %v2626_v62 = vor.u32 %v2922_v48, %v2625_v47  ;;  %v2246_v4 = vor.u32 %v2824_v56, %v2243_v59  ;;  %v2689_v42 = vld [vmem:[#allocation2 + $0x568] sm:$0xf]  ;;  %v2776_v45 = vld [vmem:[#allocation2 + $0x6c] sm:$0xf]  ;;  %v2051_v46 = vld [vmem:[#allocation2 + $0x78] sm:$0xf0]  ;;  %v2562_v49 = vor.u32 %v2906_v41, %v2561_v40 }
  0x81   : > { %1666 = vmatpush.bf16.msrb.mxu3 %v2450_v2  ;;  %v2918_v2 = vld [vmem:[#allocation2 + $0x4d4] sm:$0xf0]  ;;  %v2808_v47 = vld [vmem:[#allocation2 + $0x16c] sm:$0xf]  ;;  %v2179_v48 = vld [vmem:[#allocation2 + $0x178] sm:$0xf0]  ;;  %v2054_v51 = vor.u32 %v2776_v45, %v2051_v46 }
  0x82   : > { %v2545_v52 = vld [vmem:[#allocation2 + $0x448] sm:$0xf]  ;;  %v2902_v53 = vld [vmem:[#allocation2 + $0x454] sm:$0xf0]  ;;  %v2772_v59 = vld [vmem:[#allocation2 + $0x4c] sm:$0xf] }
  0x83   : > { %1625 = vmatpush.bf16.msrb.mxu0 %v2050_v9  ;;  %1639 = vmatpush.bf16.msrb.mxu1 %v2178_v10  ;;  %v2820_v9 = vld [vmem:[#allocation2 + $0x1cc] sm:$0xf]  ;;  %v2227_v10 = vld [vmem:[#allocation2 + $0x1d8] sm:$0xf0]  ;;  %v2934_v56 = vld [vmem:[#allocation2 + $0x554] sm:$0xf0] }
  0x84   : > { %1653 = vmatpush.bf16.msrb.mxu2 %v2306_v11  ;;  %v2610_v11 = vor.u32 %v2918_v2, %v2609_v1  ;;  %v2230_v17 = vor.u32 %v2820_v9, %v2227_v10  ;;  %v2529_v3 = vld [vmem:[#allocation2 + $0x428] sm:$0xf]  ;;  %v2930_v8 = vld [vmem:[#allocation2 + $0x534] sm:$0xf0]  ;;  %v2768_v9 = vld [vmem:[#allocation2 + $0x2c] sm:$0xf] }
  0x85   : > { %1667 = vmatpush.bf16.msrb.mxu3 %v2434_v15  ;;  %v2914_v15 = vld [vmem:[#allocation2 + $0x4b4] sm:$0xf0]  ;;  %v2657_v6 = vld [vmem:[#allocation2 + $0x528] sm:$0xf]  ;;  %v2019_v10 = vld [vmem:[#allocation2 + $0x38] sm:$0xf0] }
  0x86   : > { %v2658_v16 = vor.u32 %v2930_v8, %v2657_v6  ;;  %v2641_v18 = vld [vmem:[#allocation2 + $0x508] sm:$0xf]  ;;  %v2926_v19 = vld [vmem:[#allocation2 + $0x514] sm:$0xf0]  ;;  %v2483_v46 = vld [vmem:[#allocation2 + $0x3d8] sm:$0xf0] }
  0x87   : > { %1626 = vmatpush.bf16.msrb.mxu0 %v2034_v21  ;;  %1640 = vmatpush.bf16.msrb.mxu1 %v2162_v22  ;;  %v2816_v21 = vld [vmem:[#allocation2 + $0x1ac] sm:$0xf]  ;;  %v2211_v22 = vld [vmem:[#allocation2 + $0x1b8] sm:$0xf0] }
  0x88   : > { %1654 = vmatpush.bf16.msrb.mxu2 %v2290_v23  ;;  %v2594_v23 = vor.u32 %v2914_v15, %v2593_v14  ;;  %v2214_v29 = vor.u32 %v2816_v21, %v2211_v22  ;;  %v2513_v14 = vld [vmem:[#allocation2 + $0x408] sm:$0xf]  ;;  %v2894_v15 = vld [vmem:[#allocation2 + $0x414] sm:$0xf0]  ;;  %v2003_v22 = vld [vmem:[#allocation2 + $0x18] sm:$0xf0] }
  0x89   : > { %1668 = vmatpush.bf16.msrb.mxu3 %v2418_v27  ;;  %v2910_v27 = vld [vmem:[#allocation2 + $0x494] sm:$0xf0]  ;;  %v2844_v8 = vld [vmem:[#allocation2 + $0x28c] sm:$0xf] }
  0x8a   : > { %v2578_v37 = vor.u32 %v2910_v27, %v2577_v26  ;;  %v2371_v26 = vld [vmem:[#allocation2 + $0x2f8] sm:$0xf0]  ;;  %v2888_v27 = vld [vmem:[#allocation2 + $0x3ec] sm:$0xf] }
  0x8b   : > { %1627 = vmatpush.bf16.msrb.mxu0 %v2018_v34  ;;  %1641 = vmatpush.bf16.msrb.mxu1 %v2146_v38  ;;  %v2812_v34 = vld [vmem:[#allocation2 + $0x18c] sm:$0xf]  ;;  %v2706_v38 = vor.u32 %v2942_v31, %v2705_v28  ;;  %v2514_v28 = vor.u32 %v2894_v15, %v2513_v14  ;;  %v2707_v15 = vld [vmem:[#allocation2 + $0x598] sm:$0xf0] }
  0x8c   : > { %1655 = vmatpush.bf16.msrb.mxu2 %v2274_v39  ;;  %v2070_v39 = vor.u32 %v2780_v32, %v2067_v33  ;;  %v2920_v31 = vld [vmem:[#allocation2 + $0x4ec] sm:$0xf]  ;;  %v2627_v32 = vld [vmem:[#allocation2 + $0x4f8] sm:$0xf0]  ;;  %v2642_v33 = vor.u32 %v2926_v19, %v2641_v18 }
  0x8d   : > { %1669 = vmatpush.bf16.msrb.mxu3 %v2402_v43  ;;  %v2198_v43 = vor.u32 %v2812_v34, %v2195_v36  ;;  %v2006_v34 = vor.u32 %v2764_v20, %v2003_v22  ;;  %v2952_v36 = vld [vmem:[#allocation2 + $0x5ec] sm:$0xf]  ;;  %v2630_v41 = vor.u32 %v2920_v31, %v2627_v32 }
  0x8e   : > { %v2940_v14 = vld [vmem:[#allocation2 + $0x58c] sm:$0xf] }
  0x8f   : > { %1628 = vmatpush.bf16.msrb.mxu0 %v2002_v50  ;;  %1642 = vmatpush.bf16.msrb.mxu1 %v2130_v54  ;;  %v2690_v50 = vor.u32 %v2938_v44, %v2689_v42  ;;  %v2673_v54 = vld [vmem:[#allocation2 + $0x548] sm:$0xf]  ;;  %v2852_v42 = vld [vmem:[#allocation2 + $0x2cc] sm:$0xf] }
  0x90   : > { %1656 = vmatpush.bf16.msrb.mxu2 %v2258_v55  ;;  %v2182_v55 = vor.u32 %v2808_v47, %v2179_v48  ;;  %v2674_v1 = vor.u32 %v2934_v56, %v2673_v54  ;;  %v2884_v44 = vld [vmem:[#allocation2 + $0x3cc] sm:$0xf]  ;;  %v2611_v48 = vld [vmem:[#allocation2 + $0x4d8] sm:$0xf0] }
  0x91   : > { %1670 = vmatpush.bf16.msrb.mxu3 %v2386_v60  ;;  %v2035_v60 = vld [vmem:[#allocation2 + $0x58] sm:$0xf0]  ;;  %v2916_v47 = vld [vmem:[#allocation2 + $0x4cc] sm:$0xf] }
  0x92   : > { %1629 = vmatmul.bf16.vlgmr.msrb.gmra.mxu0 %v3118_v57  ;;  %1643 = vmatmul.bf16.vlgmr.msrb.gmra.mxu1 %v3123_v5  ;;  %v2038_v2 = vor.u32 %v2772_v59, %v2035_v60  ;;  %v2614_v54 = vor.u32 %v2916_v47, %v2611_v48  ;;  %v2880_v56 = vld [vmem:[#allocation2 + $0x3ac] sm:$0xf]  ;;  %v3170_v59 = vld [vmem:[%s3225_s2] sm:$0xf] }
  0x93   : > { %1677 = vmatpush.bf16.msra.mxu0 %v2626_v62  ;;  %1691 = vmatpush.bf16.msra.mxu1 %v2754_v63  ;;  %v2804_v62 = vld [vmem:[#allocation2 + $0x14c] sm:$0xf]  ;;  %v2163_v63 = vld [vmem:[#allocation2 + $0x158] sm:$0xf0] }
  0x94   : > { %1705 = vmatpush.bf16.msra.mxu2 %v2118_v0  ;;  %1671 = vmatmul.bf16.vlgmr.msrb.gmra.mxu3 %v3142_v61  ;;  %v2546_v0 = vor.u32 %v2902_v53, %v2545_v52  ;;  %v2166_v7 = vor.u32 %v2804_v62, %v2163_v63  ;;  %v2848_v52 = vld [vmem:[#allocation2 + $0x2ac] sm:$0xf]  ;;  %v2486_v53 = vor.u32 %v2884_v44, %v2483_v46  ;;  %v2467_v62 = vld [vmem:[#allocation2 + $0x3b8] sm:$0xf0] }
  0x95   : > { %1719 = vmatpush.bf16.msra.mxu3 %v2246_v4  ;;  %1657 = vmatmul.bf16.vlgmr.msrb.gmra.mxu2 %v3138_v58  ;;  %v2898_v4 = vld [vmem:[#allocation2 + $0x434] sm:$0xf0]  ;;  %v2912_v63 = vld [vmem:[#allocation2 + $0x4ac] sm:$0xf]  ;;  %v2470_v6 = vor.u32 %v2880_v56, %v2467_v62  ;;  %v2675_v44 = vld [vmem:[#allocation2 + $0x558] sm:$0xf0] }
  0x96   : > { %v2840_v20 = vld [vmem:[#allocation2 + $0x26c] sm:$0xf]  ;;  %v2531_v56 = vld [vmem:[#allocation2 + $0x438] sm:$0xf0] }
  0x97   : > { %1678 = vmatpush.bf16.msra.mxu0 %v2610_v11  ;;  %1692 = vmatpush.bf16.msra.mxu1 %v2738_v12  ;;  %v2800_v11 = vld [vmem:[#allocation2 + $0x12c] sm:$0xf]  ;;  %v2147_v12 = vld [vmem:[#allocation2 + $0x138] sm:$0xf0] }
  0x98   : > { %1706 = vmatpush.bf16.msra.mxu2 %v2102_v13  ;;  %v2530_v13 = vor.u32 %v2898_v4, %v2529_v3  ;;  %v2150_v21 = vor.u32 %v2800_v11, %v2147_v12  ;;  %v485_v4 = vperm.slane %v3170_v59, 0  ;;  %v2451_v12 = vld [vmem:[#allocation2 + $0x398] sm:$0xf0]  ;;  %v2872_v22 = vld [vmem:[#allocation2 + $0x36c] sm:$0xf] }
  0x99   : > { %1720 = vmatpush.bf16.msra.mxu3 %v2230_v17  ;;  %v2022_v17 = vor.u32 %v2768_v9, %v2019_v10  ;;  %v2323_v9 = vld [vmem:[#allocation2 + $0x298] sm:$0xf0]  ;;  %v2876_v10 = vld [vmem:[#allocation2 + $0x38c] sm:$0xf] }
  0x9a   : > { %v2454_v18 = vor.u32 %v2876_v10, %v2451_v12  ;;  %v2659_v62 = vld [vmem:[#allocation2 + $0x538] sm:$0xf0]  ;;  %v2892_v10 = vld [vmem:[#allocation2 + $0x40c] sm:$0xf] }
  0x9b   : > { %1679 = vmatpush.bf16.msra.mxu0 %v2594_v23  ;;  %1693 = vmatpush.bf16.msra.mxu1 %v2722_v24  ;;  %v2796_v23 = vld [vmem:[#allocation2 + $0x10c] sm:$0xf]  ;;  %v2131_v24 = vld [vmem:[#allocation2 + $0x118] sm:$0xf0] }
  0x9c   : > { %1707 = vmatpush.bf16.msra.mxu2 %v2086_v25  ;;  %v2856_v25 = vld [vmem:[#allocation2 + $0x2ec] sm:$0xf] }
  0x9d   : > { %1721 = vmatpush.bf16.msra.mxu3 %v2214_v29  ;;  %v2499_v29 = vld [vmem:[#allocation2 + $0x3f8] sm:$0xf0]  ;;  %v2924_v12 = vld [vmem:[#allocation2 + $0x50c] sm:$0xf] }
  0x9e   : > { %v2502_v40 = vor.u32 %v2888_v27, %v2499_v29  ;;  %v2936_v27 = vld [vmem:[#allocation2 + $0x56c] sm:$0xf] }
  0x9f   : > { %1680 = vmatpush.bf16.msra.mxu0 %v2578_v37  ;;  %1694 = vmatpush.bf16.msra.mxu1 %v2706_v38  ;;  %v2755_v37 = vld [vmem:[#allocation2 + $0x5f8] sm:$0xf0]  ;;  %v2134_v38 = vor.u32 %v2796_v23, %v2131_v24  ;;  %v2710_v23 = vor.u32 %v2940_v14, %v2707_v15 }
  0xa0   : > { %1708 = vmatpush.bf16.msra.mxu2 %v2070_v39  ;;  %v2374_v39 = vor.u32 %v2856_v25, %v2371_v26  ;;  %v2758_v45 = vor.u32 %v2952_v36, %v2755_v37  ;;  %v2435_v24 = vld [vmem:[#allocation2 + $0x378] sm:$0xf0]  ;;  %v2904_v25 = vld [vmem:[#allocation2 + $0x46c] sm:$0xf] }
  0xa1   : > { %1722 = vmatpush.bf16.msra.mxu3 %v2198_v43  ;;  %v2355_v43 = vld [vmem:[#allocation2 + $0x2d8] sm:$0xf0]  ;;  %v2836_v36 = vld [vmem:[#allocation2 + $0x24c] sm:$0xf] }
  0xa2   : > { %v2563_v26 = vld [vmem:[#allocation2 + $0x478] sm:$0xf0] }
  0xa3   : > { %1681 = vmatpush.bf16.msra.mxu0 %v2562_v49  ;;  %1695 = vmatpush.bf16.msra.mxu1 %v2690_v50  ;;  %v2948_v49 = vld [vmem:[#allocation2 + $0x5cc] sm:$0xf]  ;;  %v2739_v50 = vld [vmem:[#allocation2 + $0x5d8] sm:$0xf0] }
  0xa4   : > { %1709 = vmatpush.bf16.msra.mxu2 %v2054_v51  ;;  %v2358_v51 = vor.u32 %v2852_v42, %v2355_v43  ;;  %v2742_v60 = vor.u32 %v2948_v49, %v2739_v50  ;;  %v2291_v37 = vld [vmem:[#allocation2 + $0x258] sm:$0xf0]  ;;  %v2932_v43 = vld [vmem:[#allocation2 + $0x54c] sm:$0xf] }
  0xa5   : > { %1723 = vmatpush.bf16.msra.mxu3 %v2182_v55  ;;  %v2339_v55 = vld [vmem:[#allocation2 + $0x2b8] sm:$0xf0]  ;;  %v2294_v46 = vor.u32 %v2836_v36, %v2291_v37  ;;  %v2832_v50 = vld [vmem:[#allocation2 + $0x22c] sm:$0xf] }
  0xa6   : > { %v2342_v3 = vor.u32 %v2848_v52, %v2339_v55  ;;  %v2547_v42 = vld [vmem:[#allocation2 + $0x458] sm:$0xf0]  ;;  %v2864_v52 = vld [vmem:[#allocation2 + $0x32c] sm:$0xf] }
  0xa7   : > { %1682 = vmatpush.bf16.msra.mxu0 %v2546_v0  ;;  %1696 = vmatpush.bf16.msra.mxu1 %v2674_v1  ;;  %v2595_v0 = vld [vmem:[#allocation2 + $0x4b8] sm:$0xf0]  ;;  %v2944_v1 = vld [vmem:[#allocation2 + $0x5ac] sm:$0xf] }
  0xa8   : > { %1710 = vmatpush.bf16.msra.mxu2 %v2038_v2  ;;  %v2723_v2 = vld [vmem:[#allocation2 + $0x5b8] sm:$0xf0]  ;;  %v2896_v55 = vld [vmem:[#allocation2 + $0x42c] sm:$0xf] }
  0xa9   : > { %1724 = vmatpush.bf16.msra.mxu3 %v2166_v7  ;;  %v2598_v7 = vor.u32 %v2912_v63, %v2595_v0  ;;  %v2726_v11 = vor.u32 %v2944_v1, %v2723_v2 }
  0xab   : > { %1683 = vmatpush.bf16.msra.mxu0 %v2530_v13  ;;  %1697 = vmatpush.bf16.msra.mxu1 %v2658_v16  ;;  %v2908_v13 = vld [vmem:[#allocation2 + $0x48c] sm:$0xf] }
  0xac   : > { %1711 = vmatpush.bf16.msra.mxu2 %v2022_v17  ;;  %v2326_v17 = vor.u32 %v2844_v8, %v2323_v9  ;;  %v2387_v9 = vld [vmem:[#allocation2 + $0x318] sm:$0xf0] }
  0xad   : > { %1725 = vmatpush.bf16.msra.mxu3 %v2150_v21  ;;  %v2307_v21 = vld [vmem:[#allocation2 + $0x278] sm:$0xf0] }
  0xae   : > { %v2310_v31 = vor.u32 %v2840_v20, %v2307_v21 }
  0xaf   : > { %1684 = vmatpush.bf16.msra.mxu0 %v2514_v28  ;;  %1698 = vmatpush.bf16.msra.mxu1 %v2642_v33  ;;  %v2691_v28 = vld [vmem:[#allocation2 + $0x578] sm:$0xf0]  ;;  %v1476_v29 = vpop.f32.mrf.mxu1  ;;  %v2438_v33 = vor.u32 %v2872_v22, %v2435_v24 }
  0xb0   : > { %1712 = vmatpush.bf16.msra.mxu2 %v2006_v34  ;;  %v2566_v34 = vor.u32 %v2904_v25, %v2563_v26 }
  0xb1   : > { %1726 = vmatpush.bf16.msra.mxu3 %v2134_v38  ;;  %v2868_v38 = vld [vmem:[#allocation2 + $0x34c] sm:$0xf] }
  0xb2   : > { %1685 = vmatmul.bf16.vlgmr.msra.gmra.mxu0 %v3150_v30  ;;  %1699 = vmatmul.bf16.vlgmr.msra.gmra.mxu1 %v3153_v35 }
  0xb3   : > { %1733 = vmatpush.bf16.msrb.mxu0 %v2374_v39  ;;  %1747 = vmatpush.bf16.msrb.mxu1 %v2502_v40  ;;  %v1462_v16 = vpop.f32.mrf.mxu0  ;;  %v2694_v39 = vor.u32 %v2936_v27, %v2691_v28  ;;  %v2419_v40 = vld [vmem:[#allocation2 + $0x358] sm:$0xf0]  ;;  %v486_v28 = vperm.slane %v3170_v59, 1 }
  0xb4   : > { %1761 = vmatpush.bf16.msrb.mxu2 %v2630_v41  ;;  %1727 = vmatmul.bf16.vlgmr.msra.gmra.mxu3 %v3123_v5  ;;  %v1463_v5 = vadd.f32 %v1462_v16, %v485_v4  ;;  %v2900_v41 = vld [vmem:[#allocation2 + $0x44c] sm:$0xf]  ;;  %v2422_v48 = vor.u32 %v2868_v38, %v2419_v40 }
  0xb5   : > { %1775 = vmatpush.bf16.msrb.mxu3 %v2758_v45  ;;  %1713 = vmatmul.bf16.vlgmr.msra.gmra.mxu2 %v3118_v57  ;;  %v2579_v57 = vld [vmem:[#allocation2 + $0x498] sm:$0xf0]  ;;  %v2550_v49 = vor.u32 %v2900_v41, %v2547_v42 }
  0xb6   : > { %v2582_v19 = vor.u32 %v2908_v13, %v2579_v57  ;;  %v1477_v32 = vadd.f32 %v1476_v29, %v1463_v5  ;;  %v2643_v13 = vld [vmem:[#allocation2 + $0x518] sm:$0xf0] }
  0xb7   : > { %1734 = vmatpush.bf16.msrb.mxu0 %v2358_v51  ;;  %1748 = vmatpush.bf16.msrb.mxu1 %v2486_v53  ;;  %v2275_v51 = vld [vmem:[#allocation2 + $0x238] sm:$0xf0]  ;;  %v2678_v53 = vor.u32 %v2932_v43, %v2675_v44  ;;  %v1478_v63 = vpop.f32.mrf.mxu1  ;;  %v2646_v16 = vor.u32 %v2924_v12, %v2643_v13 }
  0xb8   : > { %1762 = vmatpush.bf16.msrb.mxu2 %v2614_v54  ;;  %v2403_v54 = vld [vmem:[#allocation2 + $0x338] sm:$0xf0]  ;;  %v2278_v0 = vor.u32 %v2832_v50, %v2275_v51 }
  0xb9   : > { %1776 = vmatpush.bf16.msrb.mxu3 %v2742_v60  ;;  %v2928_v60 = vld [vmem:[#allocation2 + $0x52c] sm:$0xf]  ;;  %v2406_v2 = vor.u32 %v2864_v52, %v2403_v54 }
  0xba   : > { %v2662_v8 = vor.u32 %v2928_v60, %v2659_v62 }
  0xbb   : > { %1735 = vmatpush.bf16.msrb.mxu0 %v2342_v3  ;;  %1749 = vmatpush.bf16.msrb.mxu1 %v2470_v6  ;;  %v1464_v45 = vpop.f32.mrf.mxu0  ;;  %v2534_v3 = vor.u32 %v2896_v55, %v2531_v56  ;;  %v2259_v6 = vld [vmem:[#allocation2 + $0x218] sm:$0xf0] }
  0xbc   : > { %1763 = vmatpush.bf16.msrb.mxu2 %v2598_v7  ;;  %v1465_v47 = vadd.f32 %v1464_v45, %v485_v4  ;;  %v2828_v4 = vld [vmem:[#allocation2 + $0x20c] sm:$0xf] }
  0xbd   : > { %1777 = vmatpush.bf16.msrb.mxu3 %v2726_v11  ;;  %v2860_v7 = vld [vmem:[#allocation2 + $0x30c] sm:$0xf]  ;;  %v2515_v11 = vld [vmem:[#allocation2 + $0x418] sm:$0xf0]  ;;  %v2262_v57 = vor.u32 %v2828_v4, %v2259_v6 }
  0xbe   : > { %v1479_v1 = vadd.f32 %v1478_v63, %v1465_v47  ;;  %v2390_v14 = vor.u32 %v2860_v7, %v2387_v9  ;;  %v2518_v15 = vor.u32 %v2892_v10, %v2515_v11 }
  0xbf   : > { %1736 = vmatpush.bf16.msrb.mxu0 %v2326_v17  ;;  %1750 = vmatpush.bf16.msrb.mxu1 %v2454_v18 }
  0xc0   : > { %1764 = vmatpush.bf16.msrb.mxu2 %v2582_v19 }
  0xc1   : > { %1778 = vmatpush.bf16.msrb.mxu3 %v2710_v23 }
  0xc3   : > { %1737 = vmatpush.bf16.msrb.mxu0 %v2310_v31  ;;  %1751 = vmatpush.bf16.msrb.mxu1 %v2438_v33 }
  0xc4   : > { %1765 = vmatpush.bf16.msrb.mxu2 %v2566_v34  ;;  %v1490_v17 = vpop.f32.mrf.mxu2 }
  0xc5   : > { %1779 = vmatpush.bf16.msrb.mxu3 %v2694_v39  ;;  %v1491_v5 = vadd.f32 %v1490_v17, %v1477_v32  ;;  %v1504_v18 = vpop.f32.mrf.mxu3 }
  0xc7   : > { %1738 = vmatpush.bf16.msrb.mxu0 %v2294_v46  ;;  %1752 = vmatpush.bf16.msrb.mxu1 %v2422_v48  ;;  %v1505_v19 = vadd.f32 %v1504_v18, %v1491_v5  ;;  %v3057_v46 = vmov 16.0  }
  0xc8   : > { %1766 = vmatpush.bf16.msrb.mxu2 %v2550_v49  ;;  %2994 = vrcp.f32 %v3057_v46 }
  0xc9   : > { %1780 = vmatpush.bf16.msrb.mxu3 %v2678_v53 }
  0xcb   : > { %1739 = vmatpush.bf16.msrb.mxu0 %v2278_v0  ;;  %1753 = vmatpush.bf16.msrb.mxu1 %v2406_v2 }
  0xcc   : > { %1767 = vmatpush.bf16.msrb.mxu2 %v2534_v3  ;;  %v1492_v20 = vpop.f32.mrf.mxu2 }
  0xcd   : > { %1781 = vmatpush.bf16.msrb.mxu3 %v2662_v8  ;;  %v1493_v21 = vadd.f32 %v1492_v20, %v1479_v1  ;;  %v1506_v22 = vpop.f32.mrf.mxu3 }
  0xce   : > { %v2995_v54 = vpop.eup %2994 }
  0xcf   : > { %1740 = vmatpush.bf16.msrb.mxu0 %v2262_v57  ;;  %1754 = vmatpush.bf16.msrb.mxu1 %v2390_v14  ;;  %v1518_v23 = vpop.f32.mrf.mxu0  ;;  %v1507_v24 = vadd.f32 %v1506_v22, %v1493_v21  ;;  %v1532_v26 = vpop.f32.mrf.mxu1  ;;  %v1826_v1 = vmul.f32 16.0, %v2995_v54  ;;  %vm1830_vm2 = vweird.f32 %v2995_v54 }
  0xd0   : > { %1768 = vmatpush.bf16.msrb.mxu2 %v2518_v15  ;;  %v1519_v25 = vadd.f32 %v1518_v23, %v1505_v19 }
  0xd1   : > { %1782 = vmatpush.bf16.msrb.mxu3 %v2646_v16  ;;  %v1827_v7 = vsub.f32 1.0, %v1826_v1 }
  0xd2   : > { %1741 = vmatmul.bf16.vlgmr.msrb.gmra.mxu0 %v3138_v58  ;;  %1755 = vmatmul.bf16.vlgmr.msrb.gmra.mxu1 %v3142_v61  ;;  %v1533_v27 = vadd.f32 %v1532_v26, %v1519_v25 }
  0xd3   : > { %1769 = vmatmul.bf16.vlgmr.msrb.gmra.mxu2 %v3150_v30  ;;  %v1828_v11 = vmul.f32 %v2995_v54, %v1827_v7 }
  0xd4   : > { %1783 = vmatmul.bf16.vlgmr.msrb.gmra.mxu3 %v3153_v35  ;;  %v1789_v30 = vmax.f32 %v1533_v27, 0.0 }
  0xd5   : > { %v1829_v14 = vadd.f32 %v2995_v54, %v1828_v11 }
  0xd7   : > { %v1520_v31 = vpop.f32.mrf.mxu0  ;;  %v1534_v33 = vpop.f32.mrf.mxu1  ;;  %v3182_v5 = vsel %vm1830_vm2, %v2995_v54, %v1829_v14  ;;  %vm1868_vm2 = vmor %vm1867_vm0, %vm1864_vm15 }
  0xd8   : > { %v1546_v29 = vpop.f32.mrf.mxu2  ;;  %v1521_v58 = vadd.f32 %v1520_v31, %v1507_v24  ;;  %v1560_v61 = vpop.f32.mrf.mxu3 }
  0xd9   : > { %v1547_v32 = vadd.f32 %v1546_v29, %v486_v28 }
  0xda   : > { %v1535_v36 = vadd.f32 %v1534_v33, %v1521_v58 }
  0xdb   : > { %v1561_v34 = vadd.f32 %v1560_v61, %v1547_v32 }
  0xdc   : > { %v1793_v35 = vmax.f32 %v1535_v36, 0.0 }
  0xde   : > { %v1797_v37 = vadd.f32 %v1793_v35, %v1789_v30 }
  0xe0   : > { %v1548_v38 = vpop.f32.mrf.mxu2  ;;  %v1562_v39 = vpop.f32.mrf.mxu3  ;;  %v1798_v52 = vrot.slane %v1797_v37, 4 }
  0xe1   : > { %v1549_v42 = vadd.f32 %v1548_v38, %v486_v28  ;;  %v487_v28 = vperm.slane %v3170_v59, 2 }
  0xe2   : > { %v1799_v60 = vadd.f32 %v1798_v52, %v1797_v37 }
  0xe3   : > { %v1563_v44 = vadd.f32 %v1562_v39, %v1549_v42 }
  0xe4   : > { %v1800_v3 = vrot.slane %v1799_v60, 2 }
  0xe6   : > { %v1801_v9 = vadd.f32 %v1800_v3, %v1799_v60 }
  0xe8   : > { %v1802_v13 = vrot.slane %v1801_v9, 1 }
  0xea   : > { %v1803_v16 = vadd.f32 %v1802_v13, %v1801_v9 }
  0xec   : > { %v1832_v19 = vmul.f32 %v3182_v5, %v1803_v16 }
  0xef   : > { %v1574_v40 = vpop.f32.mrf.mxu0  ;;  %v1588_v41 = vpop.f32.mrf.mxu1 }
  0xf0   : > { %v1575_v43 = vadd.f32 %v1574_v40, %v1561_v34 }
  0xf2   : > { %v1589_v47 = vadd.f32 %v1588_v41, %v1575_v43 }
  0xf7   : > { %v1576_v48 = vpop.f32.mrf.mxu0  ;;  %v1616_v49 = vpop.f32.mrf.mxu3 }
  0xf8   : > { %v1602_v45 = vpop.f32.mrf.mxu2  ;;  %v1577_v50 = vadd.f32 %v1576_v48, %v1563_v44  ;;  %v1590_v51 = vpop.f32.mrf.mxu1 }
  0xf9   : > { %v1603_v53 = vadd.f32 %v1602_v45, %v1589_v47  ;;  %v488_v45 = vperm.slane %v3170_v59, 3 }
  0xfa   : > { %v1591_v55 = vadd.f32 %v1590_v51, %v1577_v50 }
  0xfb   : > { %v1617_v62 = vadd.f32 %v1616_v49, %v1603_v53 }
  0xfd   : > { %v1790_v4 = vmax.f32 %v1617_v62, 0.0 }
  0xff   : > { %v1618_v0 = vpop.f32.mrf.mxu3 }
 0x100   : > { %v1604_v56 = vpop.f32.mrf.mxu2 }
 0x101   : > { %v1605_v63 = vadd.f32 %v1604_v56, %v1591_v55 }
 0x103   : > { %v1619_v2 = vadd.f32 %v1618_v0, %v1605_v63 }
 0x105   : > { %v1794_v6 = vmax.f32 %v1619_v2, 0.0 }
 0x107   : > { %v1804_v8 = vadd.f32 %v1794_v6, %v1790_v4 }
 0x109   : > { %v1805_v10 = vrot.slane %v1804_v8, 4 }
 0x10b   : > { %v1806_v12 = vadd.f32 %v1805_v10, %v1804_v8 }
 0x10d   : > { %v1807_v57 = vrot.slane %v1806_v12, 2 }
 0x10f   : > { %v1808_v15 = vadd.f32 %v1807_v57, %v1806_v12  ;;  %v1630_v22 = vpop.f32.mrf.mxu0  ;;  %v1644_v23 = vpop.f32.mrf.mxu1 }
 0x110   : > { %v1631_v31 = vadd.f32 %v1630_v22, %v487_v28 }
 0x111   : > { %v1809_v17 = vrot.slane %v1808_v15, 1 }
 0x112   : > { %v1645_v61 = vadd.f32 %v1644_v23, %v1631_v31 }
 0x113   : > { %v1810_v18 = vadd.f32 %v1809_v17, %v1808_v15 }
 0x115   : > { %v1833_v20 = vmul.f32 %v3182_v5, %v1810_v18 }
 0x117   : > { %v3186_v21 = vpack.c.bf16 %v1833_v20, %v1832_v19  ;;  %v1672_v25 = vpop.f32.mrf.mxu3  ;;  %v1632_v26 = vpop.f32.mrf.mxu0 }
 0x118   : > { %v1658_v24 = vpop.f32.mrf.mxu2  ;;  %v1646_v27 = vpop.f32.mrf.mxu1  ;;  %v1633_v32 = vadd.f32 %v1632_v26, %v487_v28 }
 0x119   : > { %v1659_v36 = vadd.f32 %v1658_v24, %v1645_v61 }
 0x11a   : > { %v1647_v34 = vadd.f32 %v1646_v27, %v1633_v32 }
 0x11b   : > { %v1673_v39 = vadd.f32 %v1672_v25, %v1659_v36 }
 0x11f   : > { %v1674_v58 = vpop.f32.mrf.mxu3 }
 0x120   : > { %v1660_v29 = vpop.f32.mrf.mxu2 }
 0x121   : > { %v1661_v35 = vadd.f32 %v1660_v29, %v1647_v34 }
 0x123   : > { %v1675_v40 = vadd.f32 %v1674_v58, %v1661_v35  ;;  %v1840_v58 = vrot.slane %v3186_v21, 3 }
 0x125   : > { %v1846_v36 = vsel %vm1843_vm6, %v3186_v21, %v1840_v58 }
 0x12f   : > { %v1686_v33 = vpop.f32.mrf.mxu0  ;;  %v1700_v30 = vpop.f32.mrf.mxu1 }
 0x130   : > { %v1687_v43 = vadd.f32 %v1686_v33, %v1673_v39 }
 0x132   : > { %v1701_v47 = vadd.f32 %v1700_v30, %v1687_v43  ;;  %v1869_v30 = vld [vmem:[%s235_s6] sm:$0xf] }
 0x134   : > { %v1791_v53 = vmax.f32 %v1701_v47, 0.0 }
 0x137   : > { %v1728_v38 = vpop.f32.mrf.mxu3  ;;  %v1688_v41 = vpop.f32.mrf.mxu0 }
 0x138   : > { %v1714_v37 = vpop.f32.mrf.mxu2  ;;  %v1702_v42 = vpop.f32.mrf.mxu1  ;;  %v1689_v44 = vadd.f32 %v1688_v41, %v1675_v40 }
 0x139   : > { %v1715_v49 = vadd.f32 %v1714_v37, %v488_v45 }
 0x13a   : > { %v1703_v48 = vadd.f32 %v1702_v42, %v1689_v44 }
 0x13b   : > { %v1729_v55 = vadd.f32 %v1728_v38, %v1715_v49 }
 0x13c   : > { %v1795_v54 = vmax.f32 %v1703_v48, 0.0 }
 0x13e   : > { %v1811_v63 = vadd.f32 %v1795_v54, %v1791_v53 }
 0x13f   : > { %v1730_v50 = vpop.f32.mrf.mxu3 }
 0x140   : > { %v1716_v46 = vpop.f32.mrf.mxu2  ;;  %v1812_v59 = vrot.slane %v1811_v63, 4 }
 0x141   : > { %v1717_v56 = vadd.f32 %v1716_v46, %v488_v45 }
 0x142   : > { %v1813_v10 = vadd.f32 %v1812_v59, %v1811_v63 }
 0x143   : > { %v1731_v0 = vadd.f32 %v1730_v50, %v1717_v56 }
 0x144   : > { %v1814_v14 = vrot.slane %v1813_v10, 2 }
 0x146   : > { %v1815_v18 = vadd.f32 %v1814_v14, %v1813_v10 }
 0x148   : > { %v1816_v22 = vrot.slane %v1815_v18, 1 }
 0x14a   : > { %v1817_v27 = vadd.f32 %v1816_v22, %v1815_v18 }
 0x14c   : > { %v1834_v31 = vmul.f32 %v3182_v5, %v1817_v27 }
 0x14f   : > { %v1742_v51 = vpop.f32.mrf.mxu0  ;;  %v1756_v52 = vpop.f32.mrf.mxu1 }
 0x150   : > { %v1743_v60 = vadd.f32 %v1742_v51, %v1729_v55 }
 0x152   : > { %v1757_v3 = vadd.f32 %v1756_v52, %v1743_v60 }
 0x156   : > { %v1770_v62 = vpop.f32.mrf.mxu2 }
 0x157   : > { %v1784_v1 = vpop.f32.mrf.mxu3  ;;  %v1744_v2 = vpop.f32.mrf.mxu0  ;;  %v1771_v6 = vadd.f32 %v1770_v62, %v1757_v3 }
 0x158   : > { %v1745_v4 = vadd.f32 %v1744_v2, %v1731_v0  ;;  %v1758_v7 = vpop.f32.mrf.mxu1 }
 0x159   : > { %v1785_v11 = vadd.f32 %v1784_v1, %v1771_v6 }
 0x15a   : > { %v1759_v8 = vadd.f32 %v1758_v7, %v1745_v4 }
 0x15b   : > { %v1792_v15 = vmax.f32 %v1785_v11, 0.0 }
 0x15e   : > { %v1772_v9 = vpop.f32.mrf.mxu2 }
 0x15f   : > { %v1773_v12 = vadd.f32 %v1772_v9, %v1759_v8  ;;  %v1786_v13 = vpop.f32.mrf.mxu3 }
 0x161   : > { %v1787_v57 = vadd.f32 %v1786_v13, %v1773_v12 }
 0x163   : > { %v1796_v16 = vmax.f32 %v1787_v57, 0.0 }
 0x165   : > { %v1818_v17 = vadd.f32 %v1796_v16, %v1792_v15 }
 0x167   : > { %v1819_v19 = vrot.slane %v1818_v17, 4 }
 0x169   : > { %v1820_v20 = vadd.f32 %v1819_v19, %v1818_v17 }
 0x16b   : > { %v1821_v23 = vrot.slane %v1820_v20, 2 }
 0x16d   : > { %v1822_v26 = vadd.f32 %v1821_v23, %v1820_v20 }
 0x16f   : > { %v1823_v28 = vrot.slane %v1822_v26, 1 }
 0x171   : > { %v1824_v29 = vadd.f32 %v1823_v28, %v1822_v26 }
 0x173   : > { %v1835_v32 = vmul.f32 %v3182_v5, %v1824_v29 }
 0x175   : > { %v1837_v33 = vpack.c.bf16 %v1835_v32, %v1834_v31 }
 0x177   : > { %v1841_v61 = vrot.slane %v1837_v33, 6  ;;  %v1842_v34 = vrot.slane %v1837_v33, 1 }
 0x179   : > { %v1850_v35 = vsel %vm1847_vm9, %v1841_v61, %v1842_v34 }
 0x17a   : > { %v1852_v5 = vsel %vm1851_vm1, %v1846_v36, %v1850_v35 }
 0x17b   : > { %v1870_v37 = vsel %vm1868_vm2, %v1852_v5, %v1869_v30 }
 0x17c   : > { %1871 = vst [vmem:[%s235_s6] sm:$0xf] %v1870_v37 }
 0x17d PF: > { %s14_s14 = sadd.s32 1, %s3052_s14   ;;  %s3231_s12 = smov %s3048_s13 }
 0x17e   : > { %p11_p8 = scmp.ge.s32.totalorder %s14_s14, 4   ;;  %s3232_s13 = smov %s3234_s16 }
 0x180   :  { %13 = sbr.rel (!%p11_p8) target bundleno = 2 (0x2), region = 71 }
 0x185   :  { %1900 = vsyncpa [#allocation3], 1 }
 0x186   :  { %1902 = vsyncpa [#allocation3 + $0x1], 1 }

// kernel: conv2d_model_forward.9
= control target key start
LH: loop header
LB: loop body
LE: loop exit
PB: predicated region body
PF: predicated region fallthrough
CT: control target
= control target key end

     0   :  { %12 = vsyncpa [#allocation3], 0  ;;  %s4632_s0 = inlined_call_operand.vmem [shape: bf16[8,512], index: 0, kind: input, shape index: {}]   ;;  %s4633_s1 = inlined_call_operand.hbm [shape: bf16[512,1024], index: 1, kind: input, shape index: {}]   ;;  %s4634_s2 = inlined_call_operand.vmem [shape: f32[1,1024], index: 2, kind: input, shape index: {}]   ;;  %s4635_s3 = inlined_call_operand.hbm [shape: bf16[1024,128], index: 3, kind: input, shape index: {}]   ;;  %s4636_s4 = inlined_call_operand.vmem [shape: f32[1,128], index: 4, kind: input, shape index: {}]   ;;  %s4637_s5 = inlined_call_operand.vmem [shape: bf16[128,128], index: 5, kind: input, shape index: {}]   ;;  %s4638_s6 = inlined_call_operand.vmem [shape: f32[1,128], index: 6, kind: input, shape index: {}]   ;;  %s4639_s7 = inlined_call_operand.vmem [shape: f32[8,128], index: 7, kind: output, shape index: {}]  }
   0x1   :  { %s20_s26 = sshll.u32 %s4633_s1, 4  ;;  %s21_s26 = int_to_ptr.hbm [resolvable:$true] %s20_s26 }
   0x2   :  { %13 = vsyncpa [#allocation5], 0  ;;  %s4470_s27 = smov [#allocation2]   ;;  %s35_s8 = sshll.u32 %s4635_s3, 4  ;;  %s36_s8 = int_to_ptr.hbm [resolvable:$true] %s35_s8 }
   0x3   :  { %s22_s28 = sshll.u32 %s4470_s27, 4  ;;  %s4471_s9 = smov 512   ;;  %s23_s28 = int_to_ptr.vmem [resolvable:$true] %s22_s28 }
   0x4   :  { %s4472_s10 = smov 32   ;;  %s4473_s11 = smov [#allocation4]  }
   0x5   :  { %28 = dma.hbm_to_vmem [thread:$0]  %s21_s26, 32768, %s23_s28, [#allocation3], %s4471_s9, %s4471_s9, %s4472_s10  }
   0x6   :  { %s37_s12 = sshll.u32 %s4473_s11, 4  ;;  %s4474_s13 = smov 64   ;;  %s38_s12 = int_to_ptr.vmem [resolvable:$true] %s37_s12 }
   0x7   :  { %s4475_s14 = smov 4  }
   0x8   :  { %43 = dma.hbm_to_vmem [thread:$0]  %s36_s8, 8192, %s38_s12, [#allocation5], %s4474_s13, %s4474_s13, %s4475_s14  }
   0x9   :  { %4466 = dma.done.wait [#allocation3], 32768  }
   0xa   :  { %4467 = vsyncadd [#allocation3], 4294934528 }
   0xb   :  { %4468 = dma.done.wait [#allocation5], 8192  }
   0xc   :  { %4469 = vsyncadd [#allocation5], 4294959104  ;;  %v2995_v0 = vld [vmem:[#allocation2 + $0x1c0] sm:$0xf] }
   0xd   :  { %v4141_v1 = vld [vmem:[#allocation2 + $0x1dc] sm:$0xf0] }
   0xe   :  { %v3251_v2 = vld [vmem:[#allocation2 + $0x3c0] sm:$0xf]  ;;  %v2996_v3 = vor.u32 %v4141_v1, %v2995_v0 }
   0xf   :  { %v4205_v4 = vld [vmem:[#allocation2 + $0x3dc] sm:$0xf0] }
  0x10   :  { %v3507_v5 = vld [vmem:[#allocation2 + $0x5c0] sm:$0xf]  ;;  %v3252_v7 = vor.u32 %v4205_v4, %v3251_v2  ;;  %1628 = vmatpush.bf16.msra.mxu0 %v2996_v3 }
  0x11   :  { %v4269_v6 = vld [vmem:[#allocation2 + $0x5dc] sm:$0xf0] }
  0x12   :  { %v3508_v8 = vor.u32 %v4269_v6, %v3507_v5  ;;  %v3763_v9 = vld [vmem:[#allocation2 + $0x7c0] sm:$0xf]  ;;  %1641 = vmatpush.bf16.msra.mxu1 %v3252_v7 }
  0x13   :  { %v4333_v10 = vld [vmem:[#allocation2 + $0x7dc] sm:$0xf0] }
  0x14   :  { %v2963_v11 = vld [vmem:[#allocation2 + $0x180] sm:$0xf]  ;;  %v3764_v12 = vor.u32 %v4333_v10, %v3763_v9  ;;  %1654 = vmatpush.bf16.msra.mxu2 %v3508_v8 }
  0x15   :  { %v4133_v13 = vld [vmem:[#allocation2 + $0x19c] sm:$0xf0] }
  0x16   :  { %v3219_v14 = vld [vmem:[#allocation2 + $0x380] sm:$0xf]  ;;  %v2964_v16 = vor.u32 %v4133_v13, %v2963_v11  ;;  %1667 = vmatpush.bf16.msra.mxu3 %v3764_v12 }
  0x17   :  { %v4197_v15 = vld [vmem:[#allocation2 + $0x39c] sm:$0xf0] }
  0x18   :  { %v3220_v17 = vor.u32 %v4197_v15, %v3219_v14  ;;  %v3475_v18 = vld [vmem:[#allocation2 + $0x580] sm:$0xf]  ;;  %1629 = vmatpush.bf16.msra.mxu0 %v2964_v16 }
  0x19   :  { %v4261_v19 = vld [vmem:[#allocation2 + $0x59c] sm:$0xf0] }
  0x1a   :  { %v3731_v20 = vld [vmem:[#allocation2 + $0x780] sm:$0xf]  ;;  %v3476_v21 = vor.u32 %v4261_v19, %v3475_v18  ;;  %1642 = vmatpush.bf16.msra.mxu1 %v3220_v17 }
  0x1b   :  { %v4325_v22 = vld [vmem:[#allocation2 + $0x79c] sm:$0xf0] }
  0x1c   :  { %v2931_v23 = vld [vmem:[#allocation2 + $0x140] sm:$0xf]  ;;  %v3732_v25 = vor.u32 %v4325_v22, %v3731_v20  ;;  %1655 = vmatpush.bf16.msra.mxu2 %v3476_v21 }
  0x1d   :  { %v4125_v24 = vld [vmem:[#allocation2 + $0x15c] sm:$0xf0] }
  0x1e   :  { %v3187_v26 = vld [vmem:[#allocation2 + $0x340] sm:$0xf]  ;;  %v2932_v29 = vor.u32 %v4125_v24, %v2931_v23  ;;  %1668 = vmatpush.bf16.msra.mxu3 %v3732_v25 }
  0x1f   :  { %v4189_v27 = vld [vmem:[#allocation2 + $0x35c] sm:$0xf0] }
  0x20   :  { %v3443_v28 = vld [vmem:[#allocation2 + $0x540] sm:$0xf]  ;;  %v3188_v33 = vor.u32 %v4189_v27, %v3187_v26  ;;  %1630 = vmatpush.bf16.msra.mxu0 %v2932_v29  ;;  %v2997_v29 = vld [vmem:[#allocation2 + $0x1e0] sm:$0xf0] }
  0x21   :  { %v4253_v30 = vld [vmem:[#allocation2 + $0x55c] sm:$0xf0] }
  0x22   :  { %v3699_v31 = vld [vmem:[#allocation2 + $0x740] sm:$0xf]  ;;  %v3444_v34 = vor.u32 %v4253_v30, %v3443_v28  ;;  %1643 = vmatpush.bf16.msra.mxu1 %v3188_v33  ;;  %v4137_v28 = vld [vmem:[#allocation2 + $0x1c4] sm:$0xf] }
  0x23   :  { %v4317_v32 = vld [vmem:[#allocation2 + $0x75c] sm:$0xf0]  ;;  %v4201_v30 = vld [vmem:[#allocation2 + $0x3c4] sm:$0xf] }
  0x24   :  { %v2899_v35 = vld [vmem:[#allocation2 + $0x100] sm:$0xf]  ;;  %v3700_v38 = vor.u32 %v4317_v32, %v3699_v31  ;;  %1656 = vmatpush.bf16.msra.mxu2 %v3444_v34  ;;  %v3253_v32 = vld [vmem:[#allocation2 + $0x3e0] sm:$0xf0] }
  0x25   :  { %v4117_v36 = vld [vmem:[#allocation2 + $0x11c] sm:$0xf0]  ;;  %v4265_v33 = vld [vmem:[#allocation2 + $0x5c4] sm:$0xf] }
  0x26   :  { %v3155_v37 = vld [vmem:[#allocation2 + $0x300] sm:$0xf]  ;;  %v2900_v44 = vor.u32 %v4117_v36, %v2899_v35  ;;  %1669 = vmatpush.bf16.msra.mxu3 %v3700_v38  ;;  %v3509_v34 = vld [vmem:[#allocation2 + $0x5e0] sm:$0xf0] }
  0x27   :  { %v4181_v39 = vld [vmem:[#allocation2 + $0x31c] sm:$0xf0]  ;;  %v3765_v38 = vld [vmem:[#allocation2 + $0x7e0] sm:$0xf0] }
  0x28   :  { %v3411_v40 = vld [vmem:[#allocation2 + $0x500] sm:$0xf]  ;;  %v3156_v45 = vor.u32 %v4181_v39, %v3155_v37  ;;  %1631 = vmatpush.bf16.msra.mxu0 %v2900_v44  ;;  %v4329_v37 = vld [vmem:[#allocation2 + $0x7c4] sm:$0xf] }
  0x29   :  { %v4245_v41 = vld [vmem:[#allocation2 + $0x51c] sm:$0xf0]  ;;  %v2965_v44 = vld [vmem:[#allocation2 + $0x1a0] sm:$0xf0] }
  0x2a   :  { %v3667_v42 = vld [vmem:[#allocation2 + $0x700] sm:$0xf]  ;;  %v3412_v46 = vor.u32 %v4245_v41, %v3411_v40  ;;  %1644 = vmatpush.bf16.msra.mxu1 %v3156_v45  ;;  %v3000_v40 = vor.u32 %v4137_v28, %v2997_v29  ;;  %v3256_v41 = vor.u32 %v4201_v30, %v3253_v32  ;;  %v4193_v45 = vld [vmem:[#allocation2 + $0x384] sm:$0xf] }
  0x2b   :  { %v4309_v43 = vld [vmem:[#allocation2 + $0x71c] sm:$0xf0]  ;;  %v3125_v29 = vld [vmem:[#allocation2 + $0x2e0] sm:$0xf0] }
  0x2c   :  { %v2867_v47 = vld [vmem:[#allocation2 + $0xc0] sm:$0xf]  ;;  %v3668_v50 = vor.u32 %v4309_v43, %v3667_v42  ;;  %1657 = vmatpush.bf16.msra.mxu2 %v3412_v46  ;;  %v3512_v42 = vor.u32 %v4265_v33, %v3509_v34  ;;  %v4129_v43 = vld [vmem:[#allocation2 + $0x184] sm:$0xf]  ;;  %v3768_v46 = vor.u32 %v4329_v37, %v3765_v38 }
  0x2d   :  { %v4109_v48 = vld [vmem:[#allocation2 + $0xdc] sm:$0xf0]  ;;  %v4233_v30 = vld [vmem:[#allocation2 + $0x4c4] sm:$0xf] }
  0x2e   :  { %v3123_v49 = vld [vmem:[#allocation2 + $0x2c0] sm:$0xf]  ;;  %v2868_v56 = vor.u32 %v4109_v48, %v2867_v47  ;;  %1670 = vmatpush.bf16.msra.mxu3 %v3668_v50  ;;  %v3221_v47 = vld [vmem:[#allocation2 + $0x3a0] sm:$0xf0] }
  0x2f   :  { %v4173_v51 = vld [vmem:[#allocation2 + $0x2dc] sm:$0xf0]  ;;  %v4257_v48 = vld [vmem:[#allocation2 + $0x584] sm:$0xf] }
  0x30   :  { %v3379_v52 = vld [vmem:[#allocation2 + $0x4c0] sm:$0xf]  ;;  %v3124_v57 = vor.u32 %v4173_v51, %v3123_v49  ;;  %1632 = vmatpush.bf16.msra.mxu0 %v2868_v56  ;;  %v3477_v49 = vld [vmem:[#allocation2 + $0x5a0] sm:$0xf0] }
  0x31   :  { %v4237_v53 = vld [vmem:[#allocation2 + $0x4dc] sm:$0xf0]  ;;  %v4321_v50 = vld [vmem:[#allocation2 + $0x784] sm:$0xf] }
  0x32   :  { %v3635_v54 = vld [vmem:[#allocation2 + $0x6c0] sm:$0xf]  ;;  %v3380_v58 = vor.u32 %v4237_v53, %v3379_v52  ;;  %1645 = vmatpush.bf16.msra.mxu1 %v3124_v57  ;;  %v3733_v51 = vld [vmem:[#allocation2 + $0x7a0] sm:$0xf0]  ;;  %v2968_v52 = vor.u32 %v4129_v43, %v2965_v44 }
  0x33   :  { %v4301_v55 = vld [vmem:[#allocation2 + $0x6dc] sm:$0xf0]  ;;  %v4121_v53 = vld [vmem:[#allocation2 + $0x144] sm:$0xf] }
  0x34   :  { %v2835_v59 = vld [vmem:[#allocation2 + $0x80] sm:$0xf]  ;;  %v3636_v62 = vor.u32 %v4301_v55, %v3635_v54  ;;  %1658 = vmatpush.bf16.msra.mxu2 %v3380_v58  ;;  %v3224_v54 = vor.u32 %v4193_v45, %v3221_v47  ;;  %v3480_v55 = vor.u32 %v4257_v48, %v3477_v49  ;;  %v2933_v56 = vld [vmem:[#allocation2 + $0x160] sm:$0xf0] }
  0x35   :  { %v4101_v60 = vld [vmem:[#allocation2 + $0x9c] sm:$0xf0]  ;;  %v4185_v57 = vld [vmem:[#allocation2 + $0x344] sm:$0xf] }
  0x36   :  { %v3091_v61 = vld [vmem:[#allocation2 + $0x280] sm:$0xf]  ;;  %v2836_v4 = vor.u32 %v4101_v60, %v2835_v59  ;;  %1671 = vmatpush.bf16.msra.mxu3 %v3636_v62  ;;  %v3189_v58 = vld [vmem:[#allocation2 + $0x360] sm:$0xf0]  ;;  %v3736_v59 = vor.u32 %v4321_v50, %v3733_v51 }
  0x37   :  { %v4165_v63 = vld [vmem:[#allocation2 + $0x29c] sm:$0xf0]  ;;  %v4249_v60 = vld [vmem:[#allocation2 + $0x544] sm:$0xf] }
  0x38   :  { %v3347_v0 = vld [vmem:[#allocation2 + $0x480] sm:$0xf]  ;;  %v3092_v5 = vor.u32 %v4165_v63, %v3091_v61  ;;  %1633 = vmatpush.bf16.msra.mxu0 %v2836_v4  ;;  %v3445_v61 = vld [vmem:[#allocation2 + $0x560] sm:$0xf0] }
  0x39   :  { %v4229_v1 = vld [vmem:[#allocation2 + $0x49c] sm:$0xf0]  ;;  %v4313_v62 = vld [vmem:[#allocation2 + $0x744] sm:$0xf]  ;;  %v3448_v4 = vor.u32 %v4249_v60, %v3445_v61 }
  0x3a   :  { %v3603_v2 = vld [vmem:[#allocation2 + $0x680] sm:$0xf]  ;;  %v3348_v6 = vor.u32 %v4229_v1, %v3347_v0  ;;  %1646 = vmatpush.bf16.msra.mxu1 %v3092_v5  ;;  %v3701_v63 = vld [vmem:[#allocation2 + $0x760] sm:$0xf0]  ;;  %v2936_v0 = vor.u32 %v4121_v53, %v2933_v56  ;;  %v3192_v1 = vor.u32 %v4185_v57, %v3189_v58 }
  0x3b   :  { %v4293_v3 = vld [vmem:[#allocation2 + $0x69c] sm:$0xf0]  ;;  %v4113_v5 = vld [vmem:[#allocation2 + $0x104] sm:$0xf] }
  0x3c   :  { %v2803_v7 = vld [vmem:[#allocation2 + $0x40] sm:$0xf]  ;;  %v3604_v10 = vor.u32 %v4293_v3, %v3603_v2  ;;  %1659 = vmatpush.bf16.msra.mxu2 %v3348_v6  ;;  %v59_v2 = vld [vmem:[%s4632_s0 + $0x8] sm:$0xff]  ;;  %v2901_v6 = vld [vmem:[#allocation2 + $0x120] sm:$0xf0] }
  0x3d   :  { %v4093_v8 = vld [vmem:[#allocation2 + $0x5c] sm:$0xf0]  ;;  %v4297_v32 = vld [vmem:[#allocation2 + $0x6c4] sm:$0xf] }
  0x3e   :  { %v3059_v9 = vld [vmem:[#allocation2 + $0x240] sm:$0xf]  ;;  %v2804_v16 = vor.u32 %v4093_v8, %v2803_v7  ;;  %1672 = vmatpush.bf16.msra.mxu3 %v3604_v10  ;;  %v4177_v7 = vld [vmem:[#allocation2 + $0x304] sm:$0xf]  ;;  %v338_v8 = vunpack.c.l.b16 %v59_v2  ;;  %v339_v10 = vunpack.c.h.b16 %v59_v2 }
  0x3f   :  { %v4157_v11 = vld [vmem:[#allocation2 + $0x25c] sm:$0xf0]  ;;  %v3637_v33 = vld [vmem:[#allocation2 + $0x6e0] sm:$0xf0] }
  0x40   :  { %v3315_v12 = vld [vmem:[#allocation2 + $0x440] sm:$0xf]  ;;  %v3060_v19 = vor.u32 %v4157_v11, %v3059_v9  ;;  %1634 = vmatpush.bf16.msra.mxu0 %v2804_v16  ;;  %v3704_v11 = vor.u32 %v4313_v62, %v3701_v63  ;;  %v4305_v16 = vld [vmem:[#allocation2 + $0x704] sm:$0xf] }
  0x41   :  { %v4221_v13 = vld [vmem:[#allocation2 + $0x45c] sm:$0xf0]  ;;  %v4097_v37 = vld [vmem:[#allocation2 + $0x84] sm:$0xf] }
  0x42   :  { %v3571_v14 = vld [vmem:[#allocation2 + $0x640] sm:$0xf]  ;;  %v3316_v20 = vor.u32 %v4221_v13, %v3315_v12  ;;  %1647 = vmatpush.bf16.msra.mxu1 %v3060_v19  ;;  %v3157_v12 = vld [vmem:[#allocation2 + $0x320] sm:$0xf0] }
  0x43   :  { %v4285_v15 = vld [vmem:[#allocation2 + $0x65c] sm:$0xf0]  ;;  %v4241_v13 = vld [vmem:[#allocation2 + $0x504] sm:$0xf] }
  0x44   :  { %v2771_v17 = vld [vmem:[#allocation2] sm:$0xf]  ;;  %v3572_v24 = vor.u32 %v4285_v15, %v3571_v14  ;;  %1660 = vmatpush.bf16.msra.mxu2 %v3316_v20  ;;  %v3413_v14 = vld [vmem:[#allocation2 + $0x520] sm:$0xf0]  ;;  %v4532_v20 = vpack.c.b16 %v339_v10, %v339_v10  ;;  %v4206_v10 = vld [vmem:[#allocation2 + $0x3e4] sm:$0xf0] }
  0x45   :  { %v4085_v18 = vld [vmem:[#allocation2 + $0x1c] sm:$0xf0]  ;;  %v2837_v38 = vld [vmem:[#allocation2 + $0xa0] sm:$0xf0] }
  0x46   :  { %v3027_v21 = vld [vmem:[#allocation2 + $0x200] sm:$0xf]  ;;  %v2772_v31 = vor.u32 %v4085_v18, %v2771_v17  ;;  %1673 = vmatpush.bf16.msra.mxu3 %v3572_v24  ;;  %v3669_v17 = vld [vmem:[#allocation2 + $0x720] sm:$0xf0]  ;;  %v4528_v18 = vpack.c.b16 %v338_v8, %v338_v8  ;;  %v3416_v24 = vor.u32 %v4241_v13, %v3413_v14  ;;  %v3259_v8 = vld [vmem:[#allocation2 + $0x3c8] sm:$0xf] }
  0x47   :  { %v4149_v22 = vld [vmem:[#allocation2 + $0x21c] sm:$0xf0]  ;;  %v3672_v28 = vor.u32 %v4305_v16, %v3669_v17  ;;  %v3349_v43 = vld [vmem:[#allocation2 + $0x4a0] sm:$0xf0]  ;;  %v4334_v16 = vld [vmem:[#allocation2 + $0x7e4] sm:$0xf0] }
  0x48   :  { %v3283_v23 = vld [vmem:[#allocation2 + $0x400] sm:$0xf]  ;;  %v3028_v35 = vor.u32 %v4149_v22, %v3027_v21  ;;  %1635 = vmatpush.bf16.msra.mxu0 %v2772_v31  ;;  %v2904_v21 = vor.u32 %v4113_v5, %v2901_v6  ;;  %v3381_v31 = vld [vmem:[#allocation2 + $0x4e0] sm:$0xf0]  ;;  %v3003_v6 = vld [vmem:[#allocation2 + $0x1c8] sm:$0xf] }
  0x49   :  { %v4213_v25 = vld [vmem:[#allocation2 + $0x41c] sm:$0xf0]  ;;  %v4289_v44 = vld [vmem:[#allocation2 + $0x684] sm:$0xf] }
  0x4a   :  { %v3539_v26 = vld [vmem:[#allocation2 + $0x600] sm:$0xf]  ;;  %v3284_v36 = vor.u32 %v4213_v25, %v3283_v23  ;;  %1648 = vmatpush.bf16.msra.mxu1 %v3028_v35  ;;  %v3160_v23 = vor.u32 %v4177_v7, %v3157_v12  ;;  %v4105_v25 = vld [vmem:[#allocation2 + $0xc4] sm:$0xf]  ;;  %v4142_v7 = vld [vmem:[#allocation2 + $0x1e4] sm:$0xf0] }
  0x4b   :  { %v4277_v27 = vld [vmem:[#allocation2 + $0x61c] sm:$0xf0]  ;;  %v3605_v45 = vld [vmem:[#allocation2 + $0x6a0] sm:$0xf0]  ;;  %v4270_v12 = vld [vmem:[#allocation2 + $0x5e4] sm:$0xf0] }
  0x4c   :  { %v3540_v39 = vor.u32 %v4277_v27, %v3539_v26  ;;  %1661 = vmatpush.bf16.msra.mxu2 %v3284_v36  ;;  %1680 = vmatpush.bf16.msrb.mxu0 %v3000_v40  ;;  %v58_v3 = vld [vmem:[%s4632_s0] sm:$0xff]  ;;  %v3384_v36 = vor.u32 %v4233_v30, %v3381_v31  ;;  %v3640_v40 = vor.u32 %v4297_v32, %v3637_v33  ;;  %v3483_v30 = vld [vmem:[#allocation2 + $0x588] sm:$0xf] }
  0x4d   :  { %v336_v9 = vunpack.c.l.b16 %v58_v3  ;;  %v337_v15 = vunpack.c.h.b16 %v58_v3  ;;  %v2869_v26 = vld [vmem:[#allocation2 + $0xe0] sm:$0xf0]  ;;  %v4262_v31 = vld [vmem:[#allocation2 + $0x5a4] sm:$0xf0] }
  0x4e   :  { %1674 = vmatpush.bf16.msra.mxu3 %v3540_v39  ;;  %1693 = vmatpush.bf16.msrb.mxu1 %v3256_v41  ;;  %v4169_v27 = vld [vmem:[#allocation2 + $0x2c4] sm:$0xf]  ;;  %v2872_v34 = vor.u32 %v4105_v25, %v2869_v26  ;;  %v2971_v25 = vld [vmem:[#allocation2 + $0x188] sm:$0xf] }
  0x4f   :  { %v4530_v19 = vpack.c.b16 %v336_v9, %v336_v9  ;;  %v4534_v22 = vpack.c.b16 %v337_v15, %v337_v15  ;;  %1662 = vmatmul.bf16.vlgmr.msra.gmra.mxu2 %v4528_v18  ;;  %v3128_v35 = vor.u32 %v4169_v27, %v3125_v29  ;;  %v4161_v39 = vld [vmem:[#allocation2 + $0x284] sm:$0xf]  ;;  %v3771_v15 = vld [vmem:[#allocation2 + $0x7c8] sm:$0xf] }
  0x50   :  { %1706 = vmatpush.bf16.msrb.mxu2 %v3512_v42  ;;  %1681 = vmatpush.bf16.msrb.mxu0 %v2968_v52  ;;  %v3093_v41 = vld [vmem:[#allocation2 + $0x2a0] sm:$0xf0]  ;;  %v3608_v52 = vor.u32 %v4289_v44, %v3605_v45  ;;  %v4134_v26 = vld [vmem:[#allocation2 + $0x1a4] sm:$0xf0] }
  0x51   :  { %1636 = vmatmul.bf16.vlgmr.msra.gmra.mxu0 %v4530_v19  ;;  %1675 = vmatmul.bf16.vlgmr.msra.gmra.mxu3 %v4532_v20  ;;  %v4225_v42 = vld [vmem:[#allocation2 + $0x484] sm:$0xf]  ;;  %v3096_v47 = vor.u32 %v4161_v39, %v3093_v41  ;;  %v3227_v27 = vld [vmem:[#allocation2 + $0x388] sm:$0xf] }
  0x52   :  { %1719 = vmatpush.bf16.msrb.mxu3 %v3768_v46  ;;  %1694 = vmatpush.bf16.msrb.mxu1 %v3224_v54  ;;  %v2840_v46 = vor.u32 %v4097_v37, %v2837_v38  ;;  %v3352_v48 = vor.u32 %v4225_v42, %v3349_v43  ;;  %v4089_v49 = vld [vmem:[#allocation2 + $0x44] sm:$0xf]  ;;  %v4198_v29 = vld [vmem:[#allocation2 + $0x3a4] sm:$0xf0] }
  0x53   :  { %1649 = vmatmul.bf16.vlgmr.msra.gmra.mxu1 %v4534_v22  ;;  %v2805_v50 = vld [vmem:[#allocation2 + $0x60] sm:$0xf0]  ;;  %v3739_v32 = vld [vmem:[#allocation2 + $0x788] sm:$0xf] }
  0x54   :  { %1707 = vmatpush.bf16.msrb.mxu2 %v3480_v55  ;;  %1682 = vmatpush.bf16.msrb.mxu0 %v2936_v0  ;;  %v4153_v51 = vld [vmem:[#allocation2 + $0x244] sm:$0xf]  ;;  %v2808_v58 = vor.u32 %v4089_v49, %v2805_v50  ;;  %v4326_v33 = vld [vmem:[#allocation2 + $0x7a4] sm:$0xf0] }
  0x55   :  { %v3061_v53 = vld [vmem:[#allocation2 + $0x260] sm:$0xf0]  ;;  %v2939_v37 = vld [vmem:[#allocation2 + $0x148] sm:$0xf] }
  0x56   :  { %1720 = vmatpush.bf16.msrb.mxu3 %v3736_v59  ;;  %1695 = vmatpush.bf16.msrb.mxu1 %v3192_v1  ;;  %v4217_v54 = vld [vmem:[#allocation2 + $0x444] sm:$0xf]  ;;  %v3064_v61 = vor.u32 %v4153_v51, %v3061_v53  ;;  %v4126_v38 = vld [vmem:[#allocation2 + $0x164] sm:$0xf0] }
  0x57   :  { %v3317_v55 = vld [vmem:[#allocation2 + $0x460] sm:$0xf0]  ;;  %v3195_v39 = vld [vmem:[#allocation2 + $0x348] sm:$0xf] }
  0x58   :  { %1708 = vmatpush.bf16.msrb.mxu2 %v3448_v4  ;;  %1683 = vmatpush.bf16.msrb.mxu0 %v2904_v21  ;;  %v4281_v56 = vld [vmem:[#allocation2 + $0x644] sm:$0xf]  ;;  %v3320_v62 = vor.u32 %v4217_v54, %v3317_v55  ;;  %v3004_v21 = vor.u32 %v4142_v7, %v3003_v6  ;;  %v4190_v41 = vld [vmem:[#allocation2 + $0x364] sm:$0xf0] }
  0x59   :  { %v3573_v57 = vld [vmem:[#allocation2 + $0x660] sm:$0xf0]  ;;  %v3451_v42 = vld [vmem:[#allocation2 + $0x548] sm:$0xf] }
  0x5a   :  { %1721 = vmatpush.bf16.msrb.mxu3 %v3704_v11  ;;  %1696 = vmatpush.bf16.msrb.mxu1 %v3160_v23  ;;  %v4081_v59 = vld [vmem:[#allocation2 + $0x4] sm:$0xf]  ;;  %v3576_v2 = vor.u32 %v4281_v56, %v3573_v57  ;;  %v3515_v11 = vld [vmem:[#allocation2 + $0x5c8] sm:$0xf]  ;;  %v3260_v23 = vor.u32 %v4206_v10, %v3259_v8 }
  0x5b   :  { %v2773_v60 = vld [vmem:[#allocation2 + $0x20] sm:$0xf0]  ;;  %v4254_v43 = vld [vmem:[#allocation2 + $0x564] sm:$0xf0] }
  0x5c   :  { %1709 = vmatpush.bf16.msrb.mxu2 %v3416_v24  ;;  %1684 = vmatpush.bf16.msrb.mxu0 %v2872_v34  ;;  %v4145_v63 = vld [vmem:[#allocation2 + $0x204] sm:$0xf]  ;;  %v2776_v9 = vor.u32 %v4081_v59, %v2773_v60  ;;  %v3516_v24 = vor.u32 %v4270_v12, %v3515_v11  ;;  %v2972_v34 = vor.u32 %v4134_v26, %v2971_v25  ;;  %v3707_v44 = vld [vmem:[#allocation2 + $0x748] sm:$0xf] }
  0x5d   :  { %v3029_v0 = vld [vmem:[#allocation2 + $0x220] sm:$0xf0]  ;;  %v4318_v45 = vld [vmem:[#allocation2 + $0x764] sm:$0xf0] }
  0x5e   :  { %1722 = vmatpush.bf16.msrb.mxu3 %v3672_v28  ;;  %1697 = vmatpush.bf16.msrb.mxu1 %v3128_v35  ;;  %v4209_v1 = vld [vmem:[#allocation2 + $0x404] sm:$0xf]  ;;  %v3032_v13 = vor.u32 %v4145_v63, %v3029_v0  ;;  %v3772_v28 = vor.u32 %v4334_v16, %v3771_v15  ;;  %v3228_v35 = vor.u32 %v4198_v29, %v3227_v27  ;;  %v2907_v49 = vld [vmem:[#allocation2 + $0x108] sm:$0xf] }
  0x5f   :  { %v3285_v3 = vld [vmem:[#allocation2 + $0x420] sm:$0xf0]  ;;  %v4118_v50 = vld [vmem:[#allocation2 + $0x124] sm:$0xf0] }
  0x60   :  { %1710 = vmatpush.bf16.msrb.mxu2 %v3384_v36  ;;  %1685 = vmatpush.bf16.msrb.mxu0 %v2840_v46  ;;  %v4273_v4 = vld [vmem:[#allocation2 + $0x604] sm:$0xf]  ;;  %v3288_v14 = vor.u32 %v4209_v1, %v3285_v3  ;;  %v3484_v36 = vor.u32 %v4262_v31, %v3483_v30  ;;  %v2940_v46 = vor.u32 %v4126_v38, %v2939_v37  ;;  %v3163_v51 = vld [vmem:[#allocation2 + $0x308] sm:$0xf] }
  0x61   :  { %v3541_v5 = vld [vmem:[#allocation2 + $0x620] sm:$0xf0]  ;;  %v4182_v53 = vld [vmem:[#allocation2 + $0x324] sm:$0xf0] }
  0x62   :  { %1723 = vmatpush.bf16.msrb.mxu3 %v3640_v40  ;;  %1698 = vmatpush.bf16.msrb.mxu1 %v3096_v47  ;;  %v3544_v17 = vor.u32 %v4273_v4, %v3541_v5  ;;  %v3740_v40 = vor.u32 %v4326_v33, %v3739_v32  ;;  %v3196_v47 = vor.u32 %v4190_v41, %v3195_v39  ;;  %v3419_v54 = vld [vmem:[#allocation2 + $0x508] sm:$0xf] }
  0x63   :  { %v4246_v55 = vld [vmem:[#allocation2 + $0x524] sm:$0xf0]  ;;  %v3164_v59 = vor.u32 %v4182_v53, %v3163_v51  ;;  %v4266_v51 = vld [vmem:[#allocation2 + $0x5cc] sm:$0xf] }
  0x64   :  { %1711 = vmatpush.bf16.msrb.mxu2 %v3352_v48  ;;  %1686 = vmatpush.bf16.msrb.mxu0 %v2808_v58  ;;  %v3452_v48 = vor.u32 %v4254_v43, %v3451_v42  ;;  %v3675_v56 = vld [vmem:[#allocation2 + $0x708] sm:$0xf]  ;;  %v2908_v58 = vor.u32 %v4118_v50, %v2907_v49  ;;  %v3420_v60 = vor.u32 %v4246_v55, %v3419_v54  ;;  %v3261_v50 = vld [vmem:[#allocation2 + $0x3e8] sm:$0xf0] }
  0x65   :  { %v4310_v57 = vld [vmem:[#allocation2 + $0x724] sm:$0xf0]  ;;  %v4330_v55 = vld [vmem:[#allocation2 + $0x7cc] sm:$0xf] }
  0x66   :  { %1724 = vmatpush.bf16.msrb.mxu3 %v3608_v52  ;;  %1699 = vmatpush.bf16.msrb.mxu1 %v3064_v61  ;;  %v3708_v52 = vor.u32 %v4318_v45, %v3707_v44  ;;  %v2875_v61 = vld [vmem:[#allocation2 + $0xc8] sm:$0xf]  ;;  %v3676_v0 = vor.u32 %v4310_v57, %v3675_v56  ;;  %v3773_v56 = vld [vmem:[#allocation2 + $0x7e8] sm:$0xf0] }
  0x67   :  { %v3131_v63 = vld [vmem:[#allocation2 + $0x2c8] sm:$0xf] }
  0x68   :  { %1712 = vmatpush.bf16.msrb.mxu2 %v3320_v62  ;;  %1687 = vmatpush.bf16.msrb.mxu0 %v2776_v9  ;;  %v4110_v62 = vld [vmem:[#allocation2 + $0xe4] sm:$0xf0] }
  0x69   :  { %v4174_v1 = vld [vmem:[#allocation2 + $0x2e4] sm:$0xf0]  ;;  %v2876_v6 = vor.u32 %v4110_v62, %v2875_v61  ;;  %v4130_v61 = vld [vmem:[#allocation2 + $0x18c] sm:$0xf] }
  0x6a   :  { %1725 = vmatpush.bf16.msrb.mxu3 %v3576_v2  ;;  %1700 = vmatpush.bf16.msrb.mxu1 %v3032_v13  ;;  %v3387_v2 = vld [vmem:[#allocation2 + $0x4c8] sm:$0xf]  ;;  %v3132_v8 = vor.u32 %v4174_v1, %v3131_v63  ;;  %v2973_v62 = vld [vmem:[#allocation2 + $0x1a8] sm:$0xf0] }
  0x6b   :  { %1688 = vmatmul.bf16.vlgmr.msrb.gmra.mxu0 %v4530_v19  ;;  %v4238_v3 = vld [vmem:[#allocation2 + $0x4e4] sm:$0xf0]  ;;  %v4194_v63 = vld [vmem:[#allocation2 + $0x38c] sm:$0xf] }
  0x6c   :  { %1713 = vmatpush.bf16.msrb.mxu2 %v3288_v14  ;;  %1732 = vmatpush.bf16.msra.mxu0 %v3004_v21  ;;  %v3643_v4 = vld [vmem:[#allocation2 + $0x6c8] sm:$0xf]  ;;  %v3388_v9 = vor.u32 %v4238_v3, %v3387_v2  ;;  %v3229_v1 = vld [vmem:[#allocation2 + $0x3a8] sm:$0xf0] }
  0x6d   :  { %1701 = vmatmul.bf16.vlgmr.msrb.gmra.mxu1 %v4534_v22  ;;  %v4302_v5 = vld [vmem:[#allocation2 + $0x6e4] sm:$0xf0]  ;;  %v4258_v2 = vld [vmem:[#allocation2 + $0x58c] sm:$0xf] }
  0x6e   :  { %1726 = vmatpush.bf16.msrb.mxu3 %v3544_v17  ;;  %1745 = vmatpush.bf16.msra.mxu1 %v3260_v23  ;;  %v2843_v7 = vld [vmem:[#allocation2 + $0x88] sm:$0xf]  ;;  %v3644_v13 = vor.u32 %v4302_v5, %v3643_v4  ;;  %v3485_v3 = vld [vmem:[#allocation2 + $0x5a8] sm:$0xf0] }
  0x6f   :  { %1714 = vmatmul.bf16.vlgmr.msrb.gmra.mxu2 %v4528_v18  ;;  %v4102_v10 = vld [vmem:[#allocation2 + $0xa4] sm:$0xf0]  ;;  %v4322_v4 = vld [vmem:[#allocation2 + $0x78c] sm:$0xf] }
  0x70   :  { %1758 = vmatpush.bf16.msra.mxu2 %v3516_v24  ;;  %1733 = vmatpush.bf16.msra.mxu0 %v2972_v34  ;;  %v3099_v11 = vld [vmem:[#allocation2 + $0x288] sm:$0xf]  ;;  %v2844_v21 = vor.u32 %v4102_v10, %v2843_v7  ;;  %v3741_v5 = vld [vmem:[#allocation2 + $0x7a8] sm:$0xf0]  ;;  %v3232_v7 = vor.u32 %v4194_v63, %v3229_v1 }
  0x71   :  { %1727 = vmatmul.bf16.vlgmr.msrb.gmra.mxu3 %v4532_v20  ;;  %v4166_v12 = vld [vmem:[#allocation2 + $0x2a4] sm:$0xf0]  ;;  %v2941_v10 = vld [vmem:[#allocation2 + $0x168] sm:$0xf0] }
  0x72   :  { %1771 = vmatpush.bf16.msra.mxu3 %v3772_v28  ;;  %1746 = vmatpush.bf16.msra.mxu1 %v3228_v35  ;;  %v3355_v14 = vld [vmem:[#allocation2 + $0x488] sm:$0xf]  ;;  %v3100_v23 = vor.u32 %v4166_v12, %v3099_v11  ;;  %v4186_v11 = vld [vmem:[#allocation2 + $0x34c] sm:$0xf]  ;;  %v3744_v12 = vor.u32 %v4322_v4, %v3741_v5 }
  0x73   :  { %v4230_v15 = vld [vmem:[#allocation2 + $0x4a4] sm:$0xf0]  ;;  %v4154_v63 = vld [vmem:[#allocation2 + $0x24c] sm:$0xf] }
  0x74   :  { %1759 = vmatpush.bf16.msra.mxu2 %v3484_v36  ;;  %1734 = vmatpush.bf16.msra.mxu0 %v2940_v46  ;;  %v3611_v16 = vld [vmem:[#allocation2 + $0x688] sm:$0xf]  ;;  %v3356_v24 = vor.u32 %v4230_v15, %v3355_v14  ;;  %v4138_v46 = vld [vmem:[#allocation2 + $0x1cc] sm:$0xf] }
  0x75   :  { %v4294_v17 = vld [vmem:[#allocation2 + $0x6a4] sm:$0xf0]  ;;  %v4250_v14 = vld [vmem:[#allocation2 + $0x54c] sm:$0xf] }
  0x76   :  { %1772 = vmatpush.bf16.msra.mxu3 %v3740_v40  ;;  %1747 = vmatpush.bf16.msra.mxu1 %v3196_v47  ;;  %v2811_v25 = vld [vmem:[#allocation2 + $0x48] sm:$0xf]  ;;  %v3612_v28 = vor.u32 %v4294_v17, %v3611_v16  ;;  %v3005_v47 = vld [vmem:[#allocation2 + $0x1e8] sm:$0xf0] }
  0x77   :  { %v4094_v26 = vld [vmem:[#allocation2 + $0x64] sm:$0xf0]  ;;  %v3453_v15 = vld [vmem:[#allocation2 + $0x568] sm:$0xf0] }
  0x78   :  { %1760 = vmatpush.bf16.msra.mxu2 %v3452_v48  ;;  %1735 = vmatpush.bf16.msra.mxu0 %v2908_v58  ;;  %v3067_v27 = vld [vmem:[#allocation2 + $0x248] sm:$0xf]  ;;  %v2812_v34 = vor.u32 %v4094_v26, %v2811_v25  ;;  %v4202_v48 = vld [vmem:[#allocation2 + $0x3cc] sm:$0xf]  ;;  %v3008_v58 = vor.u32 %v4138_v46, %v3005_v47 }
  0x79   :  { %v4158_v29 = vld [vmem:[#allocation2 + $0x264] sm:$0xf0]  ;;  %v4314_v16 = vld [vmem:[#allocation2 + $0x74c] sm:$0xf] }
  0x7a   :  { %1773 = vmatpush.bf16.msra.mxu3 %v3708_v52  ;;  %1748 = vmatpush.bf16.msra.mxu1 %v3164_v59  ;;  %v3323_v30 = vld [vmem:[#allocation2 + $0x448] sm:$0xf]  ;;  %v3068_v37 = vor.u32 %v4158_v29, %v3067_v27  ;;  %v3517_v52 = vld [vmem:[#allocation2 + $0x5e8] sm:$0xf0]  ;;  %v3264_v59 = vor.u32 %v4202_v48, %v3261_v50 }
  0x7b   :  { %v4222_v31 = vld [vmem:[#allocation2 + $0x464] sm:$0xf0]  ;;  %v3709_v17 = vld [vmem:[#allocation2 + $0x768] sm:$0xf0] }
  0x7c   :  { %1761 = vmatpush.bf16.msra.mxu2 %v3420_v60  ;;  %1736 = vmatpush.bf16.msra.mxu0 %v2876_v6  ;;  %v3579_v32 = vld [vmem:[#allocation2 + $0x648] sm:$0xf]  ;;  %v3324_v38 = vor.u32 %v4222_v31, %v3323_v30  ;;  %v3520_v60 = vor.u32 %v4266_v51, %v3517_v52  ;;  %v2976_v6 = vor.u32 %v4130_v61, %v2973_v62  ;;  %v4114_v25 = vld [vmem:[#allocation2 + $0x10c] sm:$0xf] }
  0x7d   :  { %v4286_v33 = vld [vmem:[#allocation2 + $0x664] sm:$0xf0]  ;;  %v2909_v26 = vld [vmem:[#allocation2 + $0x128] sm:$0xf0] }
  0x7e   :  { %1774 = vmatpush.bf16.msra.mxu3 %v3676_v0  ;;  %1749 = vmatpush.bf16.msra.mxu1 %v3132_v8  ;;  %v2779_v35 = vld [vmem:[#allocation2 + $0x8] sm:$0xf]  ;;  %v3580_v42 = vor.u32 %v4286_v33, %v3579_v32  ;;  %v3776_v0 = vor.u32 %v4330_v55, %v3773_v56  ;;  %v3488_v8 = vor.u32 %v4258_v2, %v3485_v3  ;;  %v4178_v27 = vld [vmem:[#allocation2 + $0x30c] sm:$0xf] }
  0x7f   :  { %v4086_v36 = vld [vmem:[#allocation2 + $0x24] sm:$0xf0]  ;;  %v3165_v29 = vld [vmem:[#allocation2 + $0x328] sm:$0xf0] }
  0x80   :  { %1762 = vmatpush.bf16.msra.mxu2 %v3388_v9  ;;  %1737 = vmatpush.bf16.msra.mxu0 %v2844_v21  ;;  %v3035_v39 = vld [vmem:[#allocation2 + $0x208] sm:$0xf]  ;;  %v2780_v49 = vor.u32 %v4086_v36, %v2779_v35  ;;  %v4122_v9 = vld [vmem:[#allocation2 + $0x14c] sm:$0xf]  ;;  %v3168_v35 = vor.u32 %v4178_v27, %v3165_v29  ;;  %v3523_v27 = vld [vmem:[#allocation2 + $0x5d0] sm:$0xf] }
  0x81   :  { %v4150_v40 = vld [vmem:[#allocation2 + $0x224] sm:$0xf0]  ;;  %v2944_v21 = vor.u32 %v4122_v9, %v2941_v10  ;;  %v4242_v30 = vld [vmem:[#allocation2 + $0x50c] sm:$0xf] }
  0x82   :  { %1775 = vmatpush.bf16.msra.mxu3 %v3644_v13  ;;  %1750 = vmatpush.bf16.msra.mxu1 %v3100_v23  ;;  %v3291_v41 = vld [vmem:[#allocation2 + $0x408] sm:$0xf]  ;;  %v3036_v53 = vor.u32 %v4150_v40, %v3035_v39  ;;  %v3197_v13 = vld [vmem:[#allocation2 + $0x368] sm:$0xf0] }
  0x83   :  { %v4214_v43 = vld [vmem:[#allocation2 + $0x424] sm:$0xf0]  ;;  %v3200_v23 = vor.u32 %v4186_v11, %v3197_v13  ;;  %v3421_v31 = vld [vmem:[#allocation2 + $0x528] sm:$0xf0] }
  0x84   :  { %1763 = vmatpush.bf16.msra.mxu2 %v3356_v24  ;;  %v3547_v44 = vld [vmem:[#allocation2 + $0x608] sm:$0xf]  ;;  %1738 = vmatpush.bf16.msra.mxu0 %v2812_v34  ;;  %v3292_v54 = vor.u32 %v4214_v43, %v3291_v41  ;;  %v3456_v24 = vor.u32 %v4250_v14, %v3453_v15  ;;  %v4306_v32 = vld [vmem:[#allocation2 + $0x70c] sm:$0xf]  ;;  %v2912_v34 = vor.u32 %v4114_v25, %v2909_v26  ;;  %v4207_v26 = vld [vmem:[#allocation2 + $0x3ec] sm:$0xf0] }
  0x85   :  { %v4278_v45 = vld [vmem:[#allocation2 + $0x624] sm:$0xf0]  ;;  %v3677_v33 = vld [vmem:[#allocation2 + $0x728] sm:$0xf0]  ;;  %v3424_v36 = vor.u32 %v4242_v30, %v3421_v31  ;;  %v3779_v31 = vld [vmem:[#allocation2 + $0x7d0] sm:$0xf] }
  0x86   :  { %1776 = vmatpush.bf16.msra.mxu3 %v3612_v28  ;;  %1751 = vmatpush.bf16.msra.mxu1 %v3068_v37  ;;  %v3548_v57 = vor.u32 %v4278_v45, %v3547_v44  ;;  %v3712_v28 = vor.u32 %v4314_v16, %v3709_v17  ;;  %v4106_v37 = vld [vmem:[#allocation2 + $0xcc] sm:$0xf]  ;;  %v3680_v40 = vor.u32 %v4306_v32, %v3677_v33  ;;  %v4335_v32 = vld [vmem:[#allocation2 + $0x7ec] sm:$0xf0] }
  0x87   :  { %v4170_v39 = vld [vmem:[#allocation2 + $0x2cc] sm:$0xf] }
  0x88   :  { %1764 = vmatpush.bf16.msra.mxu2 %v3324_v38  ;;  %1739 = vmatpush.bf16.msra.mxu0 %v2780_v49  ;;  %v2877_v38 = vld [vmem:[#allocation2 + $0xe8] sm:$0xf0] }
  0x89   :  { %v3133_v41 = vld [vmem:[#allocation2 + $0x2e8] sm:$0xf0]  ;;  %v2880_v46 = vor.u32 %v4106_v37, %v2877_v38  ;;  %v2979_v37 = vld [vmem:[#allocation2 + $0x190] sm:$0xf] }
  0x8a   :  { %1777 = vmatpush.bf16.msra.mxu3 %v3580_v42  ;;  %1752 = vmatpush.bf16.msra.mxu1 %v3036_v53  ;;  %v4234_v42 = vld [vmem:[#allocation2 + $0x4cc] sm:$0xf]  ;;  %v3136_v47 = vor.u32 %v4170_v39, %v3133_v41  ;;  %v4135_v38 = vld [vmem:[#allocation2 + $0x1ac] sm:$0xf0] }
  0x8b   :  { %1740 = vmatmul.bf16.vlgmr.msra.gmra.mxu0 %v4530_v19  ;;  %v3389_v43 = vld [vmem:[#allocation2 + $0x4e8] sm:$0xf0]  ;;  %v3235_v39 = vld [vmem:[#allocation2 + $0x390] sm:$0xf] }
  0x8c   :  { %1765 = vmatpush.bf16.msra.mxu2 %v3292_v54  ;;  %1784 = vmatpush.bf16.msrb.mxu0 %v3008_v58  ;;  %v4298_v44 = vld [vmem:[#allocation2 + $0x6cc] sm:$0xf]  ;;  %v3392_v48 = vor.u32 %v4234_v42, %v3389_v43  ;;  %v4199_v41 = vld [vmem:[#allocation2 + $0x3ac] sm:$0xf0] }
  0x8d   :  { %1753 = vmatmul.bf16.vlgmr.msra.gmra.mxu1 %v4534_v22  ;;  %v3645_v45 = vld [vmem:[#allocation2 + $0x6e8] sm:$0xf0]  ;;  %v3491_v42 = vld [vmem:[#allocation2 + $0x590] sm:$0xf] }
  0x8e   :  { %1778 = vmatpush.bf16.msra.mxu3 %v3548_v57  ;;  %1797 = vmatpush.bf16.msrb.mxu1 %v3264_v59  ;;  %v4098_v49 = vld [vmem:[#allocation2 + $0x8c] sm:$0xf]  ;;  %v3648_v52 = vor.u32 %v4298_v44, %v3645_v45  ;;  %v4263_v43 = vld [vmem:[#allocation2 + $0x5ac] sm:$0xf0] }
  0x8f   :  { %1766 = vmatmul.bf16.vlgmr.msra.gmra.mxu2 %v4528_v18  ;;  %v2845_v50 = vld [vmem:[#allocation2 + $0xa8] sm:$0xf0]  ;;  %v3747_v44 = vld [vmem:[#allocation2 + $0x790] sm:$0xf] }
  0x90   :  { %1810 = vmatpush.bf16.msrb.mxu2 %v3520_v60  ;;  %1785 = vmatpush.bf16.msrb.mxu0 %v2976_v6  ;;  %v4162_v51 = vld [vmem:[#allocation2 + $0x28c] sm:$0xf]  ;;  %v2848_v58 = vor.u32 %v4098_v49, %v2845_v50  ;;  %v4327_v45 = vld [vmem:[#allocation2 + $0x7ac] sm:$0xf0] }
  0x91   :  { %1779 = vmatmul.bf16.vlgmr.msra.gmra.mxu3 %v4532_v20  ;;  %v3101_v53 = vld [vmem:[#allocation2 + $0x2a8] sm:$0xf0]  ;;  %v2947_v49 = vld [vmem:[#allocation2 + $0x150] sm:$0xf] }
  0x92   :  { %1823 = vmatpush.bf16.msrb.mxu3 %v3776_v0  ;;  %1798 = vmatpush.bf16.msrb.mxu1 %v3232_v7  ;;  %v4226_v54 = vld [vmem:[#allocation2 + $0x48c] sm:$0xf]  ;;  %v3104_v59 = vor.u32 %v4162_v51, %v3101_v53  ;;  %v4127_v50 = vld [vmem:[#allocation2 + $0x16c] sm:$0xf0] }
  0x93   :  { %v3357_v55 = vld [vmem:[#allocation2 + $0x4a8] sm:$0xf0]  ;;  %v3203_v51 = vld [vmem:[#allocation2 + $0x350] sm:$0xf] }
  0x94   :  { %1811 = vmatpush.bf16.msrb.mxu2 %v3488_v8  ;;  %1786 = vmatpush.bf16.msrb.mxu0 %v2944_v21  ;;  %v4290_v56 = vld [vmem:[#allocation2 + $0x68c] sm:$0xf]  ;;  %v3360_v60 = vor.u32 %v4226_v54, %v3357_v55  ;;  %v3011_v21 = vld [vmem:[#allocation2 + $0x1d0] sm:$0xf] }
  0x95   :  { %v3613_v57 = vld [vmem:[#allocation2 + $0x6a8] sm:$0xf0]  ;;  %v4191_v53 = vld [vmem:[#allocation2 + $0x36c] sm:$0xf0] }
  0x96   :  { %1824 = vmatpush.bf16.msrb.mxu3 %v3744_v12  ;;  %1799 = vmatpush.bf16.msrb.mxu1 %v3200_v23  ;;  %v4090_v61 = vld [vmem:[#allocation2 + $0x4c] sm:$0xf]  ;;  %v3616_v0 = vor.u32 %v4290_v56, %v3613_v57  ;;  %v4143_v23 = vld [vmem:[#allocation2 + $0x1ec] sm:$0xf0] }
  0x97   :  { %v2813_v62 = vld [vmem:[#allocation2 + $0x68] sm:$0xf0]  ;;  %v3459_v54 = vld [vmem:[#allocation2 + $0x550] sm:$0xf] }
  0x98   :  { %1812 = vmatpush.bf16.msrb.mxu2 %v3456_v24  ;;  %1787 = vmatpush.bf16.msrb.mxu0 %v2912_v34  ;;  %v3069_v1 = vld [vmem:[#allocation2 + $0x268] sm:$0xf0]  ;;  %v2816_v6 = vor.u32 %v4090_v61, %v2813_v62  ;;  %v3267_v24 = vld [vmem:[#allocation2 + $0x3d0] sm:$0xf]  ;;  %v3012_v34 = vor.u32 %v4143_v23, %v3011_v21 }
  0x99   :  { %v4218_v2 = vld [vmem:[#allocation2 + $0x44c] sm:$0xf]  ;;  %v3072_v9 = vor.u32 %v4154_v63, %v3069_v1  ;;  %v4255_v55 = vld [vmem:[#allocation2 + $0x56c] sm:$0xf0] }
  0x9a   :  { %1825 = vmatpush.bf16.msrb.mxu3 %v3712_v28  ;;  %1800 = vmatpush.bf16.msrb.mxu1 %v3168_v35  ;;  %v3325_v3 = vld [vmem:[#allocation2 + $0x468] sm:$0xf0]  ;;  %v4271_v28 = vld [vmem:[#allocation2 + $0x5ec] sm:$0xf0]  ;;  %v3268_v35 = vor.u32 %v4207_v26, %v3267_v24 }
  0x9b   :  { %v4282_v4 = vld [vmem:[#allocation2 + $0x64c] sm:$0xf]  ;;  %v3328_v10 = vor.u32 %v4218_v2, %v3325_v3  ;;  %v3715_v56 = vld [vmem:[#allocation2 + $0x750] sm:$0xf] }
  0x9c   :  { %1813 = vmatpush.bf16.msrb.mxu2 %v3424_v36  ;;  %1788 = vmatpush.bf16.msrb.mxu0 %v2880_v46  ;;  %v3581_v5 = vld [vmem:[#allocation2 + $0x668] sm:$0xf0]  ;;  %v3524_v36 = vor.u32 %v4271_v28, %v3523_v27  ;;  %v2980_v46 = vor.u32 %v4135_v38, %v2979_v37  ;;  %v4319_v57 = vld [vmem:[#allocation2 + $0x76c] sm:$0xf0] }
  0x9d   :  { %v4082_v7 = vld [vmem:[#allocation2 + $0xc] sm:$0xf]  ;;  %v3584_v14 = vor.u32 %v4282_v4, %v3581_v5  ;;  %v2915_v61 = vld [vmem:[#allocation2 + $0x110] sm:$0xf] }
  0x9e   :  { %1826 = vmatpush.bf16.msrb.mxu3 %v3680_v40  ;;  %1801 = vmatpush.bf16.msrb.mxu1 %v3136_v47  ;;  %v2781_v8 = vld [vmem:[#allocation2 + $0x28] sm:$0xf0]  ;;  %v3780_v40 = vor.u32 %v4335_v32, %v3779_v31  ;;  %v3236_v47 = vor.u32 %v4199_v41, %v3235_v39  ;;  %v4119_v62 = vld [vmem:[#allocation2 + $0x12c] sm:$0xf0] }
  0x9f   :  { %v4146_v11 = vld [vmem:[#allocation2 + $0x20c] sm:$0xf]  ;;  %v2784_v25 = vor.u32 %v4082_v7, %v2781_v8  ;;  %v3171_v63 = vld [vmem:[#allocation2 + $0x310] sm:$0xf] }
  0xa0   :  { %1814 = vmatpush.bf16.msrb.mxu2 %v3392_v48  ;;  %1789 = vmatpush.bf16.msrb.mxu0 %v2848_v58  ;;  %v3037_v12 = vld [vmem:[#allocation2 + $0x228] sm:$0xf0]  ;;  %v3492_v48 = vor.u32 %v4263_v43, %v3491_v42  ;;  %v2948_v58 = vor.u32 %v4127_v50, %v2947_v49  ;;  %v4183_v1 = vld [vmem:[#allocation2 + $0x32c] sm:$0xf0] }
  0xa1   :  { %v4210_v13 = vld [vmem:[#allocation2 + $0x40c] sm:$0xf]  ;;  %v3040_v29 = vor.u32 %v4146_v11, %v3037_v12  ;;  %v3427_v2 = vld [vmem:[#allocation2 + $0x510] sm:$0xf]  ;;  %v3172_v7 = vor.u32 %v4183_v1, %v3171_v63  ;;  %v4267_v63 = vld [vmem:[#allocation2 + $0x5d4] sm:$0xf] }
  0xa2   :  { %1827 = vmatpush.bf16.msrb.mxu3 %v3648_v52  ;;  %1802 = vmatpush.bf16.msrb.mxu1 %v3104_v59  ;;  %v3293_v15 = vld [vmem:[#allocation2 + $0x428] sm:$0xf0]  ;;  %v3748_v52 = vor.u32 %v4327_v45, %v3747_v44  ;;  %v3204_v59 = vor.u32 %v4191_v53, %v3203_v51  ;;  %v4247_v3 = vld [vmem:[#allocation2 + $0x52c] sm:$0xf0] }
  0xa3   :  { %v4274_v16 = vld [vmem:[#allocation2 + $0x60c] sm:$0xf]  ;;  %v3296_v30 = vor.u32 %v4210_v13, %v3293_v15  ;;  %v3683_v4 = vld [vmem:[#allocation2 + $0x710] sm:$0xf]  ;;  %v3428_v8 = vor.u32 %v4247_v3, %v3427_v2  ;;  %v4331_v3 = vld [vmem:[#allocation2 + $0x7d4] sm:$0xf] }
  0xa4   :  { %1815 = vmatpush.bf16.msrb.mxu2 %v3360_v60  ;;  %v3549_v17 = vld [vmem:[#allocation2 + $0x628] sm:$0xf0]  ;;  %1790 = vmatpush.bf16.msrb.mxu0 %v2816_v6  ;;  %v3460_v60 = vor.u32 %v4255_v55, %v3459_v54  ;;  %v4311_v5 = vld [vmem:[#allocation2 + $0x72c] sm:$0xf0]  ;;  %v2916_v6 = vor.u32 %v4119_v62, %v2915_v61  ;;  %v3269_v62 = vld [vmem:[#allocation2 + $0x3f0] sm:$0xf0] }
  0xa5   :  { %v3552_v33 = vor.u32 %v4274_v16, %v3549_v17  ;;  %v3139_v11 = vld [vmem:[#allocation2 + $0x2d0] sm:$0xf]  ;;  %v3684_v12 = vor.u32 %v4311_v5, %v3683_v4  ;;  %v3781_v4 = vld [vmem:[#allocation2 + $0x7f0] sm:$0xf0] }
  0xa6   :  { %1828 = vmatpush.bf16.msrb.mxu3 %v3616_v0  ;;  %1803 = vmatpush.bf16.msrb.mxu1 %v3072_v9  ;;  %v3716_v0 = vor.u32 %v4319_v57, %v3715_v56  ;;  %v2883_v9 = vld [vmem:[#allocation2 + $0xd0] sm:$0xf] }
  0xa7   :  { %v4175_v13 = vld [vmem:[#allocation2 + $0x2ec] sm:$0xf0] }
  0xa8   :  { %1816 = vmatpush.bf16.msrb.mxu2 %v3328_v10  ;;  %1791 = vmatpush.bf16.msrb.mxu0 %v2784_v25  ;;  %v4111_v10 = vld [vmem:[#allocation2 + $0xec] sm:$0xf0]  ;;  %v3140_v23 = vor.u32 %v4175_v13, %v3139_v11  ;;  %v4195_v11 = vld [vmem:[#allocation2 + $0x394] sm:$0xf] }
  0xa9   :  { %v4239_v15 = vld [vmem:[#allocation2 + $0x4ec] sm:$0xf0]  ;;  %v2884_v21 = vor.u32 %v4111_v10, %v2883_v9  ;;  %v4131_v9 = vld [vmem:[#allocation2 + $0x194] sm:$0xf] }
  0xaa   :  { %1829 = vmatpush.bf16.msrb.mxu3 %v3584_v14  ;;  %1804 = vmatpush.bf16.msrb.mxu1 %v3040_v29  ;;  %v3395_v14 = vld [vmem:[#allocation2 + $0x4d0] sm:$0xf]  ;;  %v2981_v10 = vld [vmem:[#allocation2 + $0x1b0] sm:$0xf0] }
  0xab   :  { %1792 = vmatmul.bf16.vlgmr.msrb.gmra.mxu0 %v4530_v19  ;;  %v3651_v16 = vld [vmem:[#allocation2 + $0x6d0] sm:$0xf]  ;;  %v3396_v24 = vor.u32 %v4239_v15, %v3395_v14  ;;  %v3237_v13 = vld [vmem:[#allocation2 + $0x3b0] sm:$0xf0] }
  0xac   :  { %1817 = vmatpush.bf16.msrb.mxu2 %v3296_v30  ;;  %1836 = vmatpush.bf16.msra.mxu0 %v3012_v34  ;;  %v4303_v17 = vld [vmem:[#allocation2 + $0x6ec] sm:$0xf0]  ;;  %v4259_v14 = vld [vmem:[#allocation2 + $0x594] sm:$0xf] }
  0xad   :  { %1805 = vmatmul.bf16.vlgmr.msrb.gmra.mxu1 %v4534_v22  ;;  %v2851_v25 = vld [vmem:[#allocation2 + $0x90] sm:$0xf]  ;;  %v3652_v28 = vor.u32 %v4303_v17, %v3651_v16  ;;  %v3493_v15 = vld [vmem:[#allocation2 + $0x5b0] sm:$0xf0] }
  0xae   :  { %1830 = vmatpush.bf16.msrb.mxu3 %v3552_v33  ;;  %1849 = vmatpush.bf16.msra.mxu1 %v3268_v35  ;;  %v4103_v26 = vld [vmem:[#allocation2 + $0xac] sm:$0xf0]  ;;  %v4323_v16 = vld [vmem:[#allocation2 + $0x794] sm:$0xf] }
  0xaf   :  { %1818 = vmatmul.bf16.vlgmr.msrb.gmra.mxu2 %v4528_v18  ;;  %v3107_v27 = vld [vmem:[#allocation2 + $0x290] sm:$0xf]  ;;  %v2852_v34 = vor.u32 %v4103_v26, %v2851_v25  ;;  %v3749_v17 = vld [vmem:[#allocation2 + $0x7b0] sm:$0xf0] }
  0xb0   :  { %1862 = vmatpush.bf16.msra.mxu2 %v3524_v36  ;;  %1837 = vmatpush.bf16.msra.mxu0 %v2980_v46  ;;  %v4167_v29 = vld [vmem:[#allocation2 + $0x2ac] sm:$0xf0]  ;;  %v4123_v25 = vld [vmem:[#allocation2 + $0x154] sm:$0xf] }
  0xb1   :  { %1831 = vmatmul.bf16.vlgmr.msrb.gmra.mxu3 %v4532_v20  ;;  %v3363_v30 = vld [vmem:[#allocation2 + $0x490] sm:$0xf]  ;;  %v3108_v35 = vor.u32 %v4167_v29, %v3107_v27  ;;  %v2949_v26 = vld [vmem:[#allocation2 + $0x170] sm:$0xf0] }
  0xb2   :  { %1875 = vmatpush.bf16.msra.mxu3 %v3780_v40  ;;  %1850 = vmatpush.bf16.msra.mxu1 %v3236_v47  ;;  %v4231_v31 = vld [vmem:[#allocation2 + $0x4ac] sm:$0xf0]  ;;  %v4187_v27 = vld [vmem:[#allocation2 + $0x354] sm:$0xf] }
  0xb3   :  { %v3619_v32 = vld [vmem:[#allocation2 + $0x690] sm:$0xf]  ;;  %v3364_v36 = vor.u32 %v4231_v31, %v3363_v30  ;;  %v3205_v29 = vld [vmem:[#allocation2 + $0x370] sm:$0xf0] }
  0xb4   :  { %1863 = vmatpush.bf16.msra.mxu2 %v3492_v48  ;;  %1838 = vmatpush.bf16.msra.mxu0 %v2948_v58  ;;  %v4295_v33 = vld [vmem:[#allocation2 + $0x6ac] sm:$0xf0]  ;;  %v4139_v58 = vld [vmem:[#allocation2 + $0x1d4] sm:$0xf] }
  0xb5   :  { %v2819_v37 = vld [vmem:[#allocation2 + $0x50] sm:$0xf]  ;;  %v3620_v40 = vor.u32 %v4295_v33, %v3619_v32  ;;  %v4251_v30 = vld [vmem:[#allocation2 + $0x554] sm:$0xf] }
  0xb6   :  { %1876 = vmatpush.bf16.msra.mxu3 %v3748_v52  ;;  %1851 = vmatpush.bf16.msra.mxu1 %v3204_v59  ;;  %v4095_v38 = vld [vmem:[#allocation2 + $0x6c] sm:$0xf0]  ;;  %v3013_v59 = vld [vmem:[#allocation2 + $0x1f0] sm:$0xf0] }
  0xb7   :  { %v3075_v39 = vld [vmem:[#allocation2 + $0x250] sm:$0xf]  ;;  %v2820_v46 = vor.u32 %v4095_v38, %v2819_v37  ;;  %v3461_v31 = vld [vmem:[#allocation2 + $0x570] sm:$0xf0] }
  0xb8   :  { %1864 = vmatpush.bf16.msra.mxu2 %v3460_v60  ;;  %1839 = vmatpush.bf16.msra.mxu0 %v2916_v6  ;;  %v4159_v41 = vld [vmem:[#allocation2 + $0x26c] sm:$0xf0]  ;;  %v4203_v60 = vld [vmem:[#allocation2 + $0x3d4] sm:$0xf]  ;;  %v3016_v6 = vor.u32 %v4139_v58, %v3013_v59 }
  0xb9   :  { %v3331_v42 = vld [vmem:[#allocation2 + $0x450] sm:$0xf]  ;;  %v3076_v49 = vor.u32 %v4159_v41, %v3075_v39  ;;  %v4315_v32 = vld [vmem:[#allocation2 + $0x754] sm:$0xf] }
  0xba   :  { %1877 = vmatpush.bf16.msra.mxu3 %v3716_v0  ;;  %1852 = vmatpush.bf16.msra.mxu1 %v3172_v7  ;;  %v4223_v43 = vld [vmem:[#allocation2 + $0x46c] sm:$0xf0]  ;;  %v3525_v0 = vld [vmem:[#allocation2 + $0x5f0] sm:$0xf0]  ;;  %v3272_v7 = vor.u32 %v4203_v60, %v3269_v62 }
  0xbb   :  { %v3587_v44 = vld [vmem:[#allocation2 + $0x650] sm:$0xf]  ;;  %v3332_v50 = vor.u32 %v4223_v43, %v3331_v42  ;;  %v3717_v33 = vld [vmem:[#allocation2 + $0x770] sm:$0xf0] }
  0xbc   :  { %1865 = vmatpush.bf16.msra.mxu2 %v3428_v8  ;;  %1840 = vmatpush.bf16.msra.mxu0 %v2884_v21  ;;  %v4287_v45 = vld [vmem:[#allocation2 + $0x66c] sm:$0xf0]  ;;  %v3528_v8 = vor.u32 %v4267_v63, %v3525_v0  ;;  %v2984_v21 = vor.u32 %v4131_v9, %v2981_v10  ;;  %v4115_v37 = vld [vmem:[#allocation2 + $0x114] sm:$0xf] }
  0xbd   :  { %v2787_v47 = vld [vmem:[#allocation2 + $0x10] sm:$0xf]  ;;  %v3588_v54 = vor.u32 %v4287_v45, %v3587_v44  ;;  %v2917_v38 = vld [vmem:[#allocation2 + $0x130] sm:$0xf0] }
  0xbe   :  { %1878 = vmatpush.bf16.msra.mxu3 %v3684_v12  ;;  %1853 = vmatpush.bf16.msra.mxu1 %v3140_v23  ;;  %v4087_v48 = vld [vmem:[#allocation2 + $0x2c] sm:$0xf0]  ;;  %v3784_v12 = vor.u32 %v4331_v3, %v3781_v4  ;;  %v3240_v23 = vor.u32 %v4195_v11, %v3237_v13  ;;  %v4179_v39 = vld [vmem:[#allocation2 + $0x314] sm:$0xf] }
  0xbf   :  { %v3043_v51 = vld [vmem:[#allocation2 + $0x210] sm:$0xf]  ;;  %v2788_v61 = vor.u32 %v4087_v48, %v2787_v47  ;;  %v3173_v41 = vld [vmem:[#allocation2 + $0x330] sm:$0xf0] }
  0xc0   :  { %1866 = vmatpush.bf16.msra.mxu2 %v3396_v24  ;;  %1841 = vmatpush.bf16.msra.mxu0 %v2852_v34  ;;  %v4151_v52 = vld [vmem:[#allocation2 + $0x22c] sm:$0xf0]  ;;  %v3496_v24 = vor.u32 %v4259_v14, %v3493_v15  ;;  %v2952_v34 = vor.u32 %v4123_v25, %v2949_v26  ;;  %v4243_v42 = vld [vmem:[#allocation2 + $0x514] sm:$0xf]  ;;  %v3176_v48 = vor.u32 %v4179_v39, %v3173_v41 }
  0xc1   :  { %v3299_v53 = vld [vmem:[#allocation2 + $0x410] sm:$0xf]  ;;  %v3044_v1 = vor.u32 %v4151_v52, %v3043_v51  ;;  %v3429_v43 = vld [vmem:[#allocation2 + $0x530] sm:$0xf0] }
  0xc2   :  { %1879 = vmatpush.bf16.msra.mxu3 %v3652_v28  ;;  %1854 = vmatpush.bf16.msra.mxu1 %v3108_v35  ;;  %v4215_v55 = vld [vmem:[#allocation2 + $0x42c] sm:$0xf0]  ;;  %v3752_v28 = vor.u32 %v4323_v16, %v3749_v17  ;;  %v3208_v35 = vor.u32 %v4187_v27, %v3205_v29  ;;  %v4307_v44 = vld [vmem:[#allocation2 + $0x714] sm:$0xf] }
  0xc3   :  { %v3555_v56 = vld [vmem:[#allocation2 + $0x610] sm:$0xf]  ;;  %v3300_v2 = vor.u32 %v4215_v55, %v3299_v53  ;;  %v3685_v45 = vld [vmem:[#allocation2 + $0x730] sm:$0xf0] }
  0xc4   :  { %1867 = vmatpush.bf16.msra.mxu2 %v3364_v36  ;;  %v4279_v57 = vld [vmem:[#allocation2 + $0x62c] sm:$0xf0]  ;;  %1842 = vmatpush.bf16.msra.mxu0 %v2820_v46  ;;  %v3464_v36 = vor.u32 %v4251_v30, %v3461_v31  ;;  %v2920_v46 = vor.u32 %v4115_v37, %v2917_v38  ;;  %v4107_v47 = vld [vmem:[#allocation2 + $0xd4] sm:$0xf]  ;;  %v3688_v53 = vor.u32 %v4307_v44, %v3685_v45  ;;  %v4144_v44 = vld [vmem:[#allocation2 + $0x1f4] sm:$0xf0] }
  0xc5   :  { %v3556_v5 = vor.u32 %v4279_v57, %v3555_v56  ;;  %v4171_v51 = vld [vmem:[#allocation2 + $0x2d4] sm:$0xf]  ;;  %v4559_v56 = vld [vmem:[%s4634_s2] sm:$0xff]  ;;  %v3275_v45 = vld [vmem:[#allocation2 + $0x3d8] sm:$0xf] }
  0xc6   :  { %1880 = vmatpush.bf16.msra.mxu3 %v3620_v40  ;;  %1855 = vmatpush.bf16.msra.mxu1 %v3076_v49  ;;  %v3720_v40 = vor.u32 %v4315_v32, %v3717_v33  ;;  %v3432_v49 = vor.u32 %v4243_v42, %v3429_v43  ;;  %v3141_v52 = vld [vmem:[#allocation2 + $0x2f0] sm:$0xf0]  ;;  %v3019_v43 = vld [vmem:[#allocation2 + $0x1d8] sm:$0xf] }
  0xc7   :  { %v3397_v55 = vld [vmem:[#allocation2 + $0x4f0] sm:$0xf0] }
  0xc8   :  { %1868 = vmatpush.bf16.msra.mxu2 %v3332_v50  ;;  %1843 = vmatpush.bf16.msra.mxu0 %v2788_v61  ;;  %v2885_v50 = vld [vmem:[#allocation2 + $0xf0] sm:$0xf0]  ;;  %v3144_v61 = vor.u32 %v4171_v51, %v3141_v52 }
  0xc9   :  { %v4299_v57 = vld [vmem:[#allocation2 + $0x6d4] sm:$0xf]  ;;  %v2888_v59 = vor.u32 %v4107_v47, %v2885_v50  ;;  %v4208_v47 = vld [vmem:[#allocation2 + $0x3f4] sm:$0xf0] }
  0xca   :  { %1881 = vmatpush.bf16.msra.mxu3 %v3588_v54  ;;  %1856 = vmatpush.bf16.msra.mxu1 %v3044_v1  ;;  %v4235_v54 = vld [vmem:[#allocation2 + $0x4d4] sm:$0xf]  ;;  %v318_v1 = vperm.slane %v4559_v56, 0 }
  0xcb   :  { %1844 = vmatmul.bf16.vlgmr.msra.gmra.mxu0 %v4530_v19  ;;  %v3653_v58 = vld [vmem:[#allocation2 + $0x6f0] sm:$0xf0]  ;;  %v3400_v62 = vor.u32 %v4235_v54, %v3397_v55  ;;  %v3787_v54 = vld [vmem:[#allocation2 + $0x7d8] sm:$0xf] }
  0xcc   :  { %1869 = vmatpush.bf16.msra.mxu2 %v3300_v2  ;;  %1888 = vmatpush.bf16.msrb.mxu0 %v3016_v6  ;;  %v4099_v60 = vld [vmem:[#allocation2 + $0x94] sm:$0xf]  ;;  %v3656_v2 = vor.u32 %v4299_v57, %v3653_v58  ;;  %v4336_v55 = vld [vmem:[#allocation2 + $0x7f4] sm:$0xf0] }
  0xcd   :  { %1857 = vmatmul.bf16.vlgmr.msra.gmra.mxu1 %v4534_v22  ;;  %v2853_v63 = vld [vmem:[#allocation2 + $0xb0] sm:$0xf0] }
  0xce   :  { %1882 = vmatpush.bf16.msra.mxu3 %v3556_v5  ;;  %1901 = vmatpush.bf16.msrb.mxu1 %v3272_v7  ;;  %v4163_v0 = vld [vmem:[#allocation2 + $0x294] sm:$0xf]  ;;  %v1637_v9 = vpop.f32.mrf.mxu0 }
  0xcf   :  { %1870 = vmatmul.bf16.vlgmr.msra.gmra.mxu2 %v4528_v18  ;;  %v3109_v3 = vld [vmem:[#allocation2 + $0x2b0] sm:$0xf0]  ;;  %v1638_v15 = vadd.f32 %v1637_v9, %v318_v1  ;;  %v3788_v1 = vor.u32 %v4336_v55, %v3787_v54 }
  0xd0   :  { %1914 = vmatpush.bf16.msrb.mxu2 %v3528_v8  ;;  %1889 = vmatpush.bf16.msrb.mxu0 %v2984_v21  ;;  %v4227_v4 = vld [vmem:[#allocation2 + $0x494] sm:$0xf]  ;;  %v2856_v8 = vor.u32 %v4099_v60, %v2853_v63  ;;  %v3112_v10 = vor.u32 %v4163_v0, %v3109_v3  ;;  %v1650_v16 = vpop.f32.mrf.mxu1  ;;  %v3276_v60 = vor.u32 %v4208_v47, %v3275_v45  ;;  %v4136_v63 = vld [vmem:[#allocation2 + $0x1b4] sm:$0xf0] }
  0xd1   :  { %1883 = vmatmul.bf16.vlgmr.msra.gmra.mxu3 %v4532_v20  ;;  %v3365_v5 = vld [vmem:[#allocation2 + $0x4b0] sm:$0xf0]  ;;  %v1651_v27 = vadd.f32 %v1650_v16, %v1638_v15  ;;  %v3243_v0 = vld [vmem:[#allocation2 + $0x398] sm:$0xf] }
  0xd2   :  { %1927 = vmatpush.bf16.msrb.mxu3 %v3784_v12  ;;  %1902 = vmatpush.bf16.msrb.mxu1 %v3240_v23  ;;  %v4291_v6 = vld [vmem:[#allocation2 + $0x694] sm:$0xf]  ;;  %v3368_v11 = vor.u32 %v4227_v4, %v3365_v5  ;;  %v3499_v3 = vld [vmem:[#allocation2 + $0x598] sm:$0xf] }
  0xd3   :  { %v3621_v7 = vld [vmem:[#allocation2 + $0x6b0] sm:$0xf0]  ;;  %v4264_v4 = vld [vmem:[#allocation2 + $0x5b4] sm:$0xf0] }
  0xd4   :  { %1915 = vmatpush.bf16.msrb.mxu2 %v3496_v24  ;;  %1890 = vmatpush.bf16.msrb.mxu0 %v2952_v34  ;;  %v4091_v12 = vld [vmem:[#allocation2 + $0x54] sm:$0xf]  ;;  %v3624_v17 = vor.u32 %v4291_v6, %v3621_v7  ;;  %v1676_v42 = vpop.f32.mrf.mxu3  ;;  %v3755_v5 = vld [vmem:[#allocation2 + $0x798] sm:$0xf] }
  0xd5   :  { %v2821_v13 = vld [vmem:[#allocation2 + $0x70] sm:$0xf0]  ;;  %v4328_v6 = vld [vmem:[#allocation2 + $0x7b4] sm:$0xf0] }
  0xd6   :  { %1928 = vmatpush.bf16.msrb.mxu3 %v3752_v28  ;;  %1903 = vmatpush.bf16.msrb.mxu1 %v3208_v35  ;;  %v4155_v14 = vld [vmem:[#allocation2 + $0x254] sm:$0xf]  ;;  %v2824_v28 = vor.u32 %v4091_v12, %v2821_v13  ;;  %v1639_v51 = vpop.f32.mrf.mxu0  ;;  %v2955_v12 = vld [vmem:[#allocation2 + $0x158] sm:$0xf]  ;;  %v3756_v15 = vor.u32 %v4328_v6, %v3755_v5 }
  0xd7   :  { %v3077_v21 = vld [vmem:[#allocation2 + $0x270] sm:$0xf0]  ;;  %v4128_v13 = vld [vmem:[#allocation2 + $0x174] sm:$0xf0] }
  0xd8   :  { %1916 = vmatpush.bf16.msrb.mxu2 %v3464_v36  ;;  %1891 = vmatpush.bf16.msrb.mxu0 %v2920_v46  ;;  %v4219_v23 = vld [vmem:[#allocation2 + $0x454] sm:$0xf]  ;;  %v3080_v31 = vor.u32 %v4155_v14, %v3077_v21  ;;  %v1663_v36 = vpop.f32.mrf.mxu2  ;;  %v1652_v57 = vpop.f32.mrf.mxu1  ;;  %v3211_v14 = vld [vmem:[#allocation2 + $0x358] sm:$0xf] }
  0xd9   :  { %v3333_v24 = vld [vmem:[#allocation2 + $0x470] sm:$0xf0]  ;;  %v1664_v41 = vadd.f32 %v1663_v36, %v1651_v27  ;;  %v4192_v16 = vld [vmem:[#allocation2 + $0x374] sm:$0xf0] }
  0xda   :  { %1929 = vmatpush.bf16.msrb.mxu3 %v3720_v40  ;;  %1904 = vmatpush.bf16.msrb.mxu1 %v3176_v48  ;;  %v4283_v25 = vld [vmem:[#allocation2 + $0x654] sm:$0xf]  ;;  %v3336_v32 = vor.u32 %v4219_v23, %v3333_v24  ;;  %v3531_v48 = vld [vmem:[#allocation2 + $0x5d8] sm:$0xf]  ;;  %v3212_v27 = vor.u32 %v4192_v16, %v3211_v14 }
  0xdb   :  { %v3589_v26 = vld [vmem:[#allocation2 + $0x670] sm:$0xf0]  ;;  %v4562_v50 = vadd.f32 %v1676_v42, %v1664_v41  ;;  %v4256_v21 = vld [vmem:[#allocation2 + $0x574] sm:$0xf0] }
  0xdc   :  { %1917 = vmatpush.bf16.msrb.mxu2 %v3432_v49  ;;  %1892 = vmatpush.bf16.msrb.mxu0 %v2888_v59  ;;  %v4083_v29 = vld [vmem:[#allocation2 + $0x14] sm:$0xf]  ;;  %v3592_v37 = vor.u32 %v4283_v25, %v3589_v26  ;;  %v4272_v49 = vld [vmem:[#allocation2 + $0x5f4] sm:$0xf0]  ;;  %v3020_v59 = vor.u32 %v4144_v44, %v3019_v43  ;;  %v1678_v9 = vpop.f32.mrf.mxu3  ;;  %v2956_v25 = vor.u32 %v4128_v13, %v2955_v12 }
  0xdd   :  { %v2789_v30 = vld [vmem:[#allocation2 + $0x30] sm:$0xf0]  ;;  %v3723_v23 = vld [vmem:[#allocation2 + $0x758] sm:$0xf] }
  0xde   :  { %1930 = vmatpush.bf16.msrb.mxu3 %v3688_v53  ;;  %1905 = vmatpush.bf16.msrb.mxu1 %v3144_v61  ;;  %v4147_v33 = vld [vmem:[#allocation2 + $0x214] sm:$0xf]  ;;  %v2792_v46 = vor.u32 %v4083_v29, %v2789_v30  ;;  %v3532_v61 = vor.u32 %v4272_v49, %v3531_v48  ;;  %v4320_v24 = vld [vmem:[#allocation2 + $0x774] sm:$0xf0] }
  0xdf   :  { %v3045_v34 = vld [vmem:[#allocation2 + $0x230] sm:$0xf0]  ;;  %v2923_v26 = vld [vmem:[#allocation2 + $0x118] sm:$0xf] }
  0xe0   :  { %1918 = vmatpush.bf16.msrb.mxu2 %v3400_v62  ;;  %1893 = vmatpush.bf16.msrb.mxu0 %v2856_v8  ;;  %v4211_v35 = vld [vmem:[#allocation2 + $0x414] sm:$0xf]  ;;  %v3048_v52 = vor.u32 %v4147_v33, %v3045_v34  ;;  %v2987_v62 = vld [vmem:[#allocation2 + $0x198] sm:$0xf]  ;;  %v1665_v7 = vpop.f32.mrf.mxu2 }
  0xe1   :  { %v3301_v38 = vld [vmem:[#allocation2 + $0x430] sm:$0xf0]  ;;  %v2988_v8 = vor.u32 %v4136_v63, %v2987_v62  ;;  %v4120_v29 = vld [vmem:[#allocation2 + $0x134] sm:$0xf0] }
  0xe2   :  { %1931 = vmatpush.bf16.msrb.mxu3 %v3656_v2  ;;  %1906 = vmatpush.bf16.msrb.mxu1 %v3112_v10  ;;  %v4275_v39 = vld [vmem:[#allocation2 + $0x614] sm:$0xf]  ;;  %v3304_v53 = vor.u32 %v4211_v35, %v3301_v38  ;;  %v4200_v2 = vld [vmem:[#allocation2 + $0x3b4] sm:$0xf0]  ;;  %v2924_v38 = vor.u32 %v4120_v29, %v2923_v26 }
  0xe3   :  { %v3557_v40 = vld [vmem:[#allocation2 + $0x630] sm:$0xf0]  ;;  %v3244_v10 = vor.u32 %v4200_v2, %v3243_v0  ;;  %v3179_v30 = vld [vmem:[#allocation2 + $0x318] sm:$0xf] }
  0xe4   :  { %1919 = vmatpush.bf16.msrb.mxu2 %v3368_v11  ;;  %1894 = vmatpush.bf16.msrb.mxu0 %v2824_v28  ;;  %v3560_v58 = vor.u32 %v4275_v39, %v3557_v40  ;;  %v3500_v11 = vor.u32 %v4264_v4, %v3499_v3  ;;  %v4184_v33 = vld [vmem:[#allocation2 + $0x334] sm:$0xf0] }
  0xe5   :  { %v3435_v34 = vld [vmem:[#allocation2 + $0x518] sm:$0xf]  ;;  %v3180_v40 = vor.u32 %v4184_v33, %v3179_v30 }
  0xe6   :  { %1932 = vmatpush.bf16.msrb.mxu3 %v3624_v17  ;;  %1907 = vmatpush.bf16.msrb.mxu1 %v3080_v31  ;;  %v3467_v17 = vld [vmem:[#allocation2 + $0x558] sm:$0xf]  ;;  %v319_v31 = vperm.slane %v4559_v56, 1 }
  0xe7   :  { %v3468_v28 = vor.u32 %v4256_v21, %v3467_v17  ;;  %v4248_v35 = vld [vmem:[#allocation2 + $0x534] sm:$0xf0] }
  0xe8   :  { %1920 = vmatpush.bf16.msrb.mxu2 %v3336_v32  ;;  %1895 = vmatpush.bf16.msrb.mxu0 %v2792_v46  ;;  %v3724_v32 = vor.u32 %v4320_v24, %v3723_v23  ;;  %v3691_v36 = vld [vmem:[#allocation2 + $0x718] sm:$0xf]  ;;  %v1689_v39 = vpop.f32.mrf.mxu0  ;;  %v3436_v41 = vor.u32 %v4248_v35, %v3435_v34 }
  0xe9   :  { %v2891_v42 = vld [vmem:[#allocation2 + $0xd8] sm:$0xf]  ;;  %v1690_v45 = vadd.f32 %v1689_v39, %v319_v31 }
  0xea   :  { %1933 = vmatpush.bf16.msrb.mxu3 %v3592_v37  ;;  %1908 = vmatpush.bf16.msrb.mxu1 %v3048_v52  ;;  %v4312_v37 = vld [vmem:[#allocation2 + $0x734] sm:$0xf0]  ;;  %v1702_v46 = vpop.f32.mrf.mxu1 }
  0xeb   :  { %1896 = vmatmul.bf16.vlgmr.msrb.gmra.mxu0 %v4530_v19  ;;  %v4112_v43 = vld [vmem:[#allocation2 + $0xf4] sm:$0xf0]  ;;  %v3692_v47 = vor.u32 %v4312_v37, %v3691_v36  ;;  %v1703_v54 = vadd.f32 %v1702_v46, %v1690_v45  ;;  %v4268_v45 = vld [vmem:[#allocation2 + $0x5dc] sm:$0xf] }
  0xec   :  { %1921 = vmatpush.bf16.msrb.mxu2 %v3304_v53  ;;  %1940 = vmatpush.bf16.msra.mxu0 %v3020_v59  ;;  %v3147_v44 = vld [vmem:[#allocation2 + $0x2d8] sm:$0xf]  ;;  %v2892_v55 = vor.u32 %v4112_v43, %v2891_v42  ;;  %v4204_v42 = vld [vmem:[#allocation2 + $0x3dc] sm:$0xf] }
  0xed   :  { %1909 = vmatmul.bf16.vlgmr.msrb.gmra.mxu1 %v4534_v22  ;;  %v4176_v48 = vld [vmem:[#allocation2 + $0x2f4] sm:$0xf0]  ;;  %v3533_v46 = vld [vmem:[#allocation2 + $0x5f8] sm:$0xf0] }
  0xee   :  { %1934 = vmatpush.bf16.msrb.mxu3 %v3560_v58  ;;  %1953 = vmatpush.bf16.msra.mxu1 %v3276_v60  ;;  %v3403_v49 = vld [vmem:[#allocation2 + $0x4d8] sm:$0xf]  ;;  %v3148_v57 = vor.u32 %v4176_v48, %v3147_v44  ;;  %v3277_v44 = vld [vmem:[#allocation2 + $0x3f8] sm:$0xf0] }
  0xef   :  { %1922 = vmatmul.bf16.vlgmr.msrb.gmra.mxu2 %v4528_v18  ;;  %v4240_v51 = vld [vmem:[#allocation2 + $0x4f4] sm:$0xf0] }
  0xf0   :  { %1966 = vmatpush.bf16.msra.mxu2 %v3532_v61  ;;  %1941 = vmatpush.bf16.msra.mxu0 %v2988_v8  ;;  %v3659_v52 = vld [vmem:[#allocation2 + $0x6d8] sm:$0xf]  ;;  %v3404_v58 = vor.u32 %v4240_v51, %v3403_v49  ;;  %v1691_v9 = vpop.f32.mrf.mxu0  ;;  %v4332_v49 = vld [vmem:[#allocation2 + $0x7dc] sm:$0xf] }
  0xf1   :  { %1935 = vmatmul.bf16.vlgmr.msrb.gmra.mxu3 %v4532_v20  ;;  %v4304_v53 = vld [vmem:[#allocation2 + $0x6f4] sm:$0xf0]  ;;  %v3789_v51 = vld [vmem:[#allocation2 + $0x7f8] sm:$0xf0] }
  0xf2   :  { %1979 = vmatpush.bf16.msra.mxu3 %v3788_v1  ;;  %1954 = vmatpush.bf16.msra.mxu1 %v3244_v10  ;;  %v2859_v59 = vld [vmem:[#allocation2 + $0x98] sm:$0xf]  ;;  %v1715_v62 = vpop.f32.mrf.mxu2  ;;  %v3660_v63 = vor.u32 %v4304_v53, %v3659_v52 }
  0xf3   :  { %v4104_v60 = vld [vmem:[#allocation2 + $0xb4] sm:$0xf0]  ;;  %v1716_v3 = vadd.f32 %v1715_v62, %v1703_v54  ;;  %v3280_v54 = vor.u32 %v4204_v42, %v3277_v44  ;;  %v4260_v62 = vld [vmem:[#allocation2 + $0x59c] sm:$0xf] }
  0xf4   :  { %1967 = vmatpush.bf16.msra.mxu2 %v3500_v11  ;;  %1942 = vmatpush.bf16.msra.mxu0 %v2956_v25  ;;  %v3115_v61 = vld [vmem:[#allocation2 + $0x298] sm:$0xf]  ;;  %v1728_v4 = vpop.f32.mrf.mxu3  ;;  %v2860_v7 = vor.u32 %v4104_v60, %v2859_v59  ;;  %v4196_v59 = vld [vmem:[#allocation2 + $0x39c] sm:$0xf]  ;;  %v3792_v60 = vor.u32 %v4332_v49, %v3789_v51 }
  0xf5   :  { %v4168_v0 = vld [vmem:[#allocation2 + $0x2b4] sm:$0xf0]  ;;  %v4569_v8 = vadd.f32 %v1728_v4, %v1716_v3  ;;  %v3405_v42 = vld [vmem:[#allocation2 + $0x4f8] sm:$0xf0] }
  0xf6   :  { %1980 = vmatpush.bf16.msra.mxu3 %v3756_v15  ;;  %1955 = vmatpush.bf16.msra.mxu1 %v3212_v27  ;;  %v3371_v1 = vld [vmem:[#allocation2 + $0x498] sm:$0xf]  ;;  %v3116_v10 = vor.u32 %v4168_v0, %v3115_v61  ;;  %v1704_v15 = vpop.f32.mrf.mxu1  ;;  %v3245_v61 = vld [vmem:[#allocation2 + $0x3b8] sm:$0xf0] }
  0xf7   :  { %v4232_v2 = vld [vmem:[#allocation2 + $0x4b4] sm:$0xf0]  ;;  %v4324_v0 = vld [vmem:[#allocation2 + $0x79c] sm:$0xf]  ;;  %v3248_v3 = vor.u32 %v4196_v59, %v3245_v61 }
  0xf8   :  { %1968 = vmatpush.bf16.msra.mxu2 %v3468_v28  ;;  %1943 = vmatpush.bf16.msra.mxu0 %v2924_v38  ;;  %v3627_v5 = vld [vmem:[#allocation2 + $0x698] sm:$0xf]  ;;  %v3372_v11 = vor.u32 %v4232_v2, %v3371_v1  ;;  %v3757_v1 = vld [vmem:[#allocation2 + $0x7b8] sm:$0xf0] }
  0xf9   :  { %v4296_v6 = vld [vmem:[#allocation2 + $0x6b4] sm:$0xf0]  ;;  %v3760_v9 = vor.u32 %v4324_v0, %v3757_v1  ;;  %v3661_v44 = vld [vmem:[#allocation2 + $0x6f8] sm:$0xf0] }
  0xfa   :  { %1981 = vmatpush.bf16.msra.mxu3 %v3724_v32  ;;  %1956 = vmatpush.bf16.msra.mxu1 %v3180_v40  ;;  %v2827_v12 = vld [vmem:[#allocation2 + $0x58] sm:$0xf]  ;;  %v3628_v16 = vor.u32 %v4296_v6, %v3627_v5  ;;  %v1717_v34 = vpop.f32.mrf.mxu2  ;;  %v4140_v40 = vld [vmem:[#allocation2 + $0x1dc] sm:$0xf] }
  0xfb   :  { %v4096_v13 = vld [vmem:[#allocation2 + $0x74] sm:$0xf0]  ;;  %v4124_v5 = vld [vmem:[#allocation2 + $0x15c] sm:$0xf] }
  0xfc   :  { %1969 = vmatpush.bf16.msra.mxu2 %v3436_v41  ;;  %1944 = vmatpush.bf16.msra.mxu0 %v2892_v55  ;;  %v3083_v14 = vld [vmem:[#allocation2 + $0x258] sm:$0xf]  ;;  %v2828_v26 = vor.u32 %v4096_v13, %v2827_v12  ;;  %v1730_v39 = vpop.f32.mrf.mxu3  ;;  %v3021_v41 = vld [vmem:[#allocation2 + $0x1f8] sm:$0xf0]  ;;  %v3536_v55 = vor.u32 %v4268_v45, %v3533_v46 }
  0xfd   :  { %v4160_v17 = vld [vmem:[#allocation2 + $0x274] sm:$0xf0]  ;;  %v3024_v53 = vor.u32 %v4140_v40, %v3021_v41  ;;  %v2957_v6 = vld [vmem:[#allocation2 + $0x178] sm:$0xf0] }
  0xfe   :  { %1982 = vmatpush.bf16.msra.mxu3 %v3692_v47  ;;  %1957 = vmatpush.bf16.msra.mxu1 %v3148_v57  ;;  %v3339_v21 = vld [vmem:[#allocation2 + $0x458] sm:$0xf]  ;;  %v3084_v29 = vor.u32 %v4160_v17, %v3083_v14  ;;  %v4132_v57 = vld [vmem:[#allocation2 + $0x19c] sm:$0xf]  ;;  %v2960_v15 = vor.u32 %v4124_v5, %v2957_v6 }
  0xff   :  { %v4224_v23 = vld [vmem:[#allocation2 + $0x474] sm:$0xf0]  ;;  %v3469_v12 = vld [vmem:[#allocation2 + $0x578] sm:$0xf0] }
 0x100   :  { %1970 = vmatpush.bf16.msra.mxu2 %v3404_v58  ;;  %v3595_v24 = vld [vmem:[#allocation2 + $0x658] sm:$0xf]  ;;  %1945 = vmatpush.bf16.msra.mxu0 %v2860_v7  ;;  %v3340_v30 = vor.u32 %v4224_v23, %v3339_v21  ;;  %v2989_v58 = vld [vmem:[#allocation2 + $0x1b8] sm:$0xf0] }
 0x101   :  { %v4288_v25 = vld [vmem:[#allocation2 + $0x674] sm:$0xf0]  ;;  %v2992_v2 = vor.u32 %v4132_v57, %v2989_v58  ;;  %v4188_v7 = vld [vmem:[#allocation2 + $0x35c] sm:$0xf] }
 0x102   :  { %1983 = vmatpush.bf16.msra.mxu3 %v3660_v63  ;;  %v2795_v27 = vld [vmem:[#allocation2 + $0x18] sm:$0xf]  ;;  %1958 = vmatpush.bf16.msra.mxu1 %v3116_v10  ;;  %v3596_v35 = vor.u32 %v4288_v25, %v3595_v24  ;;  %v3501_v63 = vld [vmem:[#allocation2 + $0x5b8] sm:$0xf0] }
 0x103   :  { %v4088_v28 = vld [vmem:[#allocation2 + $0x34] sm:$0xf0]  ;;  %v3504_v4 = vor.u32 %v4260_v62, %v3501_v63  ;;  %v3213_v10 = vld [vmem:[#allocation2 + $0x378] sm:$0xf0] }
 0x104   :  { %1971 = vmatpush.bf16.msra.mxu2 %v3372_v11  ;;  %v3051_v31 = vld [vmem:[#allocation2 + $0x218] sm:$0xf]  ;;  %1946 = vmatpush.bf16.msra.mxu0 %v2828_v26  ;;  %v2796_v43 = vor.u32 %v4088_v28, %v2795_v27  ;;  %v4252_v11 = vld [vmem:[#allocation2 + $0x55c] sm:$0xf] }
 0x105   :  { %v4152_v32 = vld [vmem:[#allocation2 + $0x234] sm:$0xf0]  ;;  %v4316_v13 = vld [vmem:[#allocation2 + $0x75c] sm:$0xf]  ;;  %v3472_v17 = vor.u32 %v4252_v11, %v3469_v12 }
 0x106   :  { %v3307_v33 = vld [vmem:[#allocation2 + $0x418] sm:$0xf]  ;;  %1984 = vmatpush.bf16.msra.mxu3 %v3628_v16  ;;  %1959 = vmatpush.bf16.msra.mxu1 %v3084_v29  ;;  %v3052_v47 = vor.u32 %v4152_v32, %v3051_v31  ;;  %v3725_v14 = vld [vmem:[#allocation2 + $0x778] sm:$0xf0]  ;;  %v3216_v16 = vor.u32 %v4188_v7, %v3213_v10 }
 0x107   :  { %v4216_v36 = vld [vmem:[#allocation2 + $0x434] sm:$0xf0]  ;;  %v4116_v21 = vld [vmem:[#allocation2 + $0x11c] sm:$0xf]  ;;  %v3728_v25 = vor.u32 %v4316_v13, %v3725_v14 }
 0x108   :  { %v3563_v37 = vld [vmem:[#allocation2 + $0x618] sm:$0xf]  ;;  %1972 = vmatpush.bf16.msra.mxu2 %v3340_v30  ;;  %v3308_v48 = vor.u32 %v4216_v36, %v3307_v33  ;;  %1947 = vmatpush.bf16.msra.mxu0 %v2796_v43  ;;  %v2925_v23 = vld [vmem:[#allocation2 + $0x138] sm:$0xf0]  ;;  %v4575_v32 = vpop.f32.mrf.mxu0 }
 0x109   :  { %v4280_v38 = vld [vmem:[#allocation2 + $0x634] sm:$0xf0]  ;;  %v4180_v24 = vld [vmem:[#allocation2 + $0x31c] sm:$0xf]  ;;  %v2928_v31 = vor.u32 %v4116_v21, %v2925_v23 }
 0x10a   :  { %1985 = vmatpush.bf16.msra.mxu3 %v3596_v35  ;;  %v3564_v52 = vor.u32 %v4280_v38, %v3563_v37  ;;  %1960 = vmatpush.bf16.msra.mxu1 %v3052_v47  ;;  %v3181_v26 = vld [vmem:[#allocation2 + $0x338] sm:$0xf0]  ;;  %v4577_v38 = vpop.f32.mrf.mxu1 }
 0x10b   :  { %1948 = vmatmul.bf16.vlgmr.msra.gmra.mxu0 %v4530_v19  ;;  %v4244_v27 = vld [vmem:[#allocation2 + $0x51c] sm:$0xf]  ;;  %v3184_v33 = vor.u32 %v4180_v24, %v3181_v26 }
 0x10c   :  { %1973 = vmatpush.bf16.msra.mxu2 %v3308_v48  ;;  %1992 = vmatpush.bf16.msrb.mxu0 %v3024_v53  ;;  %v3437_v28 = vld [vmem:[#allocation2 + $0x538] sm:$0xf0] }
 0x10d   :  { %1961 = vmatmul.bf16.vlgmr.msra.gmra.mxu1 %v4534_v22  ;;  %v4308_v29 = vld [vmem:[#allocation2 + $0x71c] sm:$0xf]  ;;  %v3440_v34 = vor.u32 %v4244_v27, %v3437_v28 }
 0x10e   :  { %1986 = vmatpush.bf16.msra.mxu3 %v3564_v52  ;;  %2005 = vmatpush.bf16.msrb.mxu1 %v3280_v54  ;;  %v3693_v30 = vld [vmem:[#allocation2 + $0x738] sm:$0xf0] }
 0x10f   :  { %1974 = vmatmul.bf16.vlgmr.msra.gmra.mxu2 %v4528_v18  ;;  %v4108_v35 = vld [vmem:[#allocation2 + $0xdc] sm:$0xf]  ;;  %v3696_v39 = vor.u32 %v4308_v29, %v3693_v30 }
 0x110   :  { %2018 = vmatpush.bf16.msrb.mxu2 %v3536_v55  ;;  %1993 = vmatpush.bf16.msrb.mxu0 %v2992_v2  ;;  %v2893_v36 = vld [vmem:[#allocation2 + $0xf8] sm:$0xf0]  ;;  %v1743_v62 = vpop.f32.mrf.mxu0 }
 0x111   :  { %1987 = vmatmul.bf16.vlgmr.msra.gmra.mxu3 %v4532_v20  ;;  %v4172_v37 = vld [vmem:[#allocation2 + $0x2dc] sm:$0xf]  ;;  %v2896_v45 = vor.u32 %v4108_v35, %v2893_v36 }
 0x112   :  { %2031 = vmatpush.bf16.msrb.mxu3 %v3792_v60  ;;  %2006 = vmatpush.bf16.msrb.mxu1 %v3248_v3  ;;  %v3149_v40 = vld [vmem:[#allocation2 + $0x2f8] sm:$0xf0]  ;;  %v4579_v52 = vpop.f32.mrf.mxu2 }
 0x113   :  { %v4236_v41 = vld [vmem:[#allocation2 + $0x4dc] sm:$0xf]  ;;  %v3152_v46 = vor.u32 %v4172_v37, %v3149_v40  ;;  %v4343_v40 = vld [vmem:[#allocation4 + $0x30] sm:$0xff] }
 0x114   :  { %2019 = vmatpush.bf16.msrb.mxu2 %v3504_v4  ;;  %1994 = vmatpush.bf16.msrb.mxu0 %v2960_v15  ;;  %v4300_v43 = vld [vmem:[#allocation2 + $0x6dc] sm:$0xf]  ;;  %v3408_v47 = vor.u32 %v4236_v41, %v3405_v42  ;;  %v4581_v58 = vpop.f32.mrf.mxu3  ;;  %v1756_v4 = vpop.f32.mrf.mxu1  ;;  %v4351_v41 = vld [vmem:[#allocation4 + $0x70] sm:$0xff] }
 0x115   :  { %v4100_v48 = vld [vmem:[#allocation2 + $0x9c] sm:$0xf]  ;;  %v3664_v53 = vor.u32 %v4300_v43, %v3661_v44  ;;  %v4359_v42 = vld [vmem:[#allocation4 + $0xb0] sm:$0xff]  ;;  %v4342_v44 = vld [vmem:[#allocation4 + $0x28] sm:$0xff] }
 0x116   :  { %2032 = vmatpush.bf16.msrb.mxu3 %v3760_v9  ;;  %2007 = vmatpush.bf16.msrb.mxu1 %v3216_v16  ;;  %v2861_v49 = vld [vmem:[#allocation2 + $0xb8] sm:$0xf0]  ;;  %v4367_v43 = vld [vmem:[#allocation4 + $0xf0] sm:$0xff] }
 0x117   :  { %v4164_v51 = vld [vmem:[#allocation2 + $0x29c] sm:$0xf]  ;;  %v2864_v61 = vor.u32 %v4100_v48, %v2861_v49  ;;  %v321_v48 = vperm.slane %v4559_v56, 3  ;;  %v4355_v4 = vld [vmem:[#allocation4 + $0x90] sm:$0xff] }
 0x118   :  { %2020 = vmatpush.bf16.msrb.mxu2 %v3472_v17  ;;  %1995 = vmatpush.bf16.msrb.mxu0 %v2928_v31  ;;  %v3117_v54 = vld [vmem:[#allocation2 + $0x2b8] sm:$0xf0] }
 0x119   :  { %v4228_v55 = vld [vmem:[#allocation2 + $0x49c] sm:$0xf]  ;;  %v3120_v63 = vor.u32 %v4164_v51, %v3117_v54 }
 0x11a   :  { %2033 = vmatpush.bf16.msrb.mxu3 %v3728_v25  ;;  %2008 = vmatpush.bf16.msrb.mxu1 %v3184_v33  ;;  %v3373_v57 = vld [vmem:[#allocation2 + $0x4b8] sm:$0xf0]  ;;  %v1769_v21 = vpop.f32.mrf.mxu2 }
 0x11b   :  { %v4292_v59 = vld [vmem:[#allocation2 + $0x69c] sm:$0xf]  ;;  %v3376_v0 = vor.u32 %v4228_v55, %v3373_v57  ;;  %v4365_v55 = vld [vmem:[#allocation4 + $0xe0] sm:$0xff] }
 0x11c   :  { %2021 = vmatpush.bf16.msrb.mxu2 %v3440_v34  ;;  %v3629_v60 = vld [vmem:[#allocation2 + $0x6b8] sm:$0xf0]  ;;  %1996 = vmatpush.bf16.msrb.mxu0 %v2896_v45  ;;  %v1782_v27 = vpop.f32.mrf.mxu3  ;;  %v4350_v45 = vld [vmem:[#allocation4 + $0x68] sm:$0xff]  ;;  %v4345_v21 = vld [vmem:[#allocation4 + $0x40] sm:$0xff] }
 0x11d   :  { %v4092_v1 = vld [vmem:[#allocation2 + $0x5c] sm:$0xf]  ;;  %v3632_v5 = vor.u32 %v4292_v59, %v3629_v60 }
 0x11e   :  { %2034 = vmatpush.bf16.msrb.mxu3 %v3696_v39  ;;  %2009 = vmatpush.bf16.msrb.mxu1 %v3152_v46  ;;  %v2829_v2 = vld [vmem:[#allocation2 + $0x78] sm:$0xf0]  ;;  %v4358_v46 = vld [vmem:[#allocation4 + $0xa8] sm:$0xff] }
 0x11f   :  { %v4156_v3 = vld [vmem:[#allocation2 + $0x25c] sm:$0xf]  ;;  %v2832_v12 = vor.u32 %v4092_v1, %v2829_v2  ;;  %v4339_v2 = vld [vmem:[#allocation4 + $0x10] sm:$0xff] }
 0x120   :  { %2022 = vmatpush.bf16.msrb.mxu2 %v3408_v47  ;;  %v3085_v6 = vld [vmem:[#allocation2 + $0x278] sm:$0xf0]  ;;  %1997 = vmatpush.bf16.msrb.mxu0 %v2864_v61  ;;  %v320_v47 = vperm.slane %v4559_v56, 2 }
 0x121   :  { %v4220_v7 = vld [vmem:[#allocation2 + $0x45c] sm:$0xf]  ;;  %v3088_v13 = vor.u32 %v4156_v3, %v3085_v6 }
 0x122   :  { %2035 = vmatpush.bf16.msrb.mxu3 %v3664_v53  ;;  %v3341_v9 = vld [vmem:[#allocation2 + $0x478] sm:$0xf0]  ;;  %2010 = vmatpush.bf16.msrb.mxu1 %v3120_v63  ;;  %v1742_v53 = vadd.f32 %v4575_v32, %v320_v47  ;;  %v4347_v32 = vld [vmem:[#allocation4 + $0x50] sm:$0xff] }
 0x123   :  { %v4284_v10 = vld [vmem:[#allocation2 + $0x65c] sm:$0xf]  ;;  %v3344_v14 = vor.u32 %v4220_v7, %v3341_v9  ;;  %v4363_v9 = vld [vmem:[#allocation4 + $0xd0] sm:$0xff] }
 0x124   :  { %v3597_v11 = vld [vmem:[#allocation2 + $0x678] sm:$0xf0]  ;;  %2023 = vmatpush.bf16.msrb.mxu2 %v3376_v0  ;;  %1998 = vmatpush.bf16.msrb.mxu0 %v2832_v12  ;;  %v1755_v63 = vadd.f32 %v4577_v38, %v1742_v53  ;;  %v4346_v38 = vld [vmem:[#allocation4 + $0x48] sm:$0xff] }
 0x125   :  { %v4084_v15 = vld [vmem:[#allocation2 + $0x1c] sm:$0xf]  ;;  %v3600_v23 = vor.u32 %v4284_v10, %v3597_v11  ;;  %v4338_v10 = vld [vmem:[#allocation4 + $0x8] sm:$0xff] }
 0x126   :  { %v2797_v16 = vld [vmem:[#allocation2 + $0x38] sm:$0xf0]  ;;  %2036 = vmatpush.bf16.msrb.mxu3 %v3632_v5  ;;  %2011 = vmatpush.bf16.msrb.mxu1 %v3088_v13  ;;  %v1768_v6 = vadd.f32 %v4579_v52, %v1755_v63  ;;  %v4354_v11 = vld [vmem:[#allocation4 + $0x88] sm:$0xff]  ;;  %v2044_v52 = vmax.f32 %v4562_v50, 0.0  ;;  %v4383_v50 = vld [vmem:[#allocation4 + $0x170] sm:$0xff] }
 0x127   :  { %v4148_v17 = vld [vmem:[#allocation2 + $0x21c] sm:$0xf]  ;;  %v2800_v30 = vor.u32 %v4084_v15, %v2797_v16  ;;  %v4362_v16 = vld [vmem:[#allocation4 + $0xc8] sm:$0xff] }
 0x128   :  { %v3053_v24 = vld [vmem:[#allocation2 + $0x238] sm:$0xf0]  ;;  %2024 = vmatpush.bf16.msrb.mxu2 %v3344_v14  ;;  %v1793_v49 = vpop.f32.mrf.mxu0  ;;  %v1781_v14 = vadd.f32 %v4581_v58, %v1768_v6  ;;  %v4361_v58 = vld [vmem:[#allocation4 + $0xc0] sm:$0xff]  ;;  %v4378_v53 = vld [vmem:[#allocation4 + $0x148] sm:$0xff] }
 0x129   :  { %v4212_v25 = vld [vmem:[#allocation2 + $0x41c] sm:$0xf]  ;;  %v3056_v31 = vor.u32 %v4148_v17, %v3053_v24  ;;  %1999 = vmatpush.bf16.msrb.mxu0 %v2800_v30  ;;  %v1794_v54 = vadd.f32 %v1793_v49, %v321_v48  ;;  %v4337_v17 = vld [vmem:[#allocation4] sm:$0xff]  ;;  %v2045_v24 = vmax.f32 %v4569_v8, 0.0  ;;  %v4374_v8 = vld [vmem:[#allocation4 + $0x128] sm:$0xff] }
 0x12a   :  { %v3309_v26 = vld [vmem:[#allocation2 + $0x438] sm:$0xf0]  ;;  %2037 = vmatpush.bf16.msrb.mxu3 %v3600_v23  ;;  %v1806_v51 = vpop.f32.mrf.mxu1  ;;  %v4353_v23 = vld [vmem:[#allocation4 + $0x80] sm:$0xff]  ;;  %v2046_v27 = vmax.f32 %v1781_v14, 0.0  ;;  %v4387_v6 = vld [vmem:[#allocation4 + $0x190] sm:$0xff] }
 0x12b   :  { %v4276_v28 = vld [vmem:[#allocation2 + $0x61c] sm:$0xf]  ;;  %v3312_v33 = vor.u32 %v4212_v25, %v3309_v26  ;;  %2012 = vmatpush.bf16.msrb.mxu1 %v3056_v31  ;;  %v1807_v0 = vadd.f32 %v1806_v51, %v1794_v54  ;;  %v2053_v30 = vpack.c.bf16 %v2045_v24, %v2045_v24  ;;  %v4375_v31 = vld [vmem:[#allocation4 + $0x130] sm:$0xff]  ;;  %v4370_v51 = vld [vmem:[#allocation4 + $0x108] sm:$0xff] }
 0x12c   :  { %v3565_v29 = vld [vmem:[#allocation2 + $0x638] sm:$0xf0]  ;;  %2000 = vmatmul.bf16.vlgmr.msrb.gmra.mxu0 %v4530_v19  ;;  %v4366_v19 = vld [vmem:[#allocation4 + $0xe8] sm:$0xff] }
 0x12d   :  { %v3568_v34 = vor.u32 %v4276_v28, %v3565_v29  ;;  %v4344_v35 = vld [vmem:[#allocation4 + $0x38] sm:$0xff]  ;;  %2025 = vmatpush.bf16.msrb.mxu2 %v3312_v33  ;;  %v2052_v29 = vpack.c.bf16 %v2044_v52, %v2044_v52  ;;  %v2054_v33 = vpack.c.bf16 %v2046_v27, %v2046_v27 }
 0x12e   :  { %v4352_v36 = vld [vmem:[#allocation4 + $0x78] sm:$0xff]  ;;  %2576 = vmatpush.bf16.msra.mxu0 %v4344_v35  ;;  %2013 = vmatmul.bf16.vlgmr.msrb.gmra.mxu1 %v4534_v22  ;;  %v4341_v22 = vld [vmem:[#allocation4 + $0x20] sm:$0xff]  ;;  %v4382_v35 = vld [vmem:[#allocation4 + $0x168] sm:$0xff] }
 0x12f   :  { %v4360_v37 = vld [vmem:[#allocation4 + $0xb8] sm:$0xff]  ;;  %2038 = vmatpush.bf16.msrb.mxu3 %v3568_v34  ;;  %2589 = vmatpush.bf16.msra.mxu1 %v4352_v36  ;;  %v322_v36 = vperm.slane %v4559_v56, 4  ;;  %v4379_v56 = vld [vmem:[#allocation4 + $0x150] sm:$0xff] }
 0x130   :  { %v4368_v39 = vld [vmem:[#allocation4 + $0xf8] sm:$0xff]  ;;  %2026 = vmatmul.bf16.vlgmr.msrb.gmra.mxu2 %v4528_v18  ;;  %v4349_v18 = vld [vmem:[#allocation4 + $0x60] sm:$0xff]  ;;  %v1795_v3 = vpop.f32.mrf.mxu0 }
 0x131   :  { %2602 = vmatpush.bf16.msra.mxu2 %v4360_v37  ;;  %v4340_v57 = vld [vmem:[#allocation4 + $0x18] sm:$0xff]  ;;  %v4373_v37 = vld [vmem:[#allocation4 + $0x120] sm:$0xff] }
 0x132   :  { %2039 = vmatmul.bf16.vlgmr.msrb.gmra.mxu3 %v4532_v20  ;;  %2577 = vmatpush.bf16.msra.mxu0 %v4343_v40  ;;  %v4357_v20 = vld [vmem:[#allocation4 + $0xa0] sm:$0xff]  ;;  %v4348_v59 = vld [vmem:[#allocation4 + $0x58] sm:$0xff]  ;;  %v1819_v61 = vpop.f32.mrf.mxu2  ;;  %v1808_v5 = vpop.f32.mrf.mxu1 }
 0x133   :  { %2615 = vmatpush.bf16.msra.mxu3 %v4368_v39  ;;  %2590 = vmatpush.bf16.msra.mxu1 %v4351_v41  ;;  %v4356_v60 = vld [vmem:[#allocation4 + $0x98] sm:$0xff]  ;;  %v1820_v7 = vadd.f32 %v1819_v61, %v1807_v0  ;;  %v4381_v40 = vld [vmem:[#allocation4 + $0x160] sm:$0xff] }
 0x134   :  { %v1832_v62 = vpop.f32.mrf.mxu3  ;;  %v4364_v1 = vld [vmem:[#allocation4 + $0xd8] sm:$0xff]  ;;  %v4377_v61 = vld [vmem:[#allocation4 + $0x140] sm:$0xff] }
 0x135   :  { %2603 = vmatpush.bf16.msra.mxu2 %v4359_v42  ;;  %v1833_v15 = vadd.f32 %v1832_v62, %v1820_v7  ;;  %v4376_v25 = vld [vmem:[#allocation4 + $0x138] sm:$0xff]  ;;  %v4390_v62 = vld [vmem:[#allocation4 + $0x1a8] sm:$0xff]  ;;  %v4389_v0 = vld [vmem:[#allocation4 + $0x1a0] sm:$0xff] }
 0x136   :  { %2578 = vmatpush.bf16.msra.mxu0 %v4342_v44  ;;  %v4384_v26 = vld [vmem:[#allocation4 + $0x178] sm:$0xff] }
 0x137   :  { %2616 = vmatpush.bf16.msra.mxu3 %v4367_v43  ;;  %2591 = vmatpush.bf16.msra.mxu1 %v4350_v45  ;;  %v2047_v28 = vmax.f32 %v1833_v15, 0.0  ;;  %v4372_v44 = vld [vmem:[#allocation4 + $0x118] sm:$0xff] }
 0x138   :  { %v4380_v45 = vld [vmem:[#allocation4 + $0x158] sm:$0xff] }
 0x139   :  { %2604 = vmatpush.bf16.msra.mxu2 %v4358_v46  ;;  %v2055_v34 = vpack.c.bf16 %v2047_v28, %v2047_v28  ;;  %v4396_v28 = vld [vmem:[#allocation4 + $0x1d8] sm:$0xff] }
 0x13a   :  { %2579 = vmatpush.bf16.msra.mxu0 %v4341_v22  ;;  %v1821_v12 = vpop.f32.mrf.mxu2 }
 0x13b   :  { %2617 = vmatpush.bf16.msra.mxu3 %v4366_v19  ;;  %2592 = vmatpush.bf16.msra.mxu1 %v4349_v18  ;;  %v4371_v19 = vld [vmem:[#allocation4 + $0x110] sm:$0xff]  ;;  %v4392_v18 = vld [vmem:[#allocation4 + $0x1b8] sm:$0xff] }
 0x13c   :  { %v1834_v13 = vpop.f32.mrf.mxu3 }
 0x13d   :  { %2605 = vmatpush.bf16.msra.mxu2 %v4357_v20 }
 0x13e   :  { %2580 = vmatpush.bf16.msra.mxu0 %v4340_v57 }
 0x13f   :  { %2618 = vmatpush.bf16.msra.mxu3 %v4365_v55  ;;  %2593 = vmatpush.bf16.msra.mxu1 %v4348_v59  ;;  %v4391_v55 = vld [vmem:[#allocation4 + $0x1b0] sm:$0xff] }
 0x141   :  { %2606 = vmatpush.bf16.msra.mxu2 %v4356_v60  ;;  %v4369_v60 = vld [vmem:[#allocation4 + $0x100] sm:$0xff] }
 0x142   :  { %2581 = vmatpush.bf16.msra.mxu0 %v4339_v2  ;;  %v4417_v2 = vld [vmem:[%s4634_s2] sm:$0xff] }
 0x143   :  { %2619 = vmatpush.bf16.msra.mxu3 %v4364_v1  ;;  %2594 = vmatpush.bf16.msra.mxu1 %v4347_v32  ;;  %v4388_v1 = vld [vmem:[#allocation4 + $0x198] sm:$0xff]  ;;  %v323_v3 = vperm.slane %v4417_v2, 5  ;;  %v324_v27 = vperm.slane %v4417_v2, 6 }
 0x145   :  { %2607 = vmatpush.bf16.msra.mxu2 %v4355_v4 }
 0x146   :  { %2582 = vmatpush.bf16.msra.mxu0 %v4338_v10 }
 0x147   :  { %2620 = vmatpush.bf16.msra.mxu3 %v4363_v9  ;;  %2595 = vmatpush.bf16.msra.mxu1 %v4346_v38 }
 0x148   :  { %v1845_v39 = vpop.f32.mrf.mxu0 }
 0x149   :  { %2608 = vmatpush.bf16.msra.mxu2 %v4354_v11  ;;  %v1846_v41 = vadd.f32 %v1845_v39, %v322_v36  ;;  %v4386_v11 = vld [vmem:[#allocation4 + $0x188] sm:$0xff] }
 0x14a   :  { %2583 = vmatpush.bf16.msra.mxu0 %v4337_v17  ;;  %v1858_v42 = vpop.f32.mrf.mxu1  ;;  %v4400_v17 = vld [vmem:[#allocation4 + $0x1f8] sm:$0xff] }
 0x14b   :  { %2621 = vmatpush.bf16.msra.mxu3 %v4362_v16  ;;  %2596 = vmatpush.bf16.msra.mxu1 %v4345_v21  ;;  %v1859_v43 = vadd.f32 %v1858_v42, %v1846_v41  ;;  %v4385_v16 = vld [vmem:[#allocation4 + $0x180] sm:$0xff]  ;;  %v4399_v21 = vld [vmem:[#allocation4 + $0x1f0] sm:$0xff] }
 0x14d   :  { %2609 = vmatpush.bf16.msra.mxu2 %v4353_v23  ;;  %2584 = vmatmul.bf16.vlgmr.msra.gmra.mxu0 %v2052_v29  ;;  %v4395_v29 = vld [vmem:[#allocation4 + $0x1d0] sm:$0xff] }
 0x14e   :  { %2628 = vmatpush.bf16.msrb.mxu0 %v4376_v25  ;;  %2597 = vmatmul.bf16.vlgmr.msra.gmra.mxu1 %v2053_v30  ;;  %v4398_v25 = vld [vmem:[#allocation4 + $0x1e8] sm:$0xff] }
 0x14f   :  { %2641 = vmatpush.bf16.msrb.mxu1 %v4384_v26  ;;  %2622 = vmatpush.bf16.msra.mxu3 %v4361_v58  ;;  %v4397_v26 = vld [vmem:[#allocation4 + $0x1e0] sm:$0xff] }
 0x150   :  { %2610 = vmatmul.bf16.vlgmr.msra.gmra.mxu2 %v2054_v33  ;;  %v1847_v22 = vpop.f32.mrf.mxu0 }
 0x151   :  { %2654 = vmatpush.bf16.msrb.mxu2 %v4392_v18 }
 0x152   :  { %2629 = vmatpush.bf16.msrb.mxu0 %v4375_v31  ;;  %2623 = vmatmul.bf16.vlgmr.msra.gmra.mxu3 %v2055_v34  ;;  %v1871_v46 = vpop.f32.mrf.mxu2  ;;  %v1860_v49 = vpop.f32.mrf.mxu1  ;;  %v4394_v34 = vld [vmem:[#allocation4 + $0x1c8] sm:$0xff] }
 0x153   :  { %2642 = vmatpush.bf16.msrb.mxu1 %v4383_v50  ;;  %v1872_v48 = vadd.f32 %v1871_v46, %v1859_v43  ;;  %2667 = vmatpush.bf16.msrb.mxu3 %v4400_v17  ;;  %v4403_v17 = vld [vmem:[%s4637_s5 + $0x10] sm:$0xff] }
 0x154   :  { %v1884_v47 = vpop.f32.mrf.mxu3 }
 0x155   :  { %v1885_v20 = vadd.f32 %v1884_v47, %v1872_v48  ;;  %2655 = vmatpush.bf16.msrb.mxu2 %v4391_v55 }
 0x156   :  { %2630 = vmatpush.bf16.msrb.mxu0 %v4374_v8 }
 0x157   :  { %2643 = vmatpush.bf16.msrb.mxu1 %v4382_v35  ;;  %v2048_v59 = vmax.f32 %v1885_v20, 0.0  ;;  %2668 = vmatpush.bf16.msrb.mxu3 %v4399_v21 }
 0x159   :  { %v2056_v63 = vpack.c.bf16 %v2048_v59, %v2048_v59  ;;  %2656 = vmatpush.bf16.msrb.mxu2 %v4390_v62  ;;  %v4415_v59 = vld [vmem:[%s4636_s4] ss:$0 sm:$0xff] }
 0x15a   :  { %2631 = vmatpush.bf16.msrb.mxu0 %v4373_v37  ;;  %v1873_v54 = vpop.f32.mrf.mxu2 }
 0x15b   :  { %2644 = vmatpush.bf16.msrb.mxu1 %v4381_v40  ;;  %2669 = vmatpush.bf16.msrb.mxu3 %v4398_v25  ;;  %v4393_v40 = vld [vmem:[#allocation4 + $0x1c0] sm:$0xff] }
 0x15c   :  { %v1886_v57 = vpop.f32.mrf.mxu3 }
 0x15d   :  { %2657 = vmatpush.bf16.msrb.mxu2 %v4389_v0 }
 0x15e   :  { %2632 = vmatpush.bf16.msrb.mxu0 %v4372_v44 }
 0x15f   :  { %2645 = vmatpush.bf16.msrb.mxu1 %v4380_v45  ;;  %2670 = vmatpush.bf16.msrb.mxu3 %v4397_v26  ;;  %v325_v45 = vperm.slane %v4417_v2, 7 }
 0x161   :  { %2658 = vmatpush.bf16.msrb.mxu2 %v4388_v1 }
 0x162   :  { %2633 = vmatpush.bf16.msrb.mxu0 %v4371_v19 }
 0x163   :  { %2646 = vmatpush.bf16.msrb.mxu1 %v4379_v56  ;;  %2671 = vmatpush.bf16.msrb.mxu3 %v4396_v28 }
 0x165   :  { %2659 = vmatpush.bf16.msrb.mxu2 %v4387_v6 }
 0x166   :  { %2634 = vmatpush.bf16.msrb.mxu0 %v4370_v51 }
 0x167   :  { %2647 = vmatpush.bf16.msrb.mxu1 %v4378_v53  ;;  %2672 = vmatpush.bf16.msrb.mxu3 %v4395_v29 }
 0x168   :  { %v1897_v32 = vpop.f32.mrf.mxu0 }
 0x169   :  { %v1898_v4 = vadd.f32 %v1897_v32, %v323_v3  ;;  %2660 = vmatpush.bf16.msrb.mxu2 %v4386_v11  ;;  %v4408_v11 = vld [vmem:[%s4637_s5 + $0x38] sm:$0xff] }
 0x16a   :  { %2635 = vmatpush.bf16.msrb.mxu0 %v4369_v60  ;;  %v1910_v5 = vpop.f32.mrf.mxu1 }
 0x16b   :  { %2648 = vmatpush.bf16.msrb.mxu1 %v4377_v61  ;;  %v1911_v7 = vadd.f32 %v1910_v5, %v1898_v4  ;;  %2673 = vmatpush.bf16.msrb.mxu3 %v4394_v34 }
 0x16d   :  { %2636 = vmatmul.bf16.vlgmr.msrb.gmra.mxu0 %v2056_v63  ;;  %2661 = vmatpush.bf16.msrb.mxu2 %v4385_v16  ;;  %v4404_v16 = vld [vmem:[%s4637_s5 + $0x18] sm:$0xff] }
 0x16e   :  { %2749 = vmatpush.bf16.msra.mxu0 %v4408_v11 }
 0x16f   :  { %2674 = vmatpush.bf16.msrb.mxu3 %v4393_v40 }
 0x170   :  { %v1899_v13 = vpop.f32.mrf.mxu0 }
 0x172   :  { %v1923_v9 = vpop.f32.mrf.mxu2  ;;  %v1912_v14 = vpop.f32.mrf.mxu1 }
 0x173   :  { %v1924_v10 = vadd.f32 %v1923_v9, %v1911_v7  ;;  %v4406_v14 = vld [vmem:[%s4637_s5 + $0x28] sm:$0xff] }
 0x174   :  { %v1936_v38 = vpop.f32.mrf.mxu3 }
 0x175   :  { %v1937_v12 = vadd.f32 %v1936_v38, %v1924_v10 }
 0x177   :  { %v2049_v15 = vmax.f32 %v1937_v12, 0.0  ;;  %v4407_v12 = vld [vmem:[%s4637_s5 + $0x30] sm:$0xff] }
 0x178   :  { %2750 = vmatpush.bf16.msra.mxu0 %v4407_v12 }
 0x179   :  { %v2057_v52 = vpack.c.bf16 %v2049_v15, %v2049_v15  ;;  %v4405_v15 = vld [vmem:[%s4637_s5 + $0x20] sm:$0xff] }
 0x17a   :  { %v1925_v23 = vpop.f32.mrf.mxu2 }
 0x17b   :  { %2649 = vmatmul.bf16.vlgmr.msrb.gmra.mxu1 %v2057_v52  ;;  %v4402_v52 = vld [vmem:[%s4637_s5 + $0x8] sm:$0xff]  ;;  %v4401_v23 = vld [vmem:[%s4637_s5] sm:$0xff] }
 0x17c   :  { %v1938_v24 = vpop.f32.mrf.mxu3  ;;  %2751 = vmatpush.bf16.msra.mxu0 %v4406_v14 }
 0x180   :  { %2752 = vmatpush.bf16.msra.mxu0 %v4405_v15 }
 0x184   :  { %2753 = vmatpush.bf16.msra.mxu0 %v4404_v16 }
 0x188   :  { %v1949_v58 = vpop.f32.mrf.mxu0  ;;  %2754 = vmatpush.bf16.msra.mxu0 %v4403_v17 }
 0x189   :  { %v1950_v30 = vadd.f32 %v1949_v58, %v324_v27 }
 0x18a   :  { %v1962_v31 = vpop.f32.mrf.mxu1 }
 0x18b   :  { %v1963_v50 = vadd.f32 %v1962_v31, %v1950_v30  ;;  %v4416_v30 = vld [vmem:[%s4638_s6] ss:$0 sm:$0xff] }
 0x18c   :  { %2755 = vmatpush.bf16.msra.mxu0 %v4402_v52 }
 0x190   :  { %v1951_v37 = vpop.f32.mrf.mxu0  ;;  %2756 = vmatpush.bf16.msra.mxu0 %v4401_v23 }
 0x192   :  { %v1975_v33 = vpop.f32.mrf.mxu2  ;;  %v1964_v39 = vpop.f32.mrf.mxu1 }
 0x193   :  { %v1976_v8 = vadd.f32 %v1975_v33, %v1963_v50 }
 0x194   :  { %v1988_v35 = vpop.f32.mrf.mxu3 }
 0x195   :  { %v1989_v36 = vadd.f32 %v1988_v35, %v1976_v8 }
 0x197   :  { %v2050_v41 = vmax.f32 %v1989_v36, 0.0 }
 0x199   :  { %v2058_v42 = vpack.c.bf16 %v2050_v41, %v2050_v41 }
 0x19a   :  { %v1977_v43 = vpop.f32.mrf.mxu2 }
 0x19b   :  { %2662 = vmatmul.bf16.vlgmr.msrb.gmra.mxu2 %v2058_v42 }
 0x19c   :  { %v1990_v44 = vpop.f32.mrf.mxu3 }
 0x1a9   :  { %v2001_v46 = vpop.f32.mrf.mxu0 }
 0x1aa   :  { %v2002_v48 = vadd.f32 %v2001_v46, %v325_v45 }
 0x1ab   :  { %v2014_v47 = vpop.f32.mrf.mxu1 }
 0x1ac   :  { %v2015_v19 = vadd.f32 %v2014_v47, %v2002_v48 }
 0x1b1   :  { %v2003_v18 = vpop.f32.mrf.mxu0 }
 0x1b3   :  { %v2027_v22 = vpop.f32.mrf.mxu2  ;;  %v2016_v20 = vpop.f32.mrf.mxu1 }
 0x1b4   :  { %v2028_v49 = vadd.f32 %v2027_v22, %v2015_v19 }
 0x1b5   :  { %v2040_v56 = vpop.f32.mrf.mxu3 }
 0x1b6   :  { %v2041_v51 = vadd.f32 %v2040_v56, %v2028_v49 }
 0x1b8   :  { %v2051_v53 = vmax.f32 %v2041_v51, 0.0 }
 0x1ba   :  { %v2059_v54 = vpack.c.bf16 %v2051_v53, %v2051_v53 }
 0x1bb   :  { %v2029_v55 = vpop.f32.mrf.mxu2 }
 0x1bc   :  { %2675 = vmatmul.bf16.vlgmr.msrb.gmra.mxu3 %v2059_v54 }
 0x1bd   :  { %v2042_v57 = vpop.f32.mrf.mxu3 }
 0x1ca   :  { %v2585_v60 = vpop.f32.mrf.mxu0 }
 0x1cb   :  { %v2586_v61 = vadd.f32 %v4415_v59, %v2585_v60  ;;  %v2598_v62 = vpop.f32.mrf.mxu1 }
 0x1cd   :  { %v2599_v63 = vadd.f32 %v2598_v62, %v2586_v61 }
 0x1d2   :  { %v2587_v1 = vpop.f32.mrf.mxu0 }
 0x1d3   :  { %v2611_v0 = vpop.f32.mrf.mxu2  ;;  %v2600_v3 = vpop.f32.mrf.mxu1 }
 0x1d4   :  { %v2612_v2 = vadd.f32 %v2611_v0, %v2599_v63 }
 0x1d5   :  { %v2624_v32 = vpop.f32.mrf.mxu3 }
 0x1d6   :  { %v2625_v4 = vadd.f32 %v2624_v32, %v2612_v2 }
 0x1db   :  { %v2613_v5 = vpop.f32.mrf.mxu2 }
 0x1dd   :  { %v2626_v6 = vpop.f32.mrf.mxu3 }
 0x1ea   :  { %v2637_v7 = vpop.f32.mrf.mxu0 }
 0x1eb   :  { %v2638_v9 = vadd.f32 %v2637_v7, %v2625_v4 }
 0x1f2   :  { %v2639_v10 = vpop.f32.mrf.mxu0 }
 0x1f8   :  { %v2650_v38 = vpop.f32.mrf.mxu1 }
 0x1f9   :  { %v2651_v25 = vadd.f32 %v2650_v38, %v2638_v9 }
 0x200   :  { %v2652_v13 = vpop.f32.mrf.mxu1 }
 0x21e   :  { %v2663_v21 = vpop.f32.mrf.mxu2 }
 0x21f   :  { %v2664_v26 = vadd.f32 %v2663_v21, %v2651_v25 }
 0x226   :  { %v2665_v24 = vpop.f32.mrf.mxu2 }
 0x23f   :  { %v2676_v27 = vpop.f32.mrf.mxu3 }
 0x240   :  { %v2677_v28 = vadd.f32 %v2676_v27, %v2664_v26 }
 0x242   :  { %v2680_v58 = vpack.c.bf16 %v2677_v28, %v2677_v28 }
 0x244   :  { %2757 = vmatmul.bf16.vlgmr.msra.gmra.mxu0 %v2680_v58 }
 0x247   :  { %v2678_v29 = vpop.f32.mrf.mxu3 }
 0x2c1   :  { %v2758_v31 = vpop.f32.mrf.mxu0 }
 0x2c2   :  { %v2759_v50 = vadd.f32 %v4416_v30, %v2758_v31 }
 0x2c4   :  { %2762 = vst [vmem:[%s4639_s7] sm:$0xff] %v2759_v50 }
 0x2c9   :  { %v2760_v33 = vpop.f32.mrf.mxu0 }
 0x2ca   :  { %2767 = vsyncpa [#allocation3], 1 }
 0x2cb   :  { %2768 = vsyncpa [#allocation5], 1 }

</bundles_post_ra>
